<compile_context>
chip_gen: v6e
topology: v6e:2x2x1
jax: 0.10.0
libtpu: 0.0.40
codegen_flags: <defaults>
</compile_context>

<pallas_src>
import functools

import jax
import jax.numpy as jnp
from jax.experimental import pallas as pl
from jax.experimental.pallas import tpu as pltpu


# ---------------------------------------------------------------------------
# Fused Pallas kernel: one batch-tile (Bt, H, W*C) per grid step.
# ---------------------------------------------------------------------------
def encoder_kernel(x_ref, wqkv_ref, gsum_ref, gexp_ref, gpwq_ref, gpwk_ref,
                   pcw_ref, ptexp_ref, wfc1_ref, fc1b_ref, wfc2_ref, pcc_ref,
                   o_ref, *, C):
    x = x_ref[...]                          # (Bt, H, WC) f32, lane-dense
    Bt, H, WC = x.shape
    M2 = Bt * H
    inv_c = 1.0 / C
    bf16 = jnp.bfloat16

    gsum = gsum_ref[...]                    # (WC, W) bf16: sum over C per w-group
    gexp = gexp_ref[...]                    # (W, WC) f32 : broadcast per-w value to C lanes

    # Packed per-channel rows; parameter groups start on 8-row boundaries.
    pcc = pcc_ref[...]                      # (72, WC) f32
    SQ, SK, DWC, PJ, MISC = 0, 16, 32, 48, 64
    # group layout: [9 dw taps, dw bias, (bn scale, bn shift)] per conv,
    #               MISC = [ln1_g, ln1_b, ln2_g, ln2_b, fc2_b]

    # Hoisted minimal-shape border masks for the h-direction 3x3 shifts
    # (one vreg; w-direction border zeros are folded into the tap rows).
    hpos = jax.lax.broadcasted_iota(jnp.int32, (1, H, WC), 1)
    h_lo = hpos >= 1          # valid rows when reading h-1
    h_hi = hpos < H - 1       # valid rows when reading h+1

    def dwconv3x3(t, base):
        """Depthwise 3x3, stride 1, zero pad 1, on lane-dense (Bt, H, W*C)."""
        # TODO(synk): the three within-row (kw) taps per kh could instead be a
        # banded (WC,WC) bf16 MXU matmul if the VALU/XLU slots ever saturate.
        acc = None
        for kh in range(3):
            dh = kh - 1
            if dh == 0:
                th = t
            else:
                th = pltpu.roll(t, shift=(-dh) % H, axis=1)
                th = jnp.where(h_hi if dh == 1 else h_lo, th, 0.0)
            for kw in range(3):
                dw = kw - 1
                # w-border zeros are baked into the tap row, so the lane roll
                # needs no select: wrapped lanes hit a zero tap.
                s = th if dw == 0 else pltpu.roll(th, shift=(-dw * C) % WC, axis=2)
                term = s * pcc[base + kh * 3 + kw][None, None, :]
                acc = term if acc is None else acc + term
        return acc + pcc[base + 9][None, None, :]          # bias row

    def gelu(t):
        # TODO(synk): torch.nn.GELU() is the exact erf form; tanh approximation
        # is used to guarantee a Mosaic lowering (max abs err ~3e-4).
        c0 = 0.7978845608028654  # sqrt(2/pi)
        return 0.5 * t * (1.0 + jnp.tanh(c0 * (t + 0.044715 * t * t * t)))

    def spatial_op(t, base, gpw):
        """x * sigmoid(conv1x1_{C->1}(relu(bn(dwconv3x3(x)))))."""
        u = dwconv3x3(t, base)
        u = u * pcc[base + 10][None, None, :] + pcc[base + 11][None, None, :]  # folded BN
        u = jnp.maximum(u, 0.0)
        s = jnp.dot(u.reshape(M2, WC).astype(bf16), gpw,
                    preferred_element_type=jnp.float32)     # (M2, W), pw weight folded in
        sig = jax.nn.sigmoid(s)
        sig_e = jnp.dot(sig, gexp, preferred_element_type=jnp.float32)
        return t * sig_e.reshape(Bt, H, WC)

    def layernorm_cf(t, g_row, b_row, eps=1e-6):
        """Channels-first LayerNorm over C via group-sum / expand matmuls."""
        t2 = t.reshape(M2, WC)
        mu = jnp.dot(t2.astype(bf16), gsum, preferred_element_type=jnp.float32) * inv_c
        mu_e = jnp.dot(mu, gexp, preferred_element_type=jnp.float32)
        d = t2 - mu_e                                        # f32 on the VPU
        # TODO(synk): d*d is truncated to bf16 for a single-pass group-sum MXU
        # matmul (~0.4% variance error, comparable to the other bf16 matmuls);
        # switch to a multi-pass f32 matmul if tighter LN accuracy is needed.
        var = jnp.dot((d * d).astype(bf16), gsum,
                      preferred_element_type=jnp.float32) * inv_c
        var_e = jnp.dot(var, gexp, preferred_element_type=jnp.float32)
        out = (d * jax.lax.rsqrt(var_e + eps) * pcc[g_row][None, :]
               + pcc[b_row][None, :])
        return out.reshape(Bt, H, WC)

    # ---- AdditiveTokenMixer -------------------------------------------------
    # Fused qkv 1x1 conv (bias=False): one bf16 MXU matmul against a
    # kron-expanded (WC, 3*WC) weight; q/k/v splits are 128-lane aligned.
    x2 = x.reshape(M2, WC)
    qkv = jnp.dot(x2.astype(bf16), wqkv_ref[...],
                  preferred_element_type=jnp.float32)        # (M2, 3*WC)
    q = qkv[:, :WC].reshape(Bt, H, WC)
    k = qkv[:, WC:2 * WC].reshape(Bt, H, WC)
    v = qkv[:, 2 * WC:].reshape(Bt, H, WC)

    # oper_q / oper_k: SpatialOperation -> ChannelOperation
    q = spatial_op(q, SQ, gpwq_ref[...])
    k = spatial_op(k, SK, gpwk_ref[...])

    # ChannelOperation for q and k merged into a single block-diagonal matmul:
    # att = sigmoid(avg_pool(x) @ Wc); pooling over W and the 1x1 weight folded
    # into pcw; ptexp (0/1, f32) broadcasts the gate back to the lanes with the
    # sigmoid kept in f32.
    pooled = jnp.concatenate([jnp.sum(q, axis=1), jnp.sum(k, axis=1)], axis=-1)
    att = jax.nn.sigmoid(
        jnp.dot(pooled.astype(bf16), pcw_ref[...],
                preferred_element_type=jnp.float32))         # (Bt, 2C)
    att_e = jnp.dot(att, ptexp_ref[...],
                    preferred_element_type=jnp.float32)      # (Bt, 2*WC)
    q = q * att_e[:, None, :WC]
    k = k * att_e[:, None, WC:]

    # proj(dwc(q + k) * v)
    a = dwconv3x3(q + k, DWC)
    mix = dwconv3x3(a * v, PJ)

    # ---- residual + norm1 ----
    src = layernorm_cf(x + mix, MISC + 0, MISC + 1)

    # ---- MLP: fc2(gelu(fc1(src))) as kron-expanded lane-dense matmuls ----
    src2 = src.reshape(M2, WC)
    h = jnp.dot(src2.astype(bf16), wfc1_ref[...],
                preferred_element_type=jnp.float32) + fc1b_ref[...]   # (M2, W*cm)
    h = gelu(h)
    h2 = jnp.dot(h.astype(bf16), wfc2_ref[...],
                 preferred_element_type=jnp.float32) + pcc[MISC + 4][None, :]

    # ---- residual + norm2 ----
    out = layernorm_cf(src + h2.reshape(Bt, H, WC), MISC + 2, MISC + 3)
    o_ref[...] = out                       # unmasked 128-wide lane-dense store


# ---------------------------------------------------------------------------
# Parameter setup (deterministic, torch-convention conv shapes).
# ---------------------------------------------------------------------------
def init_params(key, c1, cm):
    ks = list(jax.random.split(key, 32))
    it = iter(ks)

    def rnd(shape, scale=0.2):
        return (scale * jax.random.normal(next(it), shape)).astype(jnp.float32)

    p = {}
    p["qkv_w"] = rnd((3 * c1, c1, 1, 1))                 # Conv2d(c1, 3c1, 1, bias=False)
    for pre in ("q", "k"):
        p[f"s{pre}_dw_w"] = rnd((c1, 1, 3, 3))           # depthwise 3x3
        p[f"s{pre}_dw_b"] = rnd((c1,))
        p[f"s{pre}_bn_g"] = 1.0 + rnd((c1,), 0.1)        # BatchNorm2d (inference)
        p[f"s{pre}_bn_b"] = rnd((c1,), 0.1)
        p[f"s{pre}_bn_mean"] = jnp.zeros((c1,), jnp.float32)
        p[f"s{pre}_bn_var"] = jnp.ones((c1,), jnp.float32)
        p[f"s{pre}_pw_w"] = rnd((1, c1, 1, 1))           # Conv2d(c1, 1, 1, bias=False)
        p[f"c{pre}_w"] = rnd((c1, c1, 1, 1))             # Conv2d(c1, c1, 1, bias=False)
    p["dwc_w"] = rnd((c1, 1, 3, 3)); p["dwc_b"] = rnd((c1,))
    p["proj_w"] = rnd((c1, 1, 3, 3)); p["proj_b"] = rnd((c1,))
    p["fc1_w"] = rnd((cm, c1, 1, 1)); p["fc1_b"] = rnd((cm,))
    p["fc2_w"] = rnd((c1, cm, 1, 1)); p["fc2_b"] = rnd((c1,))
    p["ln1_g"] = 1.0 + rnd((c1,), 0.1); p["ln1_b"] = rnd((c1,), 0.1)
    p["ln2_g"] = 1.0 + rnd((c1,), 0.1); p["ln2_b"] = rnd((c1,), 0.1)
    return p


def pack_kernel_weights(p, c1, cm, H, W):
    """Convert torch-convention weights into the lane-dense kernel layouts.

    Lane index convention inside the kernel: l = w * C + c.
    NOTE: the kron/block-diag expansion is sized for small W*C (~128 lanes);
    for production-scale C switch the channel-mixing matmuls to an (M, C)
    layout path instead of expanding the weights by W (the expanded weights
    are 7/8 zeros).  # TODO(synk): compact path for large C.
    """
    C = c1
    WC = W * C
    f32, bf16 = jnp.float32, jnp.bfloat16
    eye_w = jnp.eye(W, dtype=f32)
    G = jnp.kron(eye_w, jnp.ones((C, 1), f32))                 # (WC, W)
    P = jnp.kron(jnp.ones((W, 1), f32), jnp.eye(C, dtype=f32)) # (WC, C)
    lane_w = jnp.arange(WC) // C

    def tile_c(v):                    # (C,) -> (WC,)
        return jnp.tile(v.astype(f32), W)

    def dw_taps(w):
        # (C,1,3,3) -> (9, WC), row = kh*3+kw.  The w-direction border zeros
        # (left border for kw=0, right border for kw=2) are folded into the
        # taps so the kernel needs no lane masks/selects on the kw shifts.
        t = jnp.transpose(w[:, 0], (1, 2, 0)).reshape(9, C)
        taps = jnp.tile(t.astype(f32), (1, W))
        kw_idx = jnp.arange(9) % 3
        keep = jnp.ones((9, WC), f32)
        keep = jnp.where((kw_idx[:, None] == 0) & (lane_w[None, :] == 0), 0.0, keep)
        keep = jnp.where((kw_idx[:, None] == 2) & (lane_w[None, :] == W - 1), 0.0, keep)
        return taps * keep

    def kron_block(wmat):             # (Cin, Cout) -> (W*Cin, W*Cout) block-diag
        return jnp.kron(eye_w, wmat.astype(f32))

    def block_diag2(a, b):
        za = jnp.zeros((a.shape[0], b.shape[1]), a.dtype)
        zb = jnp.zeros((b.shape[0], a.shape[1]), a.dtype)
        return jnp.concatenate(
            [jnp.concatenate([a, za], axis=1),
             jnp.concatenate([zb, b], axis=1)], axis=0)

    def bn_fold(g, b, m, var, eps=1e-5):
        scale = g / jnp.sqrt(var + eps)
        shift = b - m * scale
        return tile_c(scale), tile_c(shift)

    # fused qkv: output columns ordered [q-block | k-block | v-block]
    w_all = p["qkv_w"][:, :, 0, 0]                             # (3C, C) torch (out, in)
    wqkv_big = jnp.concatenate(
        [kron_block(w_all[:C].T),
         kron_block(w_all[C:2 * C].T),
         kron_block(w_all[2 * C:].T)], axis=1)                 # (WC, 3*WC)

    def gpw(pw_vec):                  # fold the C->1 conv into the group-sum matrix
        return G * tile_c(pw_vec)[:, None]                     # (WC, W)

    hw = float(H * W)
    pc_q = (P @ p["cq_w"][:, :, 0, 0].T.astype(f32)) / hw      # pool + 1x1, (WC, C)
    pc_k = (P @ p["ck_w"][:, :, 0, 0].T.astype(f32)) / hw
    pcw = block_diag2(pc_q, pc_k)                              # (2*WC, 2*C)
    ptexp = block_diag2(P.T, P.T)                              # (2*C, 2*WC), 0/1

    wfc1_big = kron_block(p["fc1_w"][:, :, 0, 0].T)            # (WC, W*cm)
    wfc2_big = kron_block(p["fc2_w"][:, :, 0, 0].T)            # (W*cm, WC)
    fc1b_t = jnp.tile(p["fc1_b"].astype(f32), W)[None, :]      # (1, W*cm)

    sq_bn_s, sq_bn_sh = bn_fold(p["sq_bn_g"], p["sq_bn_b"],
                                p["sq_bn_mean"], p["sq_bn_var"])
    sk_bn_s, sk_bn_sh = bn_fold(p["sk_bn_g"], p["sk_bn_b"],
                                p["sk_bn_mean"], p["sk_bn_var"])

    def pad8(rows):
        """Stack rows, pad group to a multiple of 8 rows so every parameter
        group starts on an (8,128) sublane-tile boundary in the packed array."""
        m = jnp.concatenate(rows, axis=0)
        pad = (-m.shape[0]) % 8
        if pad:
            m = jnp.concatenate([m, jnp.zeros((pad, m.shape[1]), f32)], axis=0)
        return m

    # Packed per-channel rows; offsets must match SQ/SK/DWC/PJ/MISC in-kernel.
    pcc = jnp.concatenate([
        pad8([dw_taps(p["sq_dw_w"]), tile_c(p["sq_dw_b"])[None],
              sq_bn_s[None], sq_bn_sh[None]]),                        # rows  0..15
        pad8([dw_taps(p["sk_dw_w"]), tile_c(p["sk_dw_b"])[None],
              sk_bn_s[None], sk_bn_sh[None]]),                        # rows 16..31
        pad8([dw_taps(p["dwc_w"]), tile_c(p["dwc_b"])[None]]),        # rows 32..47
        pad8([dw_taps(p["proj_w"]), tile_c(p["proj_b"])[None]]),      # rows 48..63
        pad8([tile_c(p["ln1_g"])[None], tile_c(p["ln1_b"])[None],
              tile_c(p["ln2_g"])[None], tile_c(p["ln2_b"])[None],
              tile_c(p["fc2_b"])[None]]),                             # rows 64..71
    ], axis=0).astype(f32)                                            # (72, WC)

    weights = [
        wqkv_big.astype(bf16),           # MXU weights in bf16, f32 accumulation
        G.astype(bf16),                  # gsum (WC, W)  bf16 (exact 0/1)
        jnp.transpose(G),                # gexp (W, WC)  f32 (tiny K=W expand)
        gpw(p["sq_pw_w"][0, :, 0, 0]).astype(bf16),
        gpw(p["sk_pw_w"][0, :, 0, 0]).astype(bf16),
        pcw.astype(bf16),
        ptexp,                           # f32 0/1; keeps the sigmoid gate in f32
        wfc1_big.astype(bf16),
        fc1b_t,
        wfc2_big.astype(bf16),
        pcc,
    ]
    return weights


# ---------------------------------------------------------------------------
# Wrapper calling pallas_call.
# ---------------------------------------------------------------------------
def _pick_batch_tile(B, H):
    """Per-generation batch tile.

    Targets M2 = Bt*H of ~512 rows (v6e/v7x) or ~128 rows (v5e: 128x128 MXU,
    single store slot), and on v7x caps Bt at B//2 so the batch grid has at
    least 2 steps for the 2 TensorCores.
    """
    try:
        kind = jax.devices()[0].device_kind.lower()
    except Exception:  # pragma: no cover - defensive
        kind = ""
    target_rows = 128 if "v5" in kind else 512
    two_cores = ("v7" in kind) or ("tpu7" in kind)
    max_bt = max(1, target_rows // max(H, 1))
    if two_cores and B >= 2:
        max_bt = min(max_bt, max(1, B // 2))
    max_bt = min(max_bt, B)
    bt = 1
    for cand in range(1, max_bt + 1):
        if B % cand == 0:
            bt = cand
    return bt


@jax.jit
def transformer_encoder_layer(x_nchw, weights):
    B, C, H, W = x_nchw.shape
    WC = W * C
    Bt = _pick_batch_tile(B, H)

    # TODO(synk): NCHW<->NHWC transposes stay in XLA; absorb into the kernel's
    # BlockSpecs if B*H*W*C grows enough for the two extra HBM passes to matter.
    x = jnp.transpose(x_nchw, (0, 2, 3, 1)).reshape(B, H, WC).astype(jnp.float32)

    in_specs = [pl.BlockSpec((Bt, H, WC), lambda b: (b, 0, 0))]
    for w in weights:
        # Constant block index -> each weight is DMA'd once and reused across steps.
        in_specs.append(pl.BlockSpec(w.shape, (lambda b, nd=w.ndim: (0,) * nd)))

    # Size the scoped-VMEM request from the actual buffers (v7x has only 64 MiB
    # physical VMEM): double-buffered x/out tiles + weights + generous headroom
    # for the f32 intermediates (qkv, fc1 hidden, q/k/v/mix/src live tensors).
    tile_bytes = Bt * H * WC * 4
    weight_bytes = sum(int(w.size) * w.dtype.itemsize for w in weights)
    vmem_limit = int(min(56 << 20,
                         max(16 << 20,
                             4 * tile_bytes + 2 * weight_bytes
                             + 28 * tile_bytes + (4 << 20))))

    out = pl.pallas_call(
        functools.partial(encoder_kernel, C=C),
        out_shape=jax.ShapeDtypeStruct((B, H, WC), jnp.float32),
        grid_spec=pltpu.PrefetchScalarGridSpec(
            num_scalar_prefetch=0,
            grid=(B // Bt,),
            in_specs=in_specs,
            out_specs=pl.BlockSpec((Bt, H, WC), lambda b: (b, 0, 0)),
        ),
        compiler_params=pltpu.CompilerParams(
            dimension_semantics=("parallel",),     # batch tiles are independent
            vmem_limit_bytes=vmem_limit,
        ),
    )(x, *weights)

    return jnp.transpose(out.reshape(B, H, W, C), (0, 3, 1, 2))   # back to NCHW


if __name__ == "__main__":
    B, C1, CM, H, W = 8, 16, 32, 8, 8      # W*C1 = 128 -> fully lane-dense rows
    key = jax.random.PRNGKey(0)
    kx, kp = jax.random.split(key)

    x = jax.random.normal(kx, (B, C1, H, W), dtype=jnp.float32)   # NCHW, like PyTorch
    params = init_params(kp, C1, CM)
    weights = pack_kernel_weights(params, C1, CM, H, W)

    out = transformer_encoder_layer(x, weights)
    out = jax.block_until_ready(out)

    assert out.shape == (B, C1, H, W), out.shape
    assert bool(jnp.all(jnp.isfinite(out)))
    print("KERNEL_OK")
</pallas_src>

<mosaic_0001>
module attributes {stable_mosaic.version = 11 : i64} {
  func.func @encoder_kernel(%arg0: i32, %arg1: memref<8x8x128xf32, #tpu.memory_space<vmem>>, %arg2: memref<128x384xbf16, #tpu.memory_space<vmem>>, %arg3: memref<128x8xbf16, #tpu.memory_space<vmem>>, %arg4: memref<8x128xf32, #tpu.memory_space<vmem>>, %arg5: memref<128x8xbf16, #tpu.memory_space<vmem>>, %arg6: memref<128x8xbf16, #tpu.memory_space<vmem>>, %arg7: memref<256x32xbf16, #tpu.memory_space<vmem>>, %arg8: memref<32x256xf32, #tpu.memory_space<vmem>>, %arg9: memref<128x256xbf16, #tpu.memory_space<vmem>>, %arg10: memref<1x256xf32, #tpu.memory_space<vmem>>, %arg11: memref<256x128xbf16, #tpu.memory_space<vmem>>, %arg12: memref<72x128xf32, #tpu.memory_space<vmem>>, %arg13: memref<8x8x128xf32, #tpu.memory_space<vmem>>) attributes {dimension_semantics = [#tpu.dimension_semantics<parallel>], iteration_bounds = array<i64: 1>, scalar_prefetch = 0 : i64, scratch_operands = 0 : i64, tpu.core_type = #tpu.core_type<tc>, window_params = [{transform_indices = @transform_0, window_bounds = array<i64: 8, 8, 128>}, {pipeline_mode = #tpu.pipeline_mode<synchronous>, transform_indices = @transform_1, window_bounds = array<i64: 128, 384>}, {pipeline_mode = #tpu.pipeline_mode<synchronous>, transform_indices = @transform_2, window_bounds = array<i64: 128, 8>}, {pipeline_mode = #tpu.pipeline_mode<synchronous>, transform_indices = @transform_3, window_bounds = array<i64: 8, 128>}, {pipeline_mode = #tpu.pipeline_mode<synchronous>, transform_indices = @transform_4, window_bounds = array<i64: 128, 8>}, {pipeline_mode = #tpu.pipeline_mode<synchronous>, transform_indices = @transform_5, window_bounds = array<i64: 128, 8>}, {pipeline_mode = #tpu.pipeline_mode<synchronous>, transform_indices = @transform_6, window_bounds = array<i64: 256, 32>}, {pipeline_mode = #tpu.pipeline_mode<synchronous>, transform_indices = @transform_7, window_bounds = array<i64: 32, 256>}, {pipeline_mode = #tpu.pipeline_mode<synchronous>, transform_indices = @transform_8, window_bounds = array<i64: 128, 256>}, {pipeline_mode = #tpu.pipeline_mode<synchronous>, transform_indices = @transform_9, window_bounds = array<i64: 1, 256>}, {pipeline_mode = #tpu.pipeline_mode<synchronous>, transform_indices = @transform_10, window_bounds = array<i64: 256, 128>}, {pipeline_mode = #tpu.pipeline_mode<synchronous>, transform_indices = @transform_11, window_bounds = array<i64: 72, 128>}, {transform_indices = @transform_12, window_bounds = array<i64: 8, 8, 128>}]} {
    %c0 = arith.constant 0 : index
    %c0_0 = arith.constant 0 : index
    %c0_1 = arith.constant 0 : index
    %0 = vector.load %arg1[%c0, %c0_0, %c0_1] : memref<8x8x128xf32, #tpu.memory_space<vmem>>, vector<8x8x128xf32>
    %c0_2 = arith.constant 0 : index
    %c0_3 = arith.constant 0 : index
    %1 = vector.load %arg3[%c0_2, %c0_3] : memref<128x8xbf16, #tpu.memory_space<vmem>>, vector<128x8xbf16>
    %c0_4 = arith.constant 0 : index
    %c0_5 = arith.constant 0 : index
    %2 = vector.load %arg4[%c0_4, %c0_5] : memref<8x128xf32, #tpu.memory_space<vmem>>, vector<8x128xf32>
    %c0_6 = arith.constant 0 : index
    %c0_7 = arith.constant 0 : index
    %3 = vector.load %arg12[%c0_6, %c0_7] : memref<72x128xf32, #tpu.memory_space<vmem>>, vector<72x128xf32>
    %4 = tpu.iota {dimensions = array<i32: 1>} : vector<1x8x128xi32>
    %c1_i32 = arith.constant 1 : i32
    %5 = vector.broadcast %c1_i32 : i32 to vector<1x8x128xi32>
    %6 = arith.cmpi sge, %4, %5 : vector<1x8x128xi32>
    %c7_i32 = arith.constant 7 : i32
    %7 = vector.broadcast %c7_i32 : i32 to vector<1x8x128xi32>
    %8 = arith.cmpi slt, %4, %7 : vector<1x8x128xi32>
    %9 = vector.shape_cast %0 : vector<8x8x128xf32> to vector<64x128xf32>
    %10 = arith.truncf %9 : vector<64x128xf32> to vector<64x128xbf16>
    %c0_8 = arith.constant 0 : index
    %c0_9 = arith.constant 0 : index
    %11 = vector.load %arg2[%c0_8, %c0_9] : memref<128x384xbf16, #tpu.memory_space<vmem>>, vector<128x384xbf16>
    %cst = arith.constant dense<0.000000e+00> : vector<64x384xf32>
    %12 = tpu.matmul %10, %11, %cst {dimension_numbers = #tpu.dot_dimension_numbers<[1], [0], [0], [1], [0, 0, 1, 1], [], []>} : vector<64x128xbf16>, vector<128x384xbf16>, vector<64x384xf32> -> vector<64x384xf32>
    %13 = vector.extract_strided_slice %12 {offsets = [0, 0], sizes = [64, 128], strides = [1, 1]} : vector<64x384xf32> to vector<64x128xf32>
    %14 = vector.shape_cast %13 : vector<64x128xf32> to vector<8x8x128xf32>
    %15 = vector.extract_strided_slice %12 {offsets = [0, 128], sizes = [64, 128], strides = [1, 1]} : vector<64x384xf32> to vector<64x128xf32>
    %16 = vector.shape_cast %15 : vector<64x128xf32> to vector<8x8x128xf32>
    %17 = vector.extract_strided_slice %12 {offsets = [0, 256], sizes = [64, 128], strides = [1, 1]} : vector<64x384xf32> to vector<64x128xf32>
    %18 = vector.shape_cast %17 : vector<64x128xf32> to vector<8x8x128xf32>
    %c0_10 = arith.constant 0 : index
    %c0_11 = arith.constant 0 : index
    %19 = vector.load %arg5[%c0_10, %c0_11] : memref<128x8xbf16, #tpu.memory_space<vmem>>, vector<128x8xbf16>
    %c1_i32_12 = arith.constant 1 : i32
    %20 = tpu.dynamic_rotate %14 by %c1_i32_12 dim 1 : vector<8x8x128xf32>, i32 -> vector<8x8x128xf32>
    %cst_13 = arith.constant 0.000000e+00 : f32
    %21 = vector.shape_cast %6 : vector<1x8x128xi1> to vector<1x8x128xi1>
    %22 = vector.broadcast %21 : vector<1x8x128xi1> to vector<8x8x128xi1>
    %23 = vector.broadcast %cst_13 : f32 to vector<8x8x128xf32>
    %24 = arith.select %22, %20, %23 : vector<8x8x128xi1>, vector<8x8x128xf32>
    %c16_i32 = arith.constant 16 : i32
    %25 = tpu.dynamic_rotate %24 by %c16_i32 dim 2 : vector<8x8x128xf32>, i32 -> vector<8x8x128xf32>
    %26 = vector.extract_strided_slice %3 {offsets = [0, 0], sizes = [1, 128], strides = [1, 1]} : vector<72x128xf32> to vector<1x128xf32>
    %27 = vector.shape_cast %26 : vector<1x128xf32> to vector<128xf32>
    %28 = vector.shape_cast %27 : vector<128xf32> to vector<1x1x128xf32>
    %29 = vector.broadcast %28 : vector<1x1x128xf32> to vector<8x8x128xf32>
    %30 = arith.mulf %25, %29 : vector<8x8x128xf32>
    %31 = vector.extract_strided_slice %3 {offsets = [1, 0], sizes = [1, 128], strides = [1, 1]} : vector<72x128xf32> to vector<1x128xf32>
    %32 = vector.shape_cast %31 : vector<1x128xf32> to vector<128xf32>
    %33 = vector.shape_cast %32 : vector<128xf32> to vector<1x1x128xf32>
    %34 = vector.broadcast %33 : vector<1x1x128xf32> to vector<8x8x128xf32>
    %35 = arith.mulf %24, %34 : vector<8x8x128xf32>
    %36 = arith.addf %30, %35 : vector<8x8x128xf32>
    %c112_i32 = arith.constant 112 : i32
    %37 = tpu.dynamic_rotate %24 by %c112_i32 dim 2 : vector<8x8x128xf32>, i32 -> vector<8x8x128xf32>
    %38 = vector.extract_strided_slice %3 {offsets = [2, 0], sizes = [1, 128], strides = [1, 1]} : vector<72x128xf32> to vector<1x128xf32>
    %39 = vector.shape_cast %38 : vector<1x128xf32> to vector<128xf32>
    %40 = vector.shape_cast %39 : vector<128xf32> to vector<1x1x128xf32>
    %41 = vector.broadcast %40 : vector<1x1x128xf32> to vector<8x8x128xf32>
    %42 = arith.mulf %37, %41 : vector<8x8x128xf32>
    %43 = arith.addf %36, %42 : vector<8x8x128xf32>
    %c16_i32_14 = arith.constant 16 : i32
    %44 = tpu.dynamic_rotate %14 by %c16_i32_14 dim 2 : vector<8x8x128xf32>, i32 -> vector<8x8x128xf32>
    %45 = vector.extract_strided_slice %3 {offsets = [3, 0], sizes = [1, 128], strides = [1, 1]} : vector<72x128xf32> to vector<1x128xf32>
    %46 = vector.shape_cast %45 : vector<1x128xf32> to vector<128xf32>
    %47 = vector.shape_cast %46 : vector<128xf32> to vector<1x1x128xf32>
    %48 = vector.broadcast %47 : vector<1x1x128xf32> to vector<8x8x128xf32>
    %49 = arith.mulf %44, %48 : vector<8x8x128xf32>
    %50 = arith.addf %43, %49 : vector<8x8x128xf32>
    %51 = vector.extract_strided_slice %3 {offsets = [4, 0], sizes = [1, 128], strides = [1, 1]} : vector<72x128xf32> to vector<1x128xf32>
    %52 = vector.shape_cast %51 : vector<1x128xf32> to vector<128xf32>
    %53 = vector.shape_cast %52 : vector<128xf32> to vector<1x1x128xf32>
    %54 = vector.broadcast %53 : vector<1x1x128xf32> to vector<8x8x128xf32>
    %55 = arith.mulf %14, %54 : vector<8x8x128xf32>
    %56 = arith.addf %50, %55 : vector<8x8x128xf32>
    %c112_i32_15 = arith.constant 112 : i32
    %57 = tpu.dynamic_rotate %14 by %c112_i32_15 dim 2 : vector<8x8x128xf32>, i32 -> vector<8x8x128xf32>
    %58 = vector.extract_strided_slice %3 {offsets = [5, 0], sizes = [1, 128], strides = [1, 1]} : vector<72x128xf32> to vector<1x128xf32>
    %59 = vector.shape_cast %58 : vector<1x128xf32> to vector<128xf32>
    %60 = vector.shape_cast %59 : vector<128xf32> to vector<1x1x128xf32>
    %61 = vector.broadcast %60 : vector<1x1x128xf32> to vector<8x8x128xf32>
    %62 = arith.mulf %57, %61 : vector<8x8x128xf32>
    %63 = arith.addf %56, %62 : vector<8x8x128xf32>
    %c7_i32_16 = arith.constant 7 : i32
    %64 = tpu.dynamic_rotate %14 by %c7_i32_16 dim 1 : vector<8x8x128xf32>, i32 -> vector<8x8x128xf32>
    %cst_17 = arith.constant 0.000000e+00 : f32
    %65 = vector.shape_cast %8 : vector<1x8x128xi1> to vector<1x8x128xi1>
    %66 = vector.broadcast %65 : vector<1x8x128xi1> to vector<8x8x128xi1>
    %67 = vector.broadcast %cst_17 : f32 to vector<8x8x128xf32>
    %68 = arith.select %66, %64, %67 : vector<8x8x128xi1>, vector<8x8x128xf32>
    %c16_i32_18 = arith.constant 16 : i32
    %69 = tpu.dynamic_rotate %68 by %c16_i32_18 dim 2 : vector<8x8x128xf32>, i32 -> vector<8x8x128xf32>
    %70 = vector.extract_strided_slice %3 {offsets = [6, 0], sizes = [1, 128], strides = [1, 1]} : vector<72x128xf32> to vector<1x128xf32>
    %71 = vector.shape_cast %70 : vector<1x128xf32> to vector<128xf32>
    %72 = vector.shape_cast %71 : vector<128xf32> to vector<1x1x128xf32>
    %73 = vector.broadcast %72 : vector<1x1x128xf32> to vector<8x8x128xf32>
    %74 = arith.mulf %69, %73 : vector<8x8x128xf32>
    %75 = arith.addf %63, %74 : vector<8x8x128xf32>
    %76 = vector.extract_strided_slice %3 {offsets = [7, 0], sizes = [1, 128], strides = [1, 1]} : vector<72x128xf32> to vector<1x128xf32>
    %77 = vector.shape_cast %76 : vector<1x128xf32> to vector<128xf32>
    %78 = vector.shape_cast %77 : vector<128xf32> to vector<1x1x128xf32>
    %79 = vector.broadcast %78 : vector<1x1x128xf32> to vector<8x8x128xf32>
    %80 = arith.mulf %68, %79 : vector<8x8x128xf32>
    %81 = arith.addf %75, %80 : vector<8x8x128xf32>
    %c112_i32_19 = arith.constant 112 : i32
    %82 = tpu.dynamic_rotate %68 by %c112_i32_19 dim 2 : vector<8x8x128xf32>, i32 -> vector<8x8x128xf32>
    %83 = vector.extract_strided_slice %3 {offsets = [8, 0], sizes = [1, 128], strides = [1, 1]} : vector<72x128xf32> to vector<1x128xf32>
    %84 = vector.shape_cast %83 : vector<1x128xf32> to vector<128xf32>
    %85 = vector.shape_cast %84 : vector<128xf32> to vector<1x1x128xf32>
    %86 = vector.broadcast %85 : vector<1x1x128xf32> to vector<8x8x128xf32>
    %87 = arith.mulf %82, %86 : vector<8x8x128xf32>
    %88 = arith.addf %81, %87 : vector<8x8x128xf32>
    %89 = vector.extract_strided_slice %3 {offsets = [9, 0], sizes = [1, 128], strides = [1, 1]} : vector<72x128xf32> to vector<1x128xf32>
    %90 = vector.shape_cast %89 : vector<1x128xf32> to vector<128xf32>
    %91 = vector.shape_cast %90 : vector<128xf32> to vector<1x1x128xf32>
    %92 = vector.broadcast %91 : vector<1x1x128xf32> to vector<8x8x128xf32>
    %93 = arith.addf %88, %92 : vector<8x8x128xf32>
    %94 = vector.extract_strided_slice %3 {offsets = [10, 0], sizes = [1, 128], strides = [1, 1]} : vector<72x128xf32> to vector<1x128xf32>
    %95 = vector.shape_cast %94 : vector<1x128xf32> to vector<128xf32>
    %96 = vector.shape_cast %95 : vector<128xf32> to vector<1x1x128xf32>
    %97 = vector.broadcast %96 : vector<1x1x128xf32> to vector<8x8x128xf32>
    %98 = arith.mulf %93, %97 : vector<8x8x128xf32>
    %99 = vector.extract_strided_slice %3 {offsets = [11, 0], sizes = [1, 128], strides = [1, 1]} : vector<72x128xf32> to vector<1x128xf32>
    %100 = vector.shape_cast %99 : vector<1x128xf32> to vector<128xf32>
    %101 = vector.shape_cast %100 : vector<128xf32> to vector<1x1x128xf32>
    %102 = vector.broadcast %101 : vector<1x1x128xf32> to vector<8x8x128xf32>
    %103 = arith.addf %98, %102 : vector<8x8x128xf32>
    %cst_20 = arith.constant 0.000000e+00 : f32
    %104 = vector.broadcast %cst_20 : f32 to vector<8x8x128xf32>
    %105 = arith.maximumf %103, %104 : vector<8x8x128xf32>
    %106 = vector.shape_cast %105 : vector<8x8x128xf32> to vector<64x128xf32>
    %107 = arith.truncf %106 : vector<64x128xf32> to vector<64x128xbf16>
    %cst_21 = arith.constant dense<0.000000e+00> : vector<64x8xf32>
    %108 = tpu.matmul %107, %19, %cst_21 {dimension_numbers = #tpu.dot_dimension_numbers<[1], [0], [0], [1], [0, 0, 1, 1], [], []>} : vector<64x128xbf16>, vector<128x8xbf16>, vector<64x8xf32> -> vector<64x8xf32>
    %109 = arith.negf %108 : vector<64x8xf32>
    %110 = math.exp %109 : vector<64x8xf32>
    %cst_22 = arith.constant 1.000000e+00 : f32
    %111 = vector.broadcast %cst_22 : f32 to vector<64x8xf32>
    %112 = arith.addf %111, %110 : vector<64x8xf32>
    %113 = arith.divf %111, %112 : vector<64x8xf32>
    %cst_23 = arith.constant dense<0.000000e+00> : vector<64x128xf32>
    %114 = tpu.matmul %113, %2, %cst_23 {dimension_numbers = #tpu.dot_dimension_numbers<[1], [0], [0], [1], [0, 0, 1, 1], [], []>} : vector<64x8xf32>, vector<8x128xf32>, vector<64x128xf32> -> vector<64x128xf32>
    %115 = vector.shape_cast %114 : vector<64x128xf32> to vector<8x8x128xf32>
    %116 = arith.mulf %14, %115 : vector<8x8x128xf32>
    %c0_24 = arith.constant 0 : index
    %c0_25 = arith.constant 0 : index
    %117 = vector.load %arg6[%c0_24, %c0_25] : memref<128x8xbf16, #tpu.memory_space<vmem>>, vector<128x8xbf16>
    %c1_i32_26 = arith.constant 1 : i32
    %118 = tpu.dynamic_rotate %16 by %c1_i32_26 dim 1 : vector<8x8x128xf32>, i32 -> vector<8x8x128xf32>
    %cst_27 = arith.constant 0.000000e+00 : f32
    %119 = vector.shape_cast %6 : vector<1x8x128xi1> to vector<1x8x128xi1>
    %120 = vector.broadcast %119 : vector<1x8x128xi1> to vector<8x8x128xi1>
    %121 = vector.broadcast %cst_27 : f32 to vector<8x8x128xf32>
    %122 = arith.select %120, %118, %121 : vector<8x8x128xi1>, vector<8x8x128xf32>
    %c16_i32_28 = arith.constant 16 : i32
    %123 = tpu.dynamic_rotate %122 by %c16_i32_28 dim 2 : vector<8x8x128xf32>, i32 -> vector<8x8x128xf32>
    %124 = vector.extract_strided_slice %3 {offsets = [16, 0], sizes = [1, 128], strides = [1, 1]} : vector<72x128xf32> to vector<1x128xf32>
    %125 = vector.shape_cast %124 : vector<1x128xf32> to vector<128xf32>
    %126 = vector.shape_cast %125 : vector<128xf32> to vector<1x1x128xf32>
    %127 = vector.broadcast %126 : vector<1x1x128xf32> to vector<8x8x128xf32>
    %128 = arith.mulf %123, %127 : vector<8x8x128xf32>
    %129 = vector.extract_strided_slice %3 {offsets = [17, 0], sizes = [1, 128], strides = [1, 1]} : vector<72x128xf32> to vector<1x128xf32>
    %130 = vector.shape_cast %129 : vector<1x128xf32> to vector<128xf32>
    %131 = vector.shape_cast %130 : vector<128xf32> to vector<1x1x128xf32>
    %132 = vector.broadcast %131 : vector<1x1x128xf32> to vector<8x8x128xf32>
    %133 = arith.mulf %122, %132 : vector<8x8x128xf32>
    %134 = arith.addf %128, %133 : vector<8x8x128xf32>
    %c112_i32_29 = arith.constant 112 : i32
    %135 = tpu.dynamic_rotate %122 by %c112_i32_29 dim 2 : vector<8x8x128xf32>, i32 -> vector<8x8x128xf32>
    %136 = vector.extract_strided_slice %3 {offsets = [18, 0], sizes = [1, 128], strides = [1, 1]} : vector<72x128xf32> to vector<1x128xf32>
    %137 = vector.shape_cast %136 : vector<1x128xf32> to vector<128xf32>
    %138 = vector.shape_cast %137 : vector<128xf32> to vector<1x1x128xf32>
    %139 = vector.broadcast %138 : vector<1x1x128xf32> to vector<8x8x128xf32>
    %140 = arith.mulf %135, %139 : vector<8x8x128xf32>
    %141 = arith.addf %134, %140 : vector<8x8x128xf32>
    %c16_i32_30 = arith.constant 16 : i32
    %142 = tpu.dynamic_rotate %16 by %c16_i32_30 dim 2 : vector<8x8x128xf32>, i32 -> vector<8x8x128xf32>
    %143 = vector.extract_strided_slice %3 {offsets = [19, 0], sizes = [1, 128], strides = [1, 1]} : vector<72x128xf32> to vector<1x128xf32>
    %144 = vector.shape_cast %143 : vector<1x128xf32> to vector<128xf32>
    %145 = vector.shape_cast %144 : vector<128xf32> to vector<1x1x128xf32>
    %146 = vector.broadcast %145 : vector<1x1x128xf32> to vector<8x8x128xf32>
    %147 = arith.mulf %142, %146 : vector<8x8x128xf32>
    %148 = arith.addf %141, %147 : vector<8x8x128xf32>
    %149 = vector.extract_strided_slice %3 {offsets = [20, 0], sizes = [1, 128], strides = [1, 1]} : vector<72x128xf32> to vector<1x128xf32>
    %150 = vector.shape_cast %149 : vector<1x128xf32> to vector<128xf32>
    %151 = vector.shape_cast %150 : vector<128xf32> to vector<1x1x128xf32>
    %152 = vector.broadcast %151 : vector<1x1x128xf32> to vector<8x8x128xf32>
    %153 = arith.mulf %16, %152 : vector<8x8x128xf32>
    %154 = arith.addf %148, %153 : vector<8x8x128xf32>
    %c112_i32_31 = arith.constant 112 : i32
    %155 = tpu.dynamic_rotate %16 by %c112_i32_31 dim 2 : vector<8x8x128xf32>, i32 -> vector<8x8x128xf32>
    %156 = vector.extract_strided_slice %3 {offsets = [21, 0], sizes = [1, 128], strides = [1, 1]} : vector<72x128xf32> to vector<1x128xf32>
    %157 = vector.shape_cast %156 : vector<1x128xf32> to vector<128xf32>
    %158 = vector.shape_cast %157 : vector<128xf32> to vector<1x1x128xf32>
    %159 = vector.broadcast %158 : vector<1x1x128xf32> to vector<8x8x128xf32>
    %160 = arith.mulf %155, %159 : vector<8x8x128xf32>
    %161 = arith.addf %154, %160 : vector<8x8x128xf32>
    %c7_i32_32 = arith.constant 7 : i32
    %162 = tpu.dynamic_rotate %16 by %c7_i32_32 dim 1 : vector<8x8x128xf32>, i32 -> vector<8x8x128xf32>
    %cst_33 = arith.constant 0.000000e+00 : f32
    %163 = vector.shape_cast %8 : vector<1x8x128xi1> to vector<1x8x128xi1>
    %164 = vector.broadcast %163 : vector<1x8x128xi1> to vector<8x8x128xi1>
    %165 = vector.broadcast %cst_33 : f32 to vector<8x8x128xf32>
    %166 = arith.select %164, %162, %165 : vector<8x8x128xi1>, vector<8x8x128xf32>
    %c16_i32_34 = arith.constant 16 : i32
    %167 = tpu.dynamic_rotate %166 by %c16_i32_34 dim 2 : vector<8x8x128xf32>, i32 -> vector<8x8x128xf32>
    %168 = vector.extract_strided_slice %3 {offsets = [22, 0], sizes = [1, 128], strides = [1, 1]} : vector<72x128xf32> to vector<1x128xf32>
    %169 = vector.shape_cast %168 : vector<1x128xf32> to vector<128xf32>
    %170 = vector.shape_cast %169 : vector<128xf32> to vector<1x1x128xf32>
    %171 = vector.broadcast %170 : vector<1x1x128xf32> to vector<8x8x128xf32>
    %172 = arith.mulf %167, %171 : vector<8x8x128xf32>
    %173 = arith.addf %161, %172 : vector<8x8x128xf32>
    %174 = vector.extract_strided_slice %3 {offsets = [23, 0], sizes = [1, 128], strides = [1, 1]} : vector<72x128xf32> to vector<1x128xf32>
    %175 = vector.shape_cast %174 : vector<1x128xf32> to vector<128xf32>
    %176 = vector.shape_cast %175 : vector<128xf32> to vector<1x1x128xf32>
    %177 = vector.broadcast %176 : vector<1x1x128xf32> to vector<8x8x128xf32>
    %178 = arith.mulf %166, %177 : vector<8x8x128xf32>
    %179 = arith.addf %173, %178 : vector<8x8x128xf32>
    %c112_i32_35 = arith.constant 112 : i32
    %180 = tpu.dynamic_rotate %166 by %c112_i32_35 dim 2 : vector<8x8x128xf32>, i32 -> vector<8x8x128xf32>
    %181 = vector.extract_strided_slice %3 {offsets = [24, 0], sizes = [1, 128], strides = [1, 1]} : vector<72x128xf32> to vector<1x128xf32>
    %182 = vector.shape_cast %181 : vector<1x128xf32> to vector<128xf32>
    %183 = vector.shape_cast %182 : vector<128xf32> to vector<1x1x128xf32>
    %184 = vector.broadcast %183 : vector<1x1x128xf32> to vector<8x8x128xf32>
    %185 = arith.mulf %180, %184 : vector<8x8x128xf32>
    %186 = arith.addf %179, %185 : vector<8x8x128xf32>
    %187 = vector.extract_strided_slice %3 {offsets = [25, 0], sizes = [1, 128], strides = [1, 1]} : vector<72x128xf32> to vector<1x128xf32>
    %188 = vector.shape_cast %187 : vector<1x128xf32> to vector<128xf32>
    %189 = vector.shape_cast %188 : vector<128xf32> to vector<1x1x128xf32>
    %190 = vector.broadcast %189 : vector<1x1x128xf32> to vector<8x8x128xf32>
    %191 = arith.addf %186, %190 : vector<8x8x128xf32>
    %192 = vector.extract_strided_slice %3 {offsets = [26, 0], sizes = [1, 128], strides = [1, 1]} : vector<72x128xf32> to vector<1x128xf32>
    %193 = vector.shape_cast %192 : vector<1x128xf32> to vector<128xf32>
    %194 = vector.shape_cast %193 : vector<128xf32> to vector<1x1x128xf32>
    %195 = vector.broadcast %194 : vector<1x1x128xf32> to vector<8x8x128xf32>
    %196 = arith.mulf %191, %195 : vector<8x8x128xf32>
    %197 = vector.extract_strided_slice %3 {offsets = [27, 0], sizes = [1, 128], strides = [1, 1]} : vector<72x128xf32> to vector<1x128xf32>
    %198 = vector.shape_cast %197 : vector<1x128xf32> to vector<128xf32>
    %199 = vector.shape_cast %198 : vector<128xf32> to vector<1x1x128xf32>
    %200 = vector.broadcast %199 : vector<1x1x128xf32> to vector<8x8x128xf32>
    %201 = arith.addf %196, %200 : vector<8x8x128xf32>
    %cst_36 = arith.constant 0.000000e+00 : f32
    %202 = vector.broadcast %cst_36 : f32 to vector<8x8x128xf32>
    %203 = arith.maximumf %201, %202 : vector<8x8x128xf32>
    %204 = vector.shape_cast %203 : vector<8x8x128xf32> to vector<64x128xf32>
    %205 = arith.truncf %204 : vector<64x128xf32> to vector<64x128xbf16>
    %cst_37 = arith.constant dense<0.000000e+00> : vector<64x8xf32>
    %206 = tpu.matmul %205, %117, %cst_37 {dimension_numbers = #tpu.dot_dimension_numbers<[1], [0], [0], [1], [0, 0, 1, 1], [], []>} : vector<64x128xbf16>, vector<128x8xbf16>, vector<64x8xf32> -> vector<64x8xf32>
    %207 = arith.negf %206 : vector<64x8xf32>
    %208 = math.exp %207 : vector<64x8xf32>
    %cst_38 = arith.constant 1.000000e+00 : f32
    %209 = vector.broadcast %cst_38 : f32 to vector<64x8xf32>
    %210 = arith.addf %209, %208 : vector<64x8xf32>
    %211 = arith.divf %209, %210 : vector<64x8xf32>
    %cst_39 = arith.constant dense<0.000000e+00> : vector<64x128xf32>
    %212 = tpu.matmul %211, %2, %cst_39 {dimension_numbers = #tpu.dot_dimension_numbers<[1], [0], [0], [1], [0, 0, 1, 1], [], []>} : vector<64x8xf32>, vector<8x128xf32>, vector<64x128xf32> -> vector<64x128xf32>
    %213 = vector.shape_cast %212 : vector<64x128xf32> to vector<8x8x128xf32>
    %214 = arith.mulf %16, %213 : vector<8x8x128xf32>
    %cst_40 = arith.constant dense<0.000000e+00> : vector<8x128xf32>
    %215 = vector.multi_reduction <add>, %116, %cst_40 [1] : vector<8x8x128xf32> to vector<8x128xf32>
    %cst_41 = arith.constant dense<0.000000e+00> : vector<8x128xf32>
    %216 = vector.multi_reduction <add>, %214, %cst_41 [1] : vector<8x8x128xf32> to vector<8x128xf32>
    %217 = tpu.concatenate %215, %216 in 1 : vector<8x128xf32>, vector<8x128xf32> -> vector<8x256xf32>
    %218 = arith.truncf %217 : vector<8x256xf32> to vector<8x256xbf16>
    %c0_42 = arith.constant 0 : index
    %c0_43 = arith.constant 0 : index
    %219 = vector.load %arg7[%c0_42, %c0_43] : memref<256x32xbf16, #tpu.memory_space<vmem>>, vector<256x32xbf16>
    %cst_44 = arith.constant dense<0.000000e+00> : vector<8x32xf32>
    %220 = tpu.matmul %218, %219, %cst_44 {dimension_numbers = #tpu.dot_dimension_numbers<[1], [0], [0], [1], [0, 0, 1, 1], [], []>} : vector<8x256xbf16>, vector<256x32xbf16>, vector<8x32xf32> -> vector<8x32xf32>
    %221 = arith.negf %220 : vector<8x32xf32>
    %222 = math.exp %221 : vector<8x32xf32>
    %cst_45 = arith.constant 1.000000e+00 : f32
    %223 = vector.broadcast %cst_45 : f32 to vector<8x32xf32>
    %224 = arith.addf %223, %222 : vector<8x32xf32>
    %225 = arith.divf %223, %224 : vector<8x32xf32>
    %c0_46 = arith.constant 0 : index
    %c0_47 = arith.constant 0 : index
    %226 = vector.load %arg8[%c0_46, %c0_47] : memref<32x256xf32, #tpu.memory_space<vmem>>, vector<32x256xf32>
    %cst_48 = arith.constant dense<0.000000e+00> : vector<8x256xf32>
    %227 = tpu.matmul %225, %226, %cst_48 {dimension_numbers = #tpu.dot_dimension_numbers<[1], [0], [0], [1], [0, 0, 1, 1], [], []>} : vector<8x32xf32>, vector<32x256xf32>, vector<8x256xf32> -> vector<8x256xf32>
    %228 = vector.extract_strided_slice %227 {offsets = [0, 0], sizes = [8, 128], strides = [1, 1]} : vector<8x256xf32> to vector<8x128xf32>
    %229 = vector.shape_cast %228 : vector<8x128xf32> to vector<8x1x128xf32>
    %230 = vector.broadcast %229 : vector<8x1x128xf32> to vector<8x8x128xf32>
    %231 = arith.mulf %116, %230 : vector<8x8x128xf32>
    %232 = vector.extract_strided_slice %227 {offsets = [0, 128], sizes = [8, 128], strides = [1, 1]} : vector<8x256xf32> to vector<8x128xf32>
    %233 = vector.shape_cast %232 : vector<8x128xf32> to vector<8x1x128xf32>
    %234 = vector.broadcast %233 : vector<8x1x128xf32> to vector<8x8x128xf32>
    %235 = arith.mulf %214, %234 : vector<8x8x128xf32>
    %236 = arith.addf %231, %235 : vector<8x8x128xf32>
    %c1_i32_49 = arith.constant 1 : i32
    %237 = tpu.dynamic_rotate %236 by %c1_i32_49 dim 1 : vector<8x8x128xf32>, i32 -> vector<8x8x128xf32>
    %cst_50 = arith.constant 0.000000e+00 : f32
    %238 = vector.shape_cast %6 : vector<1x8x128xi1> to vector<1x8x128xi1>
    %239 = vector.broadcast %238 : vector<1x8x128xi1> to vector<8x8x128xi1>
    %240 = vector.broadcast %cst_50 : f32 to vector<8x8x128xf32>
    %241 = arith.select %239, %237, %240 : vector<8x8x128xi1>, vector<8x8x128xf32>
    %c16_i32_51 = arith.constant 16 : i32
    %242 = tpu.dynamic_rotate %241 by %c16_i32_51 dim 2 : vector<8x8x128xf32>, i32 -> vector<8x8x128xf32>
    %243 = vector.extract_strided_slice %3 {offsets = [32, 0], sizes = [1, 128], strides = [1, 1]} : vector<72x128xf32> to vector<1x128xf32>
    %244 = vector.shape_cast %243 : vector<1x128xf32> to vector<128xf32>
    %245 = vector.shape_cast %244 : vector<128xf32> to vector<1x1x128xf32>
    %246 = vector.broadcast %245 : vector<1x1x128xf32> to vector<8x8x128xf32>
    %247 = arith.mulf %242, %246 : vector<8x8x128xf32>
    %248 = vector.extract_strided_slice %3 {offsets = [33, 0], sizes = [1, 128], strides = [1, 1]} : vector<72x128xf32> to vector<1x128xf32>
    %249 = vector.shape_cast %248 : vector<1x128xf32> to vector<128xf32>
    %250 = vector.shape_cast %249 : vector<128xf32> to vector<1x1x128xf32>
    %251 = vector.broadcast %250 : vector<1x1x128xf32> to vector<8x8x128xf32>
    %252 = arith.mulf %241, %251 : vector<8x8x128xf32>
    %253 = arith.addf %247, %252 : vector<8x8x128xf32>
    %c112_i32_52 = arith.constant 112 : i32
    %254 = tpu.dynamic_rotate %241 by %c112_i32_52 dim 2 : vector<8x8x128xf32>, i32 -> vector<8x8x128xf32>
    %255 = vector.extract_strided_slice %3 {offsets = [34, 0], sizes = [1, 128], strides = [1, 1]} : vector<72x128xf32> to vector<1x128xf32>
    %256 = vector.shape_cast %255 : vector<1x128xf32> to vector<128xf32>
    %257 = vector.shape_cast %256 : vector<128xf32> to vector<1x1x128xf32>
    %258 = vector.broadcast %257 : vector<1x1x128xf32> to vector<8x8x128xf32>
    %259 = arith.mulf %254, %258 : vector<8x8x128xf32>
    %260 = arith.addf %253, %259 : vector<8x8x128xf32>
    %c16_i32_53 = arith.constant 16 : i32
    %261 = tpu.dynamic_rotate %236 by %c16_i32_53 dim 2 : vector<8x8x128xf32>, i32 -> vector<8x8x128xf32>
    %262 = vector.extract_strided_slice %3 {offsets = [35, 0], sizes = [1, 128], strides = [1, 1]} : vector<72x128xf32> to vector<1x128xf32>
    %263 = vector.shape_cast %262 : vector<1x128xf32> to vector<128xf32>
    %264 = vector.shape_cast %263 : vector<128xf32> to vector<1x1x128xf32>
    %265 = vector.broadcast %264 : vector<1x1x128xf32> to vector<8x8x128xf32>
    %266 = arith.mulf %261, %265 : vector<8x8x128xf32>
    %267 = arith.addf %260, %266 : vector<8x8x128xf32>
    %268 = vector.extract_strided_slice %3 {offsets = [36, 0], sizes = [1, 128], strides = [1, 1]} : vector<72x128xf32> to vector<1x128xf32>
    %269 = vector.shape_cast %268 : vector<1x128xf32> to vector<128xf32>
    %270 = vector.shape_cast %269 : vector<128xf32> to vector<1x1x128xf32>
    %271 = vector.broadcast %270 : vector<1x1x128xf32> to vector<8x8x128xf32>
    %272 = arith.mulf %236, %271 : vector<8x8x128xf32>
    %273 = arith.addf %267, %272 : vector<8x8x128xf32>
    %c112_i32_54 = arith.constant 112 : i32
    %274 = tpu.dynamic_rotate %236 by %c112_i32_54 dim 2 : vector<8x8x128xf32>, i32 -> vector<8x8x128xf32>
    %275 = vector.extract_strided_slice %3 {offsets = [37, 0], sizes = [1, 128], strides = [1, 1]} : vector<72x128xf32> to vector<1x128xf32>
    %276 = vector.shape_cast %275 : vector<1x128xf32> to vector<128xf32>
    %277 = vector.shape_cast %276 : vector<128xf32> to vector<1x1x128xf32>
    %278 = vector.broadcast %277 : vector<1x1x128xf32> to vector<8x8x128xf32>
    %279 = arith.mulf %274, %278 : vector<8x8x128xf32>
    %280 = arith.addf %273, %279 : vector<8x8x128xf32>
    %c7_i32_55 = arith.constant 7 : i32
    %281 = tpu.dynamic_rotate %236 by %c7_i32_55 dim 1 : vector<8x8x128xf32>, i32 -> vector<8x8x128xf32>
    %cst_56 = arith.constant 0.000000e+00 : f32
    %282 = vector.shape_cast %8 : vector<1x8x128xi1> to vector<1x8x128xi1>
    %283 = vector.broadcast %282 : vector<1x8x128xi1> to vector<8x8x128xi1>
    %284 = vector.broadcast %cst_56 : f32 to vector<8x8x128xf32>
    %285 = arith.select %283, %281, %284 : vector<8x8x128xi1>, vector<8x8x128xf32>
    %c16_i32_57 = arith.constant 16 : i32
    %286 = tpu.dynamic_rotate %285 by %c16_i32_57 dim 2 : vector<8x8x128xf32>, i32 -> vector<8x8x128xf32>
    %287 = vector.extract_strided_slice %3 {offsets = [38, 0], sizes = [1, 128], strides = [1, 1]} : vector<72x128xf32> to vector<1x128xf32>
    %288 = vector.shape_cast %287 : vector<1x128xf32> to vector<128xf32>
    %289 = vector.shape_cast %288 : vector<128xf32> to vector<1x1x128xf32>
    %290 = vector.broadcast %289 : vector<1x1x128xf32> to vector<8x8x128xf32>
    %291 = arith.mulf %286, %290 : vector<8x8x128xf32>
    %292 = arith.addf %280, %291 : vector<8x8x128xf32>
    %293 = vector.extract_strided_slice %3 {offsets = [39, 0], sizes = [1, 128], strides = [1, 1]} : vector<72x128xf32> to vector<1x128xf32>
    %294 = vector.shape_cast %293 : vector<1x128xf32> to vector<128xf32>
    %295 = vector.shape_cast %294 : vector<128xf32> to vector<1x1x128xf32>
    %296 = vector.broadcast %295 : vector<1x1x128xf32> to vector<8x8x128xf32>
    %297 = arith.mulf %285, %296 : vector<8x8x128xf32>
    %298 = arith.addf %292, %297 : vector<8x8x128xf32>
    %c112_i32_58 = arith.constant 112 : i32
    %299 = tpu.dynamic_rotate %285 by %c112_i32_58 dim 2 : vector<8x8x128xf32>, i32 -> vector<8x8x128xf32>
    %300 = vector.extract_strided_slice %3 {offsets = [40, 0], sizes = [1, 128], strides = [1, 1]} : vector<72x128xf32> to vector<1x128xf32>
    %301 = vector.shape_cast %300 : vector<1x128xf32> to vector<128xf32>
    %302 = vector.shape_cast %301 : vector<128xf32> to vector<1x1x128xf32>
    %303 = vector.broadcast %302 : vector<1x1x128xf32> to vector<8x8x128xf32>
    %304 = arith.mulf %299, %303 : vector<8x8x128xf32>
    %305 = arith.addf %298, %304 : vector<8x8x128xf32>
    %306 = vector.extract_strided_slice %3 {offsets = [41, 0], sizes = [1, 128], strides = [1, 1]} : vector<72x128xf32> to vector<1x128xf32>
    %307 = vector.shape_cast %306 : vector<1x128xf32> to vector<128xf32>
    %308 = vector.shape_cast %307 : vector<128xf32> to vector<1x1x128xf32>
    %309 = vector.broadcast %308 : vector<1x1x128xf32> to vector<8x8x128xf32>
    %310 = arith.addf %305, %309 : vector<8x8x128xf32>
    %311 = arith.mulf %310, %18 : vector<8x8x128xf32>
    %c1_i32_59 = arith.constant 1 : i32
    %312 = tpu.dynamic_rotate %311 by %c1_i32_59 dim 1 : vector<8x8x128xf32>, i32 -> vector<8x8x128xf32>
    %cst_60 = arith.constant 0.000000e+00 : f32
    %313 = vector.shape_cast %6 : vector<1x8x128xi1> to vector<1x8x128xi1>
    %314 = vector.broadcast %313 : vector<1x8x128xi1> to vector<8x8x128xi1>
    %315 = vector.broadcast %cst_60 : f32 to vector<8x8x128xf32>
    %316 = arith.select %314, %312, %315 : vector<8x8x128xi1>, vector<8x8x128xf32>
    %c16_i32_61 = arith.constant 16 : i32
    %317 = tpu.dynamic_rotate %316 by %c16_i32_61 dim 2 : vector<8x8x128xf32>, i32 -> vector<8x8x128xf32>
    %318 = vector.extract_strided_slice %3 {offsets = [48, 0], sizes = [1, 128], strides = [1, 1]} : vector<72x128xf32> to vector<1x128xf32>
    %319 = vector.shape_cast %318 : vector<1x128xf32> to vector<128xf32>
    %320 = vector.shape_cast %319 : vector<128xf32> to vector<1x1x128xf32>
    %321 = vector.broadcast %320 : vector<1x1x128xf32> to vector<8x8x128xf32>
    %322 = arith.mulf %317, %321 : vector<8x8x128xf32>
    %323 = vector.extract_strided_slice %3 {offsets = [49, 0], sizes = [1, 128], strides = [1, 1]} : vector<72x128xf32> to vector<1x128xf32>
    %324 = vector.shape_cast %323 : vector<1x128xf32> to vector<128xf32>
    %325 = vector.shape_cast %324 : vector<128xf32> to vector<1x1x128xf32>
    %326 = vector.broadcast %325 : vector<1x1x128xf32> to vector<8x8x128xf32>
    %327 = arith.mulf %316, %326 : vector<8x8x128xf32>
    %328 = arith.addf %322, %327 : vector<8x8x128xf32>
    %c112_i32_62 = arith.constant 112 : i32
    %329 = tpu.dynamic_rotate %316 by %c112_i32_62 dim 2 : vector<8x8x128xf32>, i32 -> vector<8x8x128xf32>
    %330 = vector.extract_strided_slice %3 {offsets = [50, 0], sizes = [1, 128], strides = [1, 1]} : vector<72x128xf32> to vector<1x128xf32>
    %331 = vector.shape_cast %330 : vector<1x128xf32> to vector<128xf32>
    %332 = vector.shape_cast %331 : vector<128xf32> to vector<1x1x128xf32>
    %333 = vector.broadcast %332 : vector<1x1x128xf32> to vector<8x8x128xf32>
    %334 = arith.mulf %329, %333 : vector<8x8x128xf32>
    %335 = arith.addf %328, %334 : vector<8x8x128xf32>
    %c16_i32_63 = arith.constant 16 : i32
    %336 = tpu.dynamic_rotate %311 by %c16_i32_63 dim 2 : vector<8x8x128xf32>, i32 -> vector<8x8x128xf32>
    %337 = vector.extract_strided_slice %3 {offsets = [51, 0], sizes = [1, 128], strides = [1, 1]} : vector<72x128xf32> to vector<1x128xf32>
    %338 = vector.shape_cast %337 : vector<1x128xf32> to vector<128xf32>
    %339 = vector.shape_cast %338 : vector<128xf32> to vector<1x1x128xf32>
    %340 = vector.broadcast %339 : vector<1x1x128xf32> to vector<8x8x128xf32>
    %341 = arith.mulf %336, %340 : vector<8x8x128xf32>
    %342 = arith.addf %335, %341 : vector<8x8x128xf32>
    %343 = vector.extract_strided_slice %3 {offsets = [52, 0], sizes = [1, 128], strides = [1, 1]} : vector<72x128xf32> to vector<1x128xf32>
    %344 = vector.shape_cast %343 : vector<1x128xf32> to vector<128xf32>
    %345 = vector.shape_cast %344 : vector<128xf32> to vector<1x1x128xf32>
    %346 = vector.broadcast %345 : vector<1x1x128xf32> to vector<8x8x128xf32>
    %347 = arith.mulf %311, %346 : vector<8x8x128xf32>
    %348 = arith.addf %342, %347 : vector<8x8x128xf32>
    %c112_i32_64 = arith.constant 112 : i32
    %349 = tpu.dynamic_rotate %311 by %c112_i32_64 dim 2 : vector<8x8x128xf32>, i32 -> vector<8x8x128xf32>
    %350 = vector.extract_strided_slice %3 {offsets = [53, 0], sizes = [1, 128], strides = [1, 1]} : vector<72x128xf32> to vector<1x128xf32>
    %351 = vector.shape_cast %350 : vector<1x128xf32> to vector<128xf32>
    %352 = vector.shape_cast %351 : vector<128xf32> to vector<1x1x128xf32>
    %353 = vector.broadcast %352 : vector<1x1x128xf32> to vector<8x8x128xf32>
    %354 = arith.mulf %349, %353 : vector<8x8x128xf32>
    %355 = arith.addf %348, %354 : vector<8x8x128xf32>
    %c7_i32_65 = arith.constant 7 : i32
    %356 = tpu.dynamic_rotate %311 by %c7_i32_65 dim 1 : vector<8x8x128xf32>, i32 -> vector<8x8x128xf32>
    %cst_66 = arith.constant 0.000000e+00 : f32
    %357 = vector.shape_cast %8 : vector<1x8x128xi1> to vector<1x8x128xi1>
    %358 = vector.broadcast %357 : vector<1x8x128xi1> to vector<8x8x128xi1>
    %359 = vector.broadcast %cst_66 : f32 to vector<8x8x128xf32>
    %360 = arith.select %358, %356, %359 : vector<8x8x128xi1>, vector<8x8x128xf32>
    %c16_i32_67 = arith.constant 16 : i32
    %361 = tpu.dynamic_rotate %360 by %c16_i32_67 dim 2 : vector<8x8x128xf32>, i32 -> vector<8x8x128xf32>
    %362 = vector.extract_strided_slice %3 {offsets = [54, 0], sizes = [1, 128], strides = [1, 1]} : vector<72x128xf32> to vector<1x128xf32>
    %363 = vector.shape_cast %362 : vector<1x128xf32> to vector<128xf32>
    %364 = vector.shape_cast %363 : vector<128xf32> to vector<1x1x128xf32>
    %365 = vector.broadcast %364 : vector<1x1x128xf32> to vector<8x8x128xf32>
    %366 = arith.mulf %361, %365 : vector<8x8x128xf32>
    %367 = arith.addf %355, %366 : vector<8x8x128xf32>
    %368 = vector.extract_strided_slice %3 {offsets = [55, 0], sizes = [1, 128], strides = [1, 1]} : vector<72x128xf32> to vector<1x128xf32>
    %369 = vector.shape_cast %368 : vector<1x128xf32> to vector<128xf32>
    %370 = vector.shape_cast %369 : vector<128xf32> to vector<1x1x128xf32>
    %371 = vector.broadcast %370 : vector<1x1x128xf32> to vector<8x8x128xf32>
    %372 = arith.mulf %360, %371 : vector<8x8x128xf32>
    %373 = arith.addf %367, %372 : vector<8x8x128xf32>
    %c112_i32_68 = arith.constant 112 : i32
    %374 = tpu.dynamic_rotate %360 by %c112_i32_68 dim 2 : vector<8x8x128xf32>, i32 -> vector<8x8x128xf32>
    %375 = vector.extract_strided_slice %3 {offsets = [56, 0], sizes = [1, 128], strides = [1, 1]} : vector<72x128xf32> to vector<1x128xf32>
    %376 = vector.shape_cast %375 : vector<1x128xf32> to vector<128xf32>
    %377 = vector.shape_cast %376 : vector<128xf32> to vector<1x1x128xf32>
    %378 = vector.broadcast %377 : vector<1x1x128xf32> to vector<8x8x128xf32>
    %379 = arith.mulf %374, %378 : vector<8x8x128xf32>
    %380 = arith.addf %373, %379 : vector<8x8x128xf32>
    %381 = vector.extract_strided_slice %3 {offsets = [57, 0], sizes = [1, 128], strides = [1, 1]} : vector<72x128xf32> to vector<1x128xf32>
    %382 = vector.shape_cast %381 : vector<1x128xf32> to vector<128xf32>
    %383 = vector.shape_cast %382 : vector<128xf32> to vector<1x1x128xf32>
    %384 = vector.broadcast %383 : vector<1x1x128xf32> to vector<8x8x128xf32>
    %385 = arith.addf %380, %384 : vector<8x8x128xf32>
    %386 = arith.addf %0, %385 : vector<8x8x128xf32>
    %387 = vector.shape_cast %386 : vector<8x8x128xf32> to vector<64x128xf32>
    %388 = arith.truncf %387 : vector<64x128xf32> to vector<64x128xbf16>
    %cst_69 = arith.constant dense<0.000000e+00> : vector<64x8xf32>
    %389 = tpu.matmul %388, %1, %cst_69 {dimension_numbers = #tpu.dot_dimension_numbers<[1], [0], [0], [1], [0, 0, 1, 1], [], []>} : vector<64x128xbf16>, vector<128x8xbf16>, vector<64x8xf32> -> vector<64x8xf32>
    %cst_70 = arith.constant 6.250000e-02 : f32
    %390 = vector.broadcast %cst_70 : f32 to vector<64x8xf32>
    %391 = arith.mulf %389, %390 : vector<64x8xf32>
    %cst_71 = arith.constant dense<0.000000e+00> : vector<64x128xf32>
    %392 = tpu.matmul %391, %2, %cst_71 {dimension_numbers = #tpu.dot_dimension_numbers<[1], [0], [0], [1], [0, 0, 1, 1], [], []>} : vector<64x8xf32>, vector<8x128xf32>, vector<64x128xf32> -> vector<64x128xf32>
    %393 = arith.subf %387, %392 : vector<64x128xf32>
    %394 = arith.mulf %393, %393 : vector<64x128xf32>
    %395 = arith.truncf %394 : vector<64x128xf32> to vector<64x128xbf16>
    %cst_72 = arith.constant dense<0.000000e+00> : vector<64x8xf32>
    %396 = tpu.matmul %395, %1, %cst_72 {dimension_numbers = #tpu.dot_dimension_numbers<[1], [0], [0], [1], [0, 0, 1, 1], [], []>} : vector<64x128xbf16>, vector<128x8xbf16>, vector<64x8xf32> -> vector<64x8xf32>
    %cst_73 = arith.constant 6.250000e-02 : f32
    %397 = vector.broadcast %cst_73 : f32 to vector<64x8xf32>
    %398 = arith.mulf %396, %397 : vector<64x8xf32>
    %cst_74 = arith.constant dense<0.000000e+00> : vector<64x128xf32>
    %399 = tpu.matmul %398, %2, %cst_74 {dimension_numbers = #tpu.dot_dimension_numbers<[1], [0], [0], [1], [0, 0, 1, 1], [], []>} : vector<64x8xf32>, vector<8x128xf32>, vector<64x128xf32> -> vector<64x128xf32>
    %cst_75 = arith.constant 9.99999997E-7 : f32
    %400 = vector.broadcast %cst_75 : f32 to vector<64x128xf32>
    %401 = arith.addf %399, %400 : vector<64x128xf32>
    %402 = math.rsqrt %401 : vector<64x128xf32>
    %403 = arith.mulf %393, %402 : vector<64x128xf32>
    %404 = vector.extract_strided_slice %3 {offsets = [64, 0], sizes = [1, 128], strides = [1, 1]} : vector<72x128xf32> to vector<1x128xf32>
    %405 = vector.shape_cast %404 : vector<1x128xf32> to vector<128xf32>
    %406 = vector.shape_cast %405 : vector<128xf32> to vector<1x128xf32>
    %407 = vector.broadcast %406 : vector<1x128xf32> to vector<64x128xf32>
    %408 = arith.mulf %403, %407 : vector<64x128xf32>
    %409 = vector.extract_strided_slice %3 {offsets = [65, 0], sizes = [1, 128], strides = [1, 1]} : vector<72x128xf32> to vector<1x128xf32>
    %410 = vector.shape_cast %409 : vector<1x128xf32> to vector<128xf32>
    %411 = vector.shape_cast %410 : vector<128xf32> to vector<1x128xf32>
    %412 = vector.broadcast %411 : vector<1x128xf32> to vector<64x128xf32>
    %413 = arith.addf %408, %412 : vector<64x128xf32>
    %414 = vector.shape_cast %413 : vector<64x128xf32> to vector<8x8x128xf32>
    %415 = vector.shape_cast %414 : vector<8x8x128xf32> to vector<64x128xf32>
    %416 = arith.truncf %415 : vector<64x128xf32> to vector<64x128xbf16>
    %c0_76 = arith.constant 0 : index
    %c0_77 = arith.constant 0 : index
    %417 = vector.load %arg9[%c0_76, %c0_77] : memref<128x256xbf16, #tpu.memory_space<vmem>>, vector<128x256xbf16>
    %cst_78 = arith.constant dense<0.000000e+00> : vector<64x256xf32>
    %418 = tpu.matmul %416, %417, %cst_78 {dimension_numbers = #tpu.dot_dimension_numbers<[1], [0], [0], [1], [0, 0, 1, 1], [], []>} : vector<64x128xbf16>, vector<128x256xbf16>, vector<64x256xf32> -> vector<64x256xf32>
    %c0_79 = arith.constant 0 : index
    %c0_80 = arith.constant 0 : index
    %419 = vector.load %arg10[%c0_79, %c0_80] : memref<1x256xf32, #tpu.memory_space<vmem>>, vector<1x256xf32>
    %420 = vector.broadcast %419 : vector<1x256xf32> to vector<64x256xf32>
    %421 = arith.addf %418, %420 : vector<64x256xf32>
    %cst_81 = arith.constant 5.000000e-01 : f32
    %422 = vector.broadcast %cst_81 : f32 to vector<64x256xf32>
    %423 = arith.mulf %422, %421 : vector<64x256xf32>
    %cst_82 = arith.constant 4.471500e-02 : f32
    %424 = vector.broadcast %cst_82 : f32 to vector<64x256xf32>
    %425 = arith.mulf %424, %421 : vector<64x256xf32>
    %426 = arith.mulf %425, %421 : vector<64x256xf32>
    %427 = arith.mulf %426, %421 : vector<64x256xf32>
    %428 = arith.addf %421, %427 : vector<64x256xf32>
    %cst_83 = arith.constant 0.797884583 : f32
    %429 = vector.broadcast %cst_83 : f32 to vector<64x256xf32>
    %430 = arith.mulf %429, %428 : vector<64x256xf32>
    %431 = math.tanh %430 : vector<64x256xf32>
    %cst_84 = arith.constant 1.000000e+00 : f32
    %432 = vector.broadcast %cst_84 : f32 to vector<64x256xf32>
    %433 = arith.addf %432, %431 : vector<64x256xf32>
    %434 = arith.mulf %423, %433 : vector<64x256xf32>
    %435 = arith.truncf %434 : vector<64x256xf32> to vector<64x256xbf16>
    %c0_85 = arith.constant 0 : index
    %c0_86 = arith.constant 0 : index
    %436 = vector.load %arg11[%c0_85, %c0_86] : memref<256x128xbf16, #tpu.memory_space<vmem>>, vector<256x128xbf16>
    %cst_87 = arith.constant dense<0.000000e+00> : vector<64x128xf32>
    %437 = tpu.matmul %435, %436, %cst_87 {dimension_numbers = #tpu.dot_dimension_numbers<[1], [0], [0], [1], [0, 0, 1, 1], [], []>} : vector<64x256xbf16>, vector<256x128xbf16>, vector<64x128xf32> -> vector<64x128xf32>
    %438 = vector.extract_strided_slice %3 {offsets = [68, 0], sizes = [1, 128], strides = [1, 1]} : vector<72x128xf32> to vector<1x128xf32>
    %439 = vector.shape_cast %438 : vector<1x128xf32> to vector<128xf32>
    %440 = vector.shape_cast %439 : vector<128xf32> to vector<1x128xf32>
    %441 = vector.broadcast %440 : vector<1x128xf32> to vector<64x128xf32>
    %442 = arith.addf %437, %441 : vector<64x128xf32>
    %443 = vector.shape_cast %442 : vector<64x128xf32> to vector<8x8x128xf32>
    %444 = arith.addf %414, %443 : vector<8x8x128xf32>
    %445 = vector.shape_cast %444 : vector<8x8x128xf32> to vector<64x128xf32>
    %446 = arith.truncf %445 : vector<64x128xf32> to vector<64x128xbf16>
    %cst_88 = arith.constant dense<0.000000e+00> : vector<64x8xf32>
    %447 = tpu.matmul %446, %1, %cst_88 {dimension_numbers = #tpu.dot_dimension_numbers<[1], [0], [0], [1], [0, 0, 1, 1], [], []>} : vector<64x128xbf16>, vector<128x8xbf16>, vector<64x8xf32> -> vector<64x8xf32>
    %cst_89 = arith.constant 6.250000e-02 : f32
    %448 = vector.broadcast %cst_89 : f32 to vector<64x8xf32>
    %449 = arith.mulf %447, %448 : vector<64x8xf32>
    %cst_90 = arith.constant dense<0.000000e+00> : vector<64x128xf32>
    %450 = tpu.matmul %449, %2, %cst_90 {dimension_numbers = #tpu.dot_dimension_numbers<[1], [0], [0], [1], [0, 0, 1, 1], [], []>} : vector<64x8xf32>, vector<8x128xf32>, vector<64x128xf32> -> vector<64x128xf32>
    %451 = arith.subf %445, %450 : vector<64x128xf32>
    %452 = arith.mulf %451, %451 : vector<64x128xf32>
    %453 = arith.truncf %452 : vector<64x128xf32> to vector<64x128xbf16>
    %cst_91 = arith.constant dense<0.000000e+00> : vector<64x8xf32>
    %454 = tpu.matmul %453, %1, %cst_91 {dimension_numbers = #tpu.dot_dimension_numbers<[1], [0], [0], [1], [0, 0, 1, 1], [], []>} : vector<64x128xbf16>, vector<128x8xbf16>, vector<64x8xf32> -> vector<64x8xf32>
    %cst_92 = arith.constant 6.250000e-02 : f32
    %455 = vector.broadcast %cst_92 : f32 to vector<64x8xf32>
    %456 = arith.mulf %454, %455 : vector<64x8xf32>
    %cst_93 = arith.constant dense<0.000000e+00> : vector<64x128xf32>
    %457 = tpu.matmul %456, %2, %cst_93 {dimension_numbers = #tpu.dot_dimension_numbers<[1], [0], [0], [1], [0, 0, 1, 1], [], []>} : vector<64x8xf32>, vector<8x128xf32>, vector<64x128xf32> -> vector<64x128xf32>
    %cst_94 = arith.constant 9.99999997E-7 : f32
    %458 = vector.broadcast %cst_94 : f32 to vector<64x128xf32>
    %459 = arith.addf %457, %458 : vector<64x128xf32>
    %460 = math.rsqrt %459 : vector<64x128xf32>
    %461 = arith.mulf %451, %460 : vector<64x128xf32>
    %462 = vector.extract_strided_slice %3 {offsets = [66, 0], sizes = [1, 128], strides = [1, 1]} : vector<72x128xf32> to vector<1x128xf32>
    %463 = vector.shape_cast %462 : vector<1x128xf32> to vector<128xf32>
    %464 = vector.shape_cast %463 : vector<128xf32> to vector<1x128xf32>
    %465 = vector.broadcast %464 : vector<1x128xf32> to vector<64x128xf32>
    %466 = arith.mulf %461, %465 : vector<64x128xf32>
    %467 = vector.extract_strided_slice %3 {offsets = [67, 0], sizes = [1, 128], strides = [1, 1]} : vector<72x128xf32> to vector<1x128xf32>
    %468 = vector.shape_cast %467 : vector<1x128xf32> to vector<128xf32>
    %469 = vector.shape_cast %468 : vector<128xf32> to vector<1x128xf32>
    %470 = vector.broadcast %469 : vector<1x128xf32> to vector<64x128xf32>
    %471 = arith.addf %466, %470 : vector<64x128xf32>
    %472 = vector.shape_cast %471 : vector<64x128xf32> to vector<8x8x128xf32>
    %c0_95 = arith.constant 0 : index
    %c0_96 = arith.constant 0 : index
    %c0_97 = arith.constant 0 : index
    %473 = vector.load %arg13[%c0_95, %c0_96, %c0_97] : memref<8x8x128xf32, #tpu.memory_space<vmem>>, vector<8x8x128xf32>
    tpu.vector_store %arg13[%c0_95, %c0_96, %c0_97], %472 {strides = array<i32>} : memref<8x8x128xf32, #tpu.memory_space<vmem>>, vector<8x8x128xf32>,
    return
  }
  func.func @transform_0(%arg0: i32) -> (i32, i32, i32) {
    %c0_i32 = arith.constant 0 : i32
    %c0_i32_0 = arith.constant 0 : i32
    %c0_i32_1 = arith.constant 0 : i32
    return %arg0, %c0_i32, %c0_i32_0 : i32, i32, i32
  }
  func.func @transform_1(%arg0: i32) -> (i32, i32) {
    %c0_i32 = arith.constant 0 : i32
    %c0_i32_0 = arith.constant 0 : i32
    %c0_i32_1 = arith.constant 0 : i32
    return %c0_i32, %c0_i32_0 : i32, i32
  }
  func.func @transform_2(%arg0: i32) -> (i32, i32) {
    %c0_i32 = arith.constant 0 : i32
    %c0_i32_0 = arith.constant 0 : i32
    %c0_i32_1 = arith.constant 0 : i32
    return %c0_i32, %c0_i32_0 : i32, i32
  }
  func.func @transform_3(%arg0: i32) -> (i32, i32) {
    %c0_i32 = arith.constant 0 : i32
    %c0_i32_0 = arith.constant 0 : i32
    %c0_i32_1 = arith.constant 0 : i32
    return %c0_i32, %c0_i32_0 : i32, i32
  }
  func.func @transform_4(%arg0: i32) -> (i32, i32) {
    %c0_i32 = arith.constant 0 : i32
    %c0_i32_0 = arith.constant 0 : i32
    %c0_i32_1 = arith.constant 0 : i32
    return %c0_i32, %c0_i32_0 : i32, i32
  }
  func.func @transform_5(%arg0: i32) -> (i32, i32) {
    %c0_i32 = arith.constant 0 : i32
    %c0_i32_0 = arith.constant 0 : i32
    %c0_i32_1 = arith.constant 0 : i32
    return %c0_i32, %c0_i32_0 : i32, i32
  }
  func.func @transform_6(%arg0: i32) -> (i32, i32) {
    %c0_i32 = arith.constant 0 : i32
    %c0_i32_0 = arith.constant 0 : i32
    %c0_i32_1 = arith.constant 0 : i32
    return %c0_i32, %c0_i32_0 : i32, i32
  }
  func.func @transform_7(%arg0: i32) -> (i32, i32) {
    %c0_i32 = arith.constant 0 : i32
    %c0_i32_0 = arith.constant 0 : i32
    %c0_i32_1 = arith.constant 0 : i32
    return %c0_i32, %c0_i32_0 : i32, i32
  }
  func.func @transform_8(%arg0: i32) -> (i32, i32) {
    %c0_i32 = arith.constant 0 : i32
    %c0_i32_0 = arith.constant 0 : i32
    %c0_i32_1 = arith.constant 0 : i32
    return %c0_i32, %c0_i32_0 : i32, i32
  }
  func.func @transform_9(%arg0: i32) -> (i32, i32) {
    %c0_i32 = arith.constant 0 : i32
    %c0_i32_0 = arith.constant 0 : i32
    %c0_i32_1 = arith.constant 0 : i32
    return %c0_i32, %c0_i32_0 : i32, i32
  }
  func.func @transform_10(%arg0: i32) -> (i32, i32) {
    %c0_i32 = arith.constant 0 : i32
    %c0_i32_0 = arith.constant 0 : i32
    %c0_i32_1 = arith.constant 0 : i32
    return %c0_i32, %c0_i32_0 : i32, i32
  }
  func.func @transform_11(%arg0: i32) -> (i32, i32) {
    %c0_i32 = arith.constant 0 : i32
    %c0_i32_0 = arith.constant 0 : i32
    %c0_i32_1 = arith.constant 0 : i32
    return %c0_i32, %c0_i32_0 : i32, i32
  }
  func.func @transform_12(%arg0: i32) -> (i32, i32, i32) {
    %c0_i32 = arith.constant 0 : i32
    %c0_i32_0 = arith.constant 0 : i32
    %c0_i32_1 = arith.constant 0 : i32
    return %arg0, %c0_i32, %c0_i32_0 : i32, i32, i32
  }
}

</mosaic_0001>

<bundles_post_ra>
// kernel: transformer_encoder_layer.1
= control target key start
LH: loop header
LB: loop body
LE: loop exit
PB: predicated region body
PF: predicated region fallthrough
CT: control target
= control target key end

     0   :  { %v8188_v1 = vmov 0   ;;  %v76_v29 = vlaneseq  ;;  %s5373_s15 = smov 16   ;;  %s5374_s16 = smov 112   ;;  %vm911_vm2 = vcmask 64512   ;;  %vm1815_vm3 = vcmask 1041409   ;;  %s8175_s1 = inlined_call_operand.vmem [shape: bf16[128,384], index: 1, kind: input, shape index: {}]   ;;  %s8176_s0 = inlined_call_operand.vmem [shape: f32[8,8,128], index: 0, kind: input, shape index: {}]   ;;  %s8177_s4 = inlined_call_operand.vmem [shape: bf16[128,8], index: 4, kind: input, shape index: {}]   ;;  %s8178_s11 = inlined_call_operand.vmem [shape: f32[72,128], index: 11, kind: input, shape index: {}]   ;;  %s8179_s3 = inlined_call_operand.vmem [shape: f32[8,128], index: 3, kind: input, shape index: {}]   ;;  %s8180_s5 = inlined_call_operand.vmem [shape: bf16[128,8], index: 5, kind: input, shape index: {}]   ;;  %s8181_s6 = inlined_call_operand.vmem [shape: bf16[256,32], index: 6, kind: input, shape index: {}]   ;;  %s8182_s7 = inlined_call_operand.vmem [shape: f32[32,256], index: 7, kind: input, shape index: {}]   ;;  %s8183_s2 = inlined_call_operand.vmem [shape: bf16[128,8], index: 2, kind: input, shape index: {}]   ;;  %s8184_s8 = inlined_call_operand.vmem [shape: bf16[128,256], index: 8, kind: input, shape index: {}]   ;;  %s8185_s10 = inlined_call_operand.vmem [shape: bf16[256,128], index: 10, kind: input, shape index: {}]   ;;  %s8186_s9 = inlined_call_operand.vmem [shape: f32[1,256], index: 9, kind: input, shape index: {}]   ;;  %s8187_s12 = inlined_call_operand.vmem [shape: f32[8,8,128], index: 12, kind: output, shape index: {}]  }
   0x1   :  { %v5108_v0 = vld [vmem:[%s8175_s1 + $0xac] ss:$12 sps:$4 sm:$0xff]   ;;  %276 = vmatprep.mubr.bf16.mxu0 %v8188_v1  ;;  %v5110_v2 = vld [vmem:[%s8175_s1 + $0xa8] ss:$12 sps:$4 sm:$0xff]   ;;  %v5113_v4 = vld [vmem:[%s8175_s1 + $0x90] ss:$12 sps:$4 sm:$0xff]  }
   0x2   :  { %244 = vmatprep.subr.bf16.mxu0 %v5108_v0  ;;  %v5111_v3 = vld [vmem:[%s8175_s1 + $0x94] ss:$12 sps:$4 sm:$0xff]   ;;  %v5114_v5 = vld [vmem:[%s8175_s1 + $0x7c] ss:$12 sps:$4 sm:$0xff]   ;;  %v5116_v6 = vld [vmem:[%s8175_s1 + $0x78] ss:$12 sps:$4 sm:$0xff]  }
   0x3   :  { %245 = vmatpush1.bf16.msra.mxu0 %v5110_v2  ;;  %v5117_v7 = vld [vmem:[%s8175_s1 + $0x64] ss:$12 sps:$4 sm:$0xff]   ;;  %v5119_v9 = vld [vmem:[%s8175_s1 + $0x60] ss:$12 sps:$4 sm:$0xff]   ;;  %v5122_v13 = vld [vmem:[%s8175_s1 + $0x48] ss:$12 sps:$4 sm:$0xff]  }
   0x4   :  { %246 = vmatprep.subr.bf16.mxu0 %v5111_v3  ;;  %v42_v8 = vld [vmem:[%s8176_s0] sm:$0xff]  ;;  %v43_v10 = vld [vmem:[%s8176_s0 + $0x8] sm:$0xff]  ;;  %v5125_v15 = vld [vmem:[%s8175_s1 + $0x30] ss:$12 sps:$4 sm:$0xff]   ;;  %v5533_v32 = vshrl.u32 %v76_v29, 7  ;;  %vm1817_vm4 = vcmask 1042434  }
   0x5   :  { %v5120_v11 = vld [vmem:[%s8175_s1 + $0x4c] ss:$12 sps:$4 sm:$0xff]   ;;  %v80_v12 = vpack.c.bf16 %v43_v10, %v42_v8  ;;  %v5123_v14 = vld [vmem:[%s8175_s1 + $0x34] ss:$12 sps:$4 sm:$0xff]   ;;  %v5126_v16 = vld [vmem:[%s8175_s1 + $0x1c] ss:$12 sps:$4 sm:$0xff]  }
   0x6   :  { %v5128_v17 = vld [vmem:[%s8175_s1 + $0x18] ss:$12 sps:$4 sm:$0xff]   ;;  %v5131_v19 = vld [vmem:[%s8175_s1] ss:$12 sps:$4 sm:$0xff]   ;;  %v44_v20 = vld [vmem:[%s8176_s0 + $0x10] sm:$0xff]  ;;  %8258 = vst [vmem:[#allocation6_spill] sm:$0xff] %v5533_v32 }
   0x7   :  { %247 = vmatpush1.bf16.msra.mxu0 %v5113_v4  ;;  %4865 = vmatprep.mubr.bf16.mxu1 %v80_v12  ;;  %v5129_v18 = vld [vmem:[%s8175_s1 + $0x4] ss:$12 sps:$4 sm:$0xff]   ;;  %v45_v21 = vld [vmem:[%s8176_s0 + $0x18] sm:$0xff]  ;;  %v47_v24 = vld [vmem:[%s8176_s0 + $0x28] sm:$0xff]  ;;  %vm78_vm0 = vcmp.ge.s32.totalorder %v5533_v32, 1  ;;  %vm79_vm1 = vcmp.lt.s32.totalorder %v5533_v32, 7 }
   0x8   :  { %248 = vmatprep.subr.bf16.mxu0 %v5114_v5  ;;  %v5504_v22 = vpack.c.bf16 %v45_v21, %v44_v20  ;;  %v46_v23 = vld [vmem:[%s8176_s0 + $0x20] sm:$0xff]  ;;  %v48_v26 = vld [vmem:[%s8176_s0 + $0x30] sm:$0xff]  ;;  %v49_v27 = vld [vmem:[%s8176_s0 + $0x38] sm:$0xff]  ;;  %vm1819_vm5 = vcmask 1043459   ;;  %vm1821_vm6 = vcmask 1044484   ;;  %vm1823_vm7 = vcmask 1045509  }
   0x9   :  { %v5514_v25 = vpack.c.bf16 %v47_v24, %v46_v23  ;;  %v5524_v28 = vpack.c.bf16 %v49_v27, %v48_v26  ;;  %v5132_v46 = vld [vmem:[%s8177_s4 + $0x38] sm:$0xff]   ;;  %v5133_v48 = vld [vmem:[%s8177_s4 + $0x30] sm:$0xff]   ;;  %v5134_v50 = vld [vmem:[%s8177_s4 + $0x28] sm:$0xff]   ;;  %vm1825_vm8 = vcmask 1046534   ;;  %vm1827_vm9 = vcmask 1047559  }
   0xa   :  { %v5135_v52 = vld [vmem:[%s8177_s4 + $0x20] sm:$0xff]   ;;  %v5136_v55 = vld [vmem:[%s8177_s4 + $0x18] sm:$0xff]   ;;  %v5137_v58 = vld [vmem:[%s8177_s4 + $0x10] sm:$0xff]   ;;  %vm2030_vm10 = vcmask 261120  }
   0xb   :  { %249 = vmatpush1.bf16.msra.mxu0 %v5116_v6  ;;  %8254 = vst [vmem:[#allocation2_spill] sm:$0xff] %v5514_v25  ;;  %8255 = vst [vmem:[#allocation3_spill] sm:$0xff] %v5524_v28  ;;  %v5138_v62 = vld [vmem:[%s8177_s4 + $0x8] sm:$0xff]   ;;  %v5139_v0 = vld [vmem:[%s8177_s4] sm:$0xff]  }
   0xc   :  { %250 = vmatprep.subr.bf16.mxu0 %v5117_v7 }
   0xf   :  { %251 = vmatpush1.bf16.msra.mxu0 %v5119_v9 }
  0x10   :  { %252 = vmatprep.subr.bf16.mxu0 %v5120_v11 }
  0x13   :  { %253 = vmatpush1.bf16.msra.mxu0 %v5122_v13 }
  0x14   :  { %254 = vmatprep.subr.bf16.mxu0 %v5123_v14 }
  0x17   :  { %255 = vmatpush1.bf16.msra.mxu0 %v5125_v15 }
  0x18   :  { %256 = vmatprep.subr.bf16.mxu0 %v5126_v16 }
  0x1b   :  { %257 = vmatpush1.bf16.msra.mxu0 %v5128_v17 }
  0x1c   :  { %258 = vmatprep.subr.bf16.mxu0 %v5129_v18 }
  0x1f   :  { %259 = vmatpush1.bf16.msra.mxu0 %v5131_v19 }
  0x20   :  { %4873 = vmatprep.subr.bf16.mxu0 %v5132_v46 }
  0x22   :  { %277 = vmatmul.mubr.bf16.vlgmr.msra.gmra.mxu0 %v80_v12 }
  0x23   :  { %286 = vmatprep.mubr.bf16.mxu0 %v8188_v1  ;;  %4874 = vmatpush3.bf16.msra.mxu0 %v5132_v46 }
  0x24   :  { %4875 = vmatprep.subr.bf16.mxu0 %v5133_v48 }
  0x27   :  { %4876 = vmatpush3.bf16.msra.mxu0 %v5133_v48  ;;  %v5801_v48 = vsub.s32 0, %v5533_v32 }
  0x28   :  { %4877 = vmatprep.subr.bf16.mxu0 %v5134_v50 }
  0x29   :  { %8275 = vst [vmem:[#allocation23_spill] sm:$0xff] %v5801_v48 }
  0x2a   :  { %287 = vmatmul.mubr.bf16.gmra.mxu0 %v5504_v22 }
  0x2b   :  { %296 = vmatprep.mubr.bf16.mxu0 %v8188_v1  ;;  %4878 = vmatpush3.bf16.msra.mxu0 %v5134_v50  ;;  %v5808_v50 = vsub.s32 1, %v5533_v32 }
  0x2c   :  { %4879 = vmatprep.subr.bf16.mxu0 %v5135_v52 }
  0x2d   :  { %8276 = vst [vmem:[#allocation24_spill] sm:$0xff] %v5808_v50 }
  0x2f   :  { %4880 = vmatpush3.bf16.msra.mxu0 %v5135_v52 }
  0x30   :  { %4881 = vmatprep.subr.bf16.mxu0 %v5136_v55 }
  0x32   :  { %297 = vmatmul.mubr.bf16.gmra.mxu0 %v5514_v25 }
  0x33   :  { %306 = vmatprep.mubr.bf16.mxu0 %v8188_v1  ;;  %4882 = vmatpush3.bf16.msra.mxu0 %v5136_v55 }
  0x34   :  { %4883 = vmatprep.subr.bf16.mxu0 %v5137_v58 }
  0x37   :  { %4884 = vmatpush3.bf16.msra.mxu0 %v5137_v58 }
  0x38   :  { %4885 = vmatprep.subr.bf16.mxu0 %v5138_v62 }
  0x3a   :  { %307 = vmatmul.mubr.bf16.gmra.mxu0 %v5524_v28 }
  0x3b   :  { %4886 = vmatpush3.bf16.msra.mxu0 %v5138_v62  ;;  %v5824_v62 = vsub.s32 2, %v5533_v32 }
  0x3c   :  { %4887 = vmatprep.subr.bf16.mxu0 %v5139_v0 }
  0x3d   :  { %8278 = vst [vmem:[#allocation26_spill] sm:$0xff] %v5824_v62 }
  0x3f   :  { %4888 = vmatpush3.bf16.msra.mxu0 %v5139_v0 }
  0xe2   :  { %v5527_v30 = vpop.f32.mrf.mxu0 }
  0xe3   :  { %8256 = vst [vmem:[#allocation4_spill] sm:$0xff] %v5527_v30  ;;  %500 = vrot.lane.b32.xlu0 %v5527_v30, %s5373_s15  ;;  %v398_v34 = vrot.slane %v5527_v30, 7  ;;  %v592_v38 = vrot.slane %v5527_v30, 1 }
  0xe4   :  { %v5531_v31 = vpop.f32.mrf.mxu0 }
  0xe5   :  { %8257 = vst [vmem:[#allocation5_spill] sm:$0xff] %v5531_v31  ;;  %v5545_v35 = vsel %vm78_vm0, %v398_v34, 0.0  ;;  %v5569_v42 = vsel %vm79_vm1, %v592_v38, 0.0  ;;  %v1065_v24 = vrot.slane %v5531_v31, 7 }
  0xe6   :  { %v5535_v33 = vpop.f32.mrf.mxu0 }
  0xe7   :  { %8259 = vst [vmem:[#allocation7_spill] sm:$0xff] %v5535_v33  ;;  %556 = vrot.lane.b32.xlu0 %v5527_v30, %s5374_s16  ;;  %502 = vrot.lane.b32.xlu1 %v5535_v33, %s5373_s15  ;;  %v399_v36 = vrot.slane %v5535_v33, 7  ;;  %v593_v39 = vrot.slane %v5535_v33, 1  ;;  %v5762_v26 = vsel %vm78_vm0, %v1065_v24, 0.0 }
  0xe8   :  { %v5563_v40 = vpop.f32.mrf.mxu0  ;;  %8271 = vst [vmem:[#allocation19_spill] sm:$0xff] %v5762_v26 }
  0xe9   :  { %v5554_v37 = vsel %vm78_vm0, %v399_v36, 0.0  ;;  %8260 = vst [vmem:[#allocation8_spill] sm:$0xff] %v5563_v40  ;;  %v5573_v43 = vsel %vm79_vm1, %v593_v39, 0.0  ;;  %v1066_v29 = vrot.slane %v5563_v40, 7  ;;  %v1258_v25 = vrot.slane %v5563_v40, 1 }
  0xea   :  { %v5565_v41 = vpop.f32.mrf.mxu0 }
  0xeb   :  { %416 = vrot.lane.b32.xlu0 %v5545_v35, %s5373_s15  ;;  %558 = vrot.lane.b32.xlu1 %v5535_v33, %s5374_s16  ;;  %8261 = vst [vmem:[#allocation9_spill] sm:$0xff] %v5565_v41  ;;  %v400_v44 = vrot.slane %v5565_v41, 7  ;;  %v594_v54 = vrot.slane %v5565_v41, 1  ;;  %v5776_v36 = vsel %vm78_vm0, %v1066_v29, 0.0  ;;  %v5860_v29 = vsub.s32 5, %v5533_v32 }
  0xec   :  { %v5591_v47 = vpop.f32.mrf.mxu0  ;;  %8273 = vst [vmem:[#allocation21_spill] sm:$0xff] %v5776_v36 }
  0xed   :  { %v5586_v45 = vsel %vm78_vm0, %v400_v44, 0.0  ;;  %8262 = vst [vmem:[#allocation10_spill] sm:$0xff] %v5591_v47  ;;  %v5631_v56 = vsel %vm79_vm1, %v594_v54, 0.0  ;;  %v1067_v27 = vrot.slane %v5591_v47, 7  ;;  %8282 = vst [vmem:[#allocation30_spill] sm:$0xff] %v5860_v29 }
  0xee   :  { %v5600_v49 = vpop.f32.mrf.mxu0 }
  0xef   :  { %464 = vrot.lane.b32.xlu0 %v5545_v35, %s5374_s16  ;;  %466 = vrot.lane.b32.xlu1 %v5554_v37, %s5374_s16  ;;  %8263 = vst [vmem:[#allocation11_spill] sm:$0xff] %v5600_v49  ;;  %v401_v51 = vrot.slane %v5600_v49, 7  ;;  %v595_v57 = vrot.slane %v5600_v49, 1  ;;  %v5772_v34 = vsel %vm78_vm0, %v1067_v27, 0.0 }
  0xf0   :  { %v5641_v59 = vpop.f32.mrf.mxu0  ;;  %8272 = vst [vmem:[#allocation20_spill] sm:$0xff] %v5772_v34 }
  0xf1   :  { %v5619_v53 = vsel %vm78_vm0, %v401_v51, 0.0  ;;  %8264 = vst [vmem:[#allocation12_spill] sm:$0xff] %v5641_v59  ;;  %v5647_v61 = vsel %vm79_vm1, %v595_v57, 0.0  ;;  %v1068_v38 = vrot.slane %v5641_v59, 7  ;;  %v67_v51 = vld [vmem:[%s8178_s11] sm:$0xff] }
  0xf2   :  { %v5643_v60 = vpop.f32.mrf.mxu0  ;;  %v5820_v57 = vrot.slane %v67_v51, %v5801_v48  ;;  %v5831_v0 = vrot.slane %v67_v51, %v5808_v50 }
  0xf3   :  { %610 = vrot.lane.b32.xlu0 %v5569_v42, %s5373_s15  ;;  %612 = vrot.lane.b32.xlu1 %v5573_v43, %s5373_s15  ;;  %8265 = vst [vmem:[#allocation13_spill] sm:$0xff] %v5643_v60  ;;  %v402_v3 = vrot.slane %v5643_v60, 7  ;;  %v596_v7 = vrot.slane %v5643_v60, 1  ;;  %v5785_v39 = vsel %vm78_vm0, %v1068_v38, 0.0 }
  0xf4   :  { %v5656_v63 = vpop.f32.mrf.mxu0  ;;  %8274 = vst [vmem:[#allocation22_spill] sm:$0xff] %v5785_v39  ;;  %v448_v24 = vmul.f32 %v5831_v0, %v5545_v35  ;;  %v5871_v35 = vsub.s32 6, %v5533_v32 }
  0xf5   :  { %8266 = vst [vmem:[#allocation14_spill] sm:$0xff] %v5656_v63  ;;  %v5674_v4 = vsel %vm78_vm0, %v402_v3, 0.0  ;;  %v5696_v10 = vsel %vm79_vm1, %v596_v7, 0.0  ;;  %v1069_v46 = vrot.slane %v5656_v63, 7  ;;  %v5834_v3 = vsub.s32 3, %v5533_v32 }
  0xf6   :  { %v5665_v2 = vpop.f32.mrf.mxu0  ;;  %8284 = vst [vmem:[#allocation32_spill] sm:$0xff] %v5871_v35  ;;  %v5887_v28 = vrot.slane %v67_v51, %v5871_v35 }
  0xf7   :  { %666 = vrot.lane.b32.xlu0 %v5569_v42, %s5374_s16  ;;  %668 = vrot.lane.b32.xlu1 %v5573_v43, %s5374_s16  ;;  %8267 = vst [vmem:[#allocation15_spill] sm:$0xff] %v5665_v2  ;;  %v403_v5 = vrot.slane %v5665_v2, 7  ;;  %v597_v11 = vrot.slane %v5665_v2, 1  ;;  %v5817_v55 = vsel %vm78_vm0, %v1069_v46, 0.0  ;;  %8279 = vst [vmem:[#allocation27_spill] sm:$0xff] %v5834_v3  ;;  %v5857_v27 = vrot.slane %v67_v51, %v5834_v3 }
  0xf8   :  { %v5690_v8 = vpop.f32.mrf.mxu0  ;;  %8277 = vst [vmem:[#allocation25_spill] sm:$0xff] %v5817_v55 }
  0xf9   :  { %v5683_v6 = vsel %vm78_vm0, %v403_v5, 0.0  ;;  %8268 = vst [vmem:[#allocation16_spill] sm:$0xff] %v5690_v8  ;;  %v5707_v13 = vsel %vm79_vm1, %v597_v11, 0.0  ;;  %v1070_v58 = vrot.slane %v5690_v8, 7  ;;  %v5839_v11 = vsub.s32 4, %v5533_v32 }
  0xfa   :  { %v5692_v9 = vpop.f32.mrf.mxu0 }
  0xfb   :  { %418 = vrot.lane.b32.xlu0 %v5554_v37, %s5373_s15  ;;  %420 = vrot.lane.b32.xlu1 %v5586_v45, %s5373_s15  ;;  %8269 = vst [vmem:[#allocation17_spill] sm:$0xff] %v5692_v9  ;;  %v404_v15 = vrot.slane %v5692_v9, 7  ;;  %v598_v19 = vrot.slane %v5692_v9, 1  ;;  %8280 = vst [vmem:[#allocation28_spill] sm:$0xff] %v5839_v11 }
  0xfc   :  { %v5703_v12 = vpop.f32.mrf.mxu0 }
  0xfd   :  { %v5722_v16 = vsel %vm78_vm0, %v404_v15, 0.0  ;;  %v5744_v20 = vsel %vm79_vm1, %v598_v19, 0.0  ;;  %v5847_v19 = vrot.slane %v67_v51, %v5824_v62 }
  0xfe   :  { %v5713_v14 = vpop.f32.mrf.mxu0 }
  0xff   :  { %504 = vrot.lane.b32.xlu0 %v5565_v41, %s5373_s15  ;;  %506 = vrot.lane.b32.xlu1 %v5600_v49, %s5373_s15  ;;  %8270 = vst [vmem:[#allocation18_spill] sm:$0xff] %v5713_v14  ;;  %v405_v17 = vrot.slane %v5713_v14, 7  ;;  %v599_v21 = vrot.slane %v5713_v14, 1 }
 0x101   :  { %v5731_v18 = vsel %vm78_vm0, %v405_v17, 0.0  ;;  %v5753_v23 = vsel %vm79_vm1, %v599_v21, 0.0  ;;  %v5844_v17 = vsel %vm78_vm0, %v1070_v58, 0.0  ;;  %v1071_v21 = vrot.slane %v5703_v12, 7 }
 0x102   :  { %8281 = vst [vmem:[#allocation29_spill] sm:$0xff] %v5844_v17  ;;  %v5863_v58 = vrot.slane %v67_v51, %v5839_v11 }
 0x103   :  { %560 = vrot.lane.b32.xlu0 %v5565_v41, %s5374_s16  ;;  %562 = vrot.lane.b32.xlu1 %v5600_v49, %s5374_s16 }
 0x104   :  { %v540_v11 = vmul.f32 %v5863_v58, %v5527_v30 }
 0x107   :  { %468 = vrot.lane.b32.xlu0 %v5586_v45, %s5374_s16  ;;  %422 = vrot.lane.b32.xlu1 %v5619_v53, %s5373_s15 }
 0x10b   :  { %614 = vrot.lane.b32.xlu0 %v5631_v56, %s5373_s15  ;;  %470 = vrot.lane.b32.xlu1 %v5619_v53, %s5374_s16 }
 0x10f   :  { %670 = vrot.lane.b32.xlu0 %v5631_v56, %s5374_s16  ;;  %616 = vrot.lane.b32.xlu1 %v5647_v61, %s5373_s15 }
 0x113   :  { %672 = vrot.lane.b32.xlu1 %v5647_v61, %s5374_s16  ;;  %508 = vrot.lane.b32.xlu0 %v5643_v60, %s5373_s15 }
 0x117   :  { %564 = vrot.lane.b32.xlu0 %v5643_v60, %s5374_s16  ;;  %510 = vrot.lane.b32.xlu1 %v5665_v2, %s5373_s15 }
 0x11b   :  { %424 = vrot.lane.b32.xlu0 %v5674_v4, %s5373_s15  ;;  %566 = vrot.lane.b32.xlu1 %v5665_v2, %s5374_s16 }
 0x11f   :  { %472 = vrot.lane.b32.xlu0 %v5674_v4, %s5374_s16  ;;  %426 = vrot.lane.b32.xlu1 %v5683_v6, %s5373_s15 }
 0x123   :  { %618 = vrot.lane.b32.xlu0 %v5696_v10, %s5373_s15  ;;  %474 = vrot.lane.b32.xlu1 %v5683_v6, %s5374_s16 }
 0x127   :  { %620 = vrot.lane.b32.xlu1 %v5707_v13, %s5373_s15  ;;  %512 = vrot.lane.b32.xlu0 %v5692_v9, %s5373_s15 }
 0x12b   :  { %568 = vrot.lane.b32.xlu0 %v5692_v9, %s5374_s16  ;;  %514 = vrot.lane.b32.xlu1 %v5713_v14, %s5373_s15 }
 0x12f   :  { %428 = vrot.lane.b32.xlu0 %v5722_v16, %s5373_s15  ;;  %570 = vrot.lane.b32.xlu1 %v5713_v14, %s5374_s16 }
 0x133   :  { %476 = vrot.lane.b32.xlu0 %v5722_v16, %s5374_s16  ;;  %430 = vrot.lane.b32.xlu1 %v5731_v18, %s5373_s15 }
 0x137   :  { %674 = vrot.lane.b32.xlu0 %v5696_v10, %s5374_s16  ;;  %478 = vrot.lane.b32.xlu1 %v5731_v18, %s5374_s16 }
 0x13b   :  { %622 = vrot.lane.b32.xlu0 %v5744_v20, %s5373_s15  ;;  %676 = vrot.lane.b32.xlu1 %v5707_v13, %s5374_s16 }
 0x13f   :  { %678 = vrot.lane.b32.xlu0 %v5744_v20, %s5374_s16  ;;  %624 = vrot.lane.b32.xlu1 %v5753_v23, %s5373_s15 }
 0x143   :  { %1081 = vrot.lane.b32.xlu0 %v5762_v26, %s5373_s15  ;;  %680 = vrot.lane.b32.xlu1 %v5753_v23, %s5374_s16 }
 0x147   :  { %1085 = vrot.lane.b32.xlu0 %v5772_v34, %s5373_s15  ;;  %1083 = vrot.lane.b32.xlu1 %v5776_v36, %s5373_s15 }
 0x14b   :  { %1129 = vrot.lane.b32.xlu0 %v5762_v26, %s5374_s16  ;;  %1087 = vrot.lane.b32.xlu1 %v5785_v39, %s5373_s15 }
 0x14f   :  { %1133 = vrot.lane.b32.xlu0 %v5772_v34, %s5374_s16  ;;  %1131 = vrot.lane.b32.xlu1 %v5776_v36, %s5374_s16  ;;  %v5878_v34 = vsub.s32 7, %v5533_v32 }
 0x151   :  { %8285 = vst [vmem:[#allocation33_spill] sm:$0xff] %v5878_v34 }
 0x153   :  { %1165 = vrot.lane.b32.xlu0 %v5531_v31, %s5373_s15  ;;  %1135 = vrot.lane.b32.xlu1 %v5785_v39, %s5374_s16  ;;  %v5868_v39 = vsel %vm78_vm0, %v1071_v21, 0.0 }
 0x154   :  { %8283 = vst [vmem:[#allocation31_spill] sm:$0xff] %v5868_v39 }
 0x155   :  { %v501_v44 = vpop.permute.xlu0 %500 }
 0x157   :  { %1169 = vrot.lane.b32.xlu0 %v5591_v47, %s5373_s15  ;;  %1167 = vrot.lane.b32.xlu1 %v5563_v40, %s5373_s15 }
 0x159   :  { %v557_v52 = vpop.permute.xlu0 %556  ;;  %v5813_v54 = vpop.permute.xlu1 %502 }
 0x15b   :  { %1089 = vrot.lane.b32.xlu0 %v5817_v55, %s5373_s15  ;;  %1171 = vrot.lane.b32.xlu1 %v5641_v59, %s5373_s15 }
 0x15d   :  { %v417_v5 = vpop.permute.xlu0 %416  ;;  %v5836_v7 = vpop.permute.xlu1 %558 }
 0x15e   :  { %v436_v15 = vmul.f32 %v5820_v57, %v417_v5 }
 0x15f   :  { %1221 = vrot.lane.b32.xlu0 %v5531_v31, %s5374_s16  ;;  %1091 = vrot.lane.b32.xlu1 %v5844_v17, %s5373_s15 }
 0x160   :  { %v456_v5 = vadd.f32 %v448_v24, %v436_v15  ;;  %v520_v15 = vmul.f32 %v5857_v27, %v501_v44  ;;  %v5882_v24 = vrot.slane %v67_v51, %v5860_v29  ;;  %v5894_v44 = vrot.slane %v67_v51, %v5878_v34 }
 0x161   :  { %v465_v38 = vpop.permute.xlu0 %464  ;;  %v467_v46 = vpop.permute.xlu1 %466  ;;  %v451_v34 = vmul.f32 %v5831_v0, %v5619_v53  ;;  %v542_v53 = vmul.f32 %v5863_v58, %v5565_v41  ;;  %v8304_v41 = vld [vmem:[#allocation19_spill] sm:$0xff] }
 0x162   :  { %v484_v1 = vmul.f32 %v5847_v19, %v465_v38  ;;  %v650_v51 = vmul.f32 %v5894_v44, %v5569_v42  ;;  %v5918_v42 = vsel %vm79_vm1, %v1258_v25, 0.0  ;;  %v521_v25 = vmul.f32 %v5857_v27, %v5813_v54 }
 0x163   :  { %1093 = vrot.lane.b32.xlu0 %v5868_v39, %s5373_s15  ;;  %1223 = vrot.lane.b32.xlu1 %v5563_v40, %s5374_s16 }
 0x164   :  { %v492_v38 = vadd.f32 %v484_v1, %v456_v5  ;;  %v576_v1 = vmul.f32 %v5882_v24, %v557_v52 }
 0x165   :  { %v611_v21 = vpop.permute.xlu0 %610  ;;  %v613_v36 = vpop.permute.xlu1 %612 }
 0x166   :  { %v528_v26 = vadd.f32 %v520_v15, %v492_v38  ;;  %v1257_v38 = vrot.slane %v5531_v31, 1  ;;  %v630_v35 = vmul.f32 %v5887_v28, %v611_v21 }
 0x167   :  { %1225 = vrot.lane.b32.xlu0 %v5591_v47, %s5374_s16  ;;  %1227 = vrot.lane.b32.xlu1 %v5641_v59, %s5374_s16 }
 0x168   :  { %v548_v5 = vadd.f32 %v540_v11, %v528_v26  ;;  %v449_v26 = vmul.f32 %v5831_v0, %v5554_v37  ;;  %v5910_v21 = vsel %vm79_vm1, %v1257_v38, 0.0  ;;  %v485_v37 = vmul.f32 %v5847_v19, %v467_v46 }
 0x169   :  { %v667_v29 = vpop.permute.xlu0 %666  ;;  %v669_v15 = vpop.permute.xlu1 %668 }
 0x16a   :  { %v584_v30 = vadd.f32 %v576_v1, %v548_v5  ;;  %v68_v1 = vld [vmem:[%s8178_s11 + $0x8] sm:$0xff] }
 0x16b   :  { %1137 = vrot.lane.b32.xlu0 %v5817_v55, %s5374_s16  ;;  %1139 = vrot.lane.b32.xlu1 %v5844_v17, %s5374_s16  ;;  %v5927_v38 = vrot.slane %v68_v1, %v5801_v48  ;;  %v5951_v40 = vrot.slane %v68_v1, %v5808_v50 }
 0x16c   :  { %v638_v52 = vadd.f32 %v630_v35, %v584_v30  ;;  %v1260_v30 = vrot.slane %v5641_v59, 1  ;;  %v1259_v59 = vrot.slane %v5591_v47, 1 }
 0x16d   :  { %v419_v11 = vpop.permute.xlu0 %418  ;;  %v421_v31 = vpop.permute.xlu1 %420 }
 0x16e   :  { %v658_v5 = vadd.f32 %v650_v51, %v638_v52  ;;  %v437_v17 = vmul.f32 %v5820_v57, %v419_v11  ;;  %v5933_v55 = vsel %vm79_vm1, %v1260_v30, 0.0  ;;  %v577_v30 = vmul.f32 %v5882_v24, %v5836_v7 }
 0x16f   :  { %1273 = vrot.lane.b32.xlu0 %v5910_v21, %s5373_s15  ;;  %1275 = vrot.lane.b32.xlu1 %v5918_v42, %s5373_s15  ;;  %v438_v47 = vmul.f32 %v5820_v57, %v421_v31  ;;  %v450_v7 = vmul.f32 %v5831_v0, %v5586_v45  ;;  %v5969_v45 = vrot.slane %v68_v1, %v5824_v62 }
 0x170   :  { %v457_v35 = vadd.f32 %v449_v26, %v437_v17  ;;  %v541_v17 = vmul.f32 %v5863_v58, %v5535_v33  ;;  %v686_v26 = vmul.f32 %v5927_v38, %v667_v29  ;;  %v631_v29 = vmul.f32 %v5887_v28, %v613_v36 }
 0x171   :  { %v505_v51 = vpop.permute.xlu0 %504  ;;  %v507_v52 = vpop.permute.xlu1 %506 }
 0x172   :  { %v493_v11 = vadd.f32 %v485_v37, %v457_v35  ;;  %v694_v48 = vadd.f32 %v686_v26, %v658_v5  ;;  %v523_v50 = vmul.f32 %v5857_v27, %v507_v52 }
 0x173   :  { %1141 = vrot.lane.b32.xlu0 %v5868_v39, %s5374_s16  ;;  %1279 = vrot.lane.b32.xlu1 %v5933_v55, %s5373_s15  ;;  %v5948_v39 = vsel %vm79_vm1, %v1259_v59, 0.0  ;;  %v651_v59 = vmul.f32 %v5894_v44, %v5573_v43  ;;  %v687_v43 = vmul.f32 %v5927_v38, %v669_v15  ;;  %v5988_v15 = vrot.slane %v68_v1, %v5834_v3 }
 0x174   :  { %v529_v46 = vadd.f32 %v521_v25, %v493_v11  ;;  %v706_v36 = vadd.f32 %v5951_v40, %v694_v48 }
 0x175   :  { %v561_v54 = vpop.permute.xlu0 %560  ;;  %v563_v37 = vpop.permute.xlu1 %562 }
 0x176   :  { %v549_v35 = vadd.f32 %v541_v17, %v529_v46  ;;  %v5962_v17 = vpop.f32.mrf.mxu0  ;;  %v458_v46 = vadd.f32 %v450_v7, %v438_v47  ;;  %v522_v47 = vmul.f32 %v5857_v27, %v505_v51  ;;  %v718_v62 = vmul.f32 %v5969_v45, %v706_v36 }
 0x177   :  { %1277 = vrot.lane.b32.xlu0 %v5948_v39, %s5373_s15  ;;  %1175 = vrot.lane.b32.xlu1 %v5690_v8, %s5373_s15  ;;  %v578_v51 = vmul.f32 %v5882_v24, %v561_v54 }
 0x178   :  { %v585_v31 = vadd.f32 %v577_v30, %v549_v35  ;;  %v730_v54 = vadd.f32 %v5988_v15, %v718_v62 }
 0x179   :  { %v469_v25 = vpop.permute.xlu0 %468  ;;  %v423_v11 = vpop.permute.xlu1 %422 }
 0x17a   :  { %v639_v5 = vadd.f32 %v631_v29, %v585_v31  ;;  %v486_v26 = vmul.f32 %v5847_v19, %v469_v25  ;;  %v439_v33 = vmul.f32 %v5820_v57, %v423_v11 }
 0x17b   :  { %1173 = vrot.lane.b32.xlu0 %v5656_v63, %s5373_s15  ;;  %1179 = vrot.lane.b32.xlu1 %v5962_v17, %s5373_s15 }
 0x17c   :  { %v494_v30 = vadd.f32 %v486_v26, %v458_v46  ;;  %v659_v35 = vadd.f32 %v651_v59, %v639_v5  ;;  %v459_v25 = vadd.f32 %v451_v34, %v439_v33 }
 0x17d   :  { %v615_v7 = vpop.permute.xlu0 %614  ;;  %v471_v29 = vpop.permute.xlu1 %470 }
 0x17e   :  { %v530_v31 = vadd.f32 %v522_v47, %v494_v30  ;;  %v487_v48 = vmul.f32 %v5847_v19, %v471_v29  ;;  %v695_v11 = vadd.f32 %v687_v43, %v659_v35  ;;  %v632_v52 = vmul.f32 %v5887_v28, %v615_v7 }
 0x17f   :  { %1177 = vrot.lane.b32.xlu0 %v5703_v12, %s5373_s15  ;;  %1331 = vrot.lane.b32.xlu1 %v5918_v42, %s5374_s16  ;;  %v543_v43 = vmul.f32 %v5863_v58, %v5600_v49  ;;  %v652_v47 = vmul.f32 %v5894_v44, %v5631_v56  ;;  %v579_v30 = vmul.f32 %v5882_v24, %v563_v37  ;;  %v738_v56 = vmax.f32 %v730_v54, 0.0 }
 0x180   :  { %v550_v59 = vadd.f32 %v542_v53, %v530_v31  ;;  %v495_v33 = vadd.f32 %v487_v48, %v459_v25  ;;  %v707_v34 = vadd.f32 %v5951_v40, %v695_v11  ;;  %v653_v37 = vmul.f32 %v5894_v44, %v5647_v61 }
 0x181   :  { %v671_v5 = vpop.permute.xlu0 %670  ;;  %v617_v46 = vpop.permute.xlu1 %616 }
 0x182   :  { %v586_v26 = vadd.f32 %v578_v51, %v550_v59  ;;  %v531_v36 = vadd.f32 %v523_v50, %v495_v33  ;;  %v719_v1 = vmul.f32 %v5969_v45, %v707_v34  ;;  %v688_v25 = vmul.f32 %v5927_v38, %v671_v5 }
 0x183   :  { %1329 = vrot.lane.b32.xlu0 %v5910_v21, %s5374_s16  ;;  %1335 = vrot.lane.b32.xlu1 %v5933_v55, %s5374_s16  ;;  %v633_v11 = vmul.f32 %v5887_v28, %v617_v46 }
 0x184   :  { %v640_v35 = vadd.f32 %v632_v52, %v586_v26  ;;  %v551_v50 = vadd.f32 %v543_v43, %v531_v36  ;;  %v731_v29 = vadd.f32 %v5988_v15, %v719_v1  ;;  %v1262_v36 = vrot.slane %v5690_v8, 1 }
 0x185   :  { %v673_v53 = vpop.permute.xlu1 %672  ;;  %v509_v7 = vpop.permute.xlu0 %508 }
 0x186   :  { %v660_v31 = vadd.f32 %v652_v47, %v640_v35  ;;  %v587_v48 = vadd.f32 %v579_v30, %v551_v50  ;;  %v739_v62 = vmax.f32 %v731_v29, 0.0  ;;  %v689_v52 = vmul.f32 %v5927_v38, %v673_v53 }
 0x187   :  { %1333 = vrot.lane.b32.xlu0 %v5948_v39, %s5374_s16  ;;  %1231 = vrot.lane.b32.xlu1 %v5690_v8, %s5374_s16  ;;  %v1261_v30 = vrot.slane %v5656_v63, 1  ;;  %v6032_v50 = vsel %vm79_vm1, %v1262_v36, 0.0  ;;  %v1072_v53 = vrot.slane %v5962_v17, 7 }
 0x188   :  { %v696_v51 = vadd.f32 %v688_v25, %v660_v31  ;;  %v641_v59 = vadd.f32 %v633_v11, %v587_v48  ;;  %v746_v5 = vpack.c.bf16 %v739_v62, %v738_v56  ;;  %v452_v25 = vmul.f32 %v5831_v0, %v5674_v4 }
 0x189   :  { %v6013_v33 = vpop.permute.xlu0 %564  ;;  %v511_v34 = vpop.permute.xlu1 %510 }
 0x18a   :  { %v708_v26 = vadd.f32 %v5951_v40, %v696_v51  ;;  %v661_v46 = vadd.f32 %v653_v37, %v641_v59  ;;  %4889 = vmatprep.mubr.bf16.mxu0 %v746_v5  ;;  %v6045_v37 = vsel %vm79_vm1, %v1261_v30, 0.0  ;;  %v1263_v51 = vrot.slane %v5703_v12, 1 }
 0x18b   :  { %1229 = vrot.lane.b32.xlu0 %v5656_v63, %s5374_s16  ;;  %1235 = vrot.lane.b32.xlu1 %v5962_v17, %s5374_s16  ;;  %v6052_v5 = vsel %vm78_vm0, %v1072_v53, 0.0  ;;  %v524_v30 = vmul.f32 %v5857_v27, %v509_v7  ;;  %v525_v7 = vmul.f32 %v5857_v27, %v511_v34 }
 0x18c   :  { %v720_v43 = vmul.f32 %v5969_v45, %v708_v26  ;;  %v697_v61 = vadd.f32 %v689_v52, %v661_v46 }
 0x18d   :  { %v425_v1 = vpop.permute.xlu0 %424  ;;  %v6023_v54 = vpop.permute.xlu1 %566 }
 0x18e   :  { %v709_v47 = vadd.f32 %v5951_v40, %v697_v61  ;;  %v440_v35 = vmul.f32 %v5820_v57, %v425_v1  ;;  %v732_v29 = vadd.f32 %v5988_v15, %v720_v43  ;;  %v6059_v61 = vsel %vm79_vm1, %v1263_v51, 0.0 }
 0x18f   :  { %1233 = vrot.lane.b32.xlu0 %v5703_v12, %s5374_s16  ;;  %1283 = vrot.lane.b32.xlu1 %v6032_v50, %s5373_s15  ;;  %8286 = vst [vmem:[#allocation34_spill] sm:$0xff] %v6059_v61 }
 0x190   :  { %v721_v31 = vmul.f32 %v5969_v45, %v709_v47  ;;  %v460_v59 = vadd.f32 %v452_v25, %v440_v35  ;;  %v740_v4 = vmax.f32 %v732_v29, 0.0  ;;  %v453_v47 = vmul.f32 %v5831_v0, %v5683_v6 }
 0x191   :  { %v473_v48 = vpop.permute.xlu0 %472  ;;  %v427_v11 = vpop.permute.xlu1 %426  ;;  %v1264_v6 = vrot.slane %v5962_v17, 1 }
 0x192   :  { %v733_v56 = vadd.f32 %v5988_v15, %v721_v31  ;;  %v488_v62 = vmul.f32 %v5847_v19, %v473_v48  ;;  %v441_v52 = vmul.f32 %v5820_v57, %v427_v11  ;;  %v544_v48 = vmul.f32 %v5863_v58, %v5643_v60  ;;  %v8302_v60 = vld [vmem:[#allocation26_spill] sm:$0xff] }
 0x193   :  { %1281 = vrot.lane.b32.xlu0 %v6045_v37, %s5373_s15  ;;  %1095 = vrot.lane.b32.xlu1 %v6052_v5, %s5373_s15  ;;  %v6089_v34 = vsel %vm79_vm1, %v1264_v6, 0.0 }
 0x194   :  { %v741_v26 = vmax.f32 %v733_v56, 0.0  ;;  %v496_v46 = vadd.f32 %v488_v62, %v460_v59  ;;  %v461_v29 = vadd.f32 %v453_v47, %v441_v52  ;;  %v5140_v59 = vld [vmem:[%s8175_s1 + $0xb0] ss:$12 sps:$4 sm:$0xff]   ;;  %8287 = vst [vmem:[#allocation35_spill] sm:$0xff] %v6089_v34 }
 0x195   :  { %v619_v36 = vpop.permute.xlu0 %618  ;;  %v475_v43 = vpop.permute.xlu1 %474  ;;  %4849 = vmatprep.subr.bf16.mxu1 %v5140_v59 }
 0x196   :  { %v747_v1 = vpack.c.bf16 %v741_v26, %v740_v4  ;;  %v489_v35 = vmul.f32 %v5847_v19, %v475_v43  ;;  %v532_v53 = vadd.f32 %v524_v30, %v496_v46  ;;  %v5141_v4 = vld [vmem:[%s8175_s1 + $0x98] ss:$12 sps:$4 sm:$0xff]   ;;  %v580_v26 = vmul.f32 %v5882_v24, %v6013_v33  ;;  %4850 = vmatpush3.bf16.msra.mxu1 %v5140_v59  ;;  %v5142_v33 = vld [vmem:[%s8175_s1 + $0x80] ss:$12 sps:$4 sm:$0xff]  }
 0x197   :  { %1285 = vrot.lane.b32.xlu0 %v6059_v61, %s5373_s15  ;;  %1143 = vrot.lane.b32.xlu1 %v6052_v5, %s5374_s16  ;;  %v545_v43 = vmul.f32 %v5863_v58, %v5665_v2 }
 0x198   :  { %4890 = vmatmul.mubr.bf16.vlgmr.msra.gmra.mxu0 %v747_v1  ;;  %v497_v11 = vadd.f32 %v489_v35, %v461_v29  ;;  %v552_v56 = vadd.f32 %v544_v48, %v532_v53  ;;  %4851 = vmatprep.subr.bf16.mxu1 %v5141_v4  ;;  %v634_v35 = vmul.f32 %v5887_v28, %v619_v36 }
 0x199   :  { %v621_v31 = vpop.permute.xlu1 %620  ;;  %v513_v25 = vpop.permute.xlu0 %512  ;;  %v454_v29 = vmul.f32 %v5831_v0, %v5722_v16  ;;  %v581_v48 = vmul.f32 %v5882_v24, %v6023_v54 }
 0x19a   :  { %v533_v46 = vadd.f32 %v525_v7, %v497_v11  ;;  %v588_v52 = vadd.f32 %v580_v26, %v552_v56  ;;  %4852 = vmatpush3.bf16.msra.mxu1 %v5141_v4  ;;  %v654_v26 = vmul.f32 %v5894_v44, %v5696_v10  ;;  %v526_v4 = vmul.f32 %v5857_v27, %v513_v25 }
 0x19b   :  { %1337 = vrot.lane.b32.xlu0 %v6045_v37, %s5374_s16  ;;  %1339 = vrot.lane.b32.xlu1 %v6032_v50, %s5374_s16  ;;  %v635_v54 = vmul.f32 %v5887_v28, %v621_v31 }
 0x19c   :  { %v553_v53 = vadd.f32 %v545_v43, %v533_v46  ;;  %v642_v11 = vadd.f32 %v634_v35, %v588_v52  ;;  %4853 = vmatprep.subr.bf16.mxu1 %v5142_v33  ;;  %v455_v46 = vmul.f32 %v5831_v0, %v5731_v18  ;;  %v546_v35 = vmul.f32 %v5863_v58, %v5692_v9  ;;  %v8298_v9 = vld [vmem:[#allocation33_spill] sm:$0xff] }
 0x19d   :  { %v569_v62 = vpop.permute.xlu0 %568  ;;  %v515_v51 = vpop.permute.xlu1 %514 }
 0x19e   :  { %v589_v16 = vadd.f32 %v581_v48, %v553_v53  ;;  %4854 = vmatpush3.bf16.msra.mxu1 %v5142_v33  ;;  %v662_v52 = vadd.f32 %v654_v26, %v642_v11  ;;  %v582_v18 = vmul.f32 %v5882_v24, %v569_v62  ;;  %v527_v0 = vmul.f32 %v5857_v27, %v515_v51 }
 0x19f   :  { %1341 = vrot.lane.b32.xlu0 %v6059_v61, %s5374_s16  ;;  %1287 = vrot.lane.b32.xlu1 %v6089_v34, %s5373_s15  ;;  %v655_v11 = vmul.f32 %v5894_v44, %v5707_v13  ;;  %v656_v51 = vmul.f32 %v5894_v44, %v5744_v20  ;;  %v657_v20 = vmul.f32 %v5894_v44, %v5753_v23 }
 0x1a0   :  { %v643_v48 = vadd.f32 %v635_v54, %v589_v16 }
 0x1a1   :  { %v429_v1 = vpop.permute.xlu0 %428  ;;  %v571_v47 = vpop.permute.xlu1 %570 }
 0x1a2   :  { %v442_v30 = vmul.f32 %v5820_v57, %v429_v1  ;;  %v663_v62 = vadd.f32 %v655_v11, %v643_v48  ;;  %v583_v16 = vmul.f32 %v5882_v24, %v571_v47 }
 0x1a3   :  { %1343 = vrot.lane.b32.xlu1 %v6089_v34, %s5374_s16 }
 0x1a4   :  { %v462_v56 = vadd.f32 %v454_v29, %v442_v30 }
 0x1a5   :  { %v477_v6 = vpop.permute.xlu0 %476  ;;  %v431_v7 = vpop.permute.xlu1 %430 }
 0x1a6   :  { %v490_v59 = vmul.f32 %v5847_v19, %v477_v6  ;;  %v443_v36 = vmul.f32 %v5820_v57, %v431_v7 }
 0x1a8   :  { %v498_v43 = vadd.f32 %v490_v59, %v462_v56  ;;  %v463_v29 = vadd.f32 %v455_v46, %v443_v36  ;;  %v547_v56 = vmul.f32 %v5863_v58, %v5713_v14  ;;  %v8297_v14 = vld [vmem:[#allocation24_spill] sm:$0xff] }
 0x1a9   :  { %v675_v1 = vpop.permute.xlu0 %674  ;;  %v479_v30 = vpop.permute.xlu1 %478 }
 0x1aa   :  { %v534_v57 = vadd.f32 %v526_v4, %v498_v43  ;;  %v690_v10 = vmul.f32 %v5927_v38, %v675_v1  ;;  %v491_v53 = vmul.f32 %v5847_v19, %v479_v30 }
 0x1ac   :  { %v698_v25 = vadd.f32 %v690_v10, %v662_v52  ;;  %v499_v33 = vadd.f32 %v491_v53, %v463_v29  ;;  %v554_v31 = vadd.f32 %v546_v35, %v534_v57 }
 0x1ad   :  { %v623_v6 = vpop.permute.xlu0 %622  ;;  %v677_v7 = vpop.permute.xlu1 %676 }
 0x1ae   :  { %v710_v59 = vadd.f32 %v5951_v40, %v698_v25  ;;  %v535_v36 = vadd.f32 %v527_v0, %v499_v33  ;;  %v590_v19 = vadd.f32 %v582_v18, %v554_v31  ;;  %v636_v26 = vmul.f32 %v5887_v28, %v623_v6 }
 0x1af   :  { %v691_v27 = vmul.f32 %v5927_v38, %v677_v7 }
 0x1b0   :  { %v644_v13 = vadd.f32 %v636_v26, %v590_v19  ;;  %v555_v46 = vadd.f32 %v547_v56, %v535_v36  ;;  %v722_v4 = vmul.f32 %v5969_v45, %v710_v59  ;;  %v5143_v19 = vld [vmem:[%s8175_s1 + $0x68] ss:$12 sps:$4 sm:$0xff]  }
 0x1b1   :  { %v699_v43 = vadd.f32 %v691_v27, %v663_v62  ;;  %v679_v58 = vpop.permute.xlu0 %678  ;;  %v625_v54 = vpop.permute.xlu1 %624  ;;  %4855 = vmatprep.subr.bf16.mxu1 %v5143_v19  ;;  %v5147_v26 = vld [vmem:[%s8175_s1 + $0x8] ss:$12 sps:$4 sm:$0xff]   ;;  %v8288_v62 = vld [vmem:[#allocation2_spill] sm:$0xff] }
 0x1b2   :  { %v664_v52 = vadd.f32 %v656_v51, %v644_v13  ;;  %v692_v1 = vmul.f32 %v5927_v38, %v679_v58  ;;  %v591_v30 = vadd.f32 %v583_v16, %v555_v46  ;;  %v637_v35 = vmul.f32 %v5887_v28, %v625_v54  ;;  %4856 = vmatpush3.bf16.msra.mxu1 %v5143_v19  ;;  %v8289_v27 = vld [vmem:[#allocation3_spill] sm:$0xff]  ;;  %v66_v51 = vld [vmem:[%s8179_s3] sm:$0xff]  ;;  %v6172_v13 = vld [vmem:[%s8180_s5 + $0x38] sm:$0xff]  }
 0x1b3   :  { %v711_v57 = vadd.f32 %v5951_v40, %v699_v43  ;;  %v734_v53 = vadd.f32 %v5988_v15, %v722_v4  ;;  %4935 = vmatprep.subr.mxu0 %v66_v51 }
 0x1b4   :  { %v700_v29 = vadd.f32 %v692_v1, %v664_v52  ;;  %v645_v24 = vadd.f32 %v637_v35, %v591_v30  ;;  %4936 = vmatpush3.msra.mxu0 %v66_v51 }
 0x1b5   :  { %v723_v47 = vmul.f32 %v5969_v45, %v711_v57  ;;  %v681_v10 = vpop.permute.xlu1 %680  ;;  %v742_v31 = vmax.f32 %v734_v53, 0.0 }
 0x1b6   :  { %v712_v48 = vadd.f32 %v5951_v40, %v700_v29  ;;  %v665_v18 = vadd.f32 %v657_v20, %v645_v24  ;;  %v693_v0 = vmul.f32 %v5927_v38, %v681_v10 }
 0x1b7   :  { %v735_v25 = vadd.f32 %v5988_v15, %v723_v47 }
 0x1b8   :  { %v724_v28 = vmul.f32 %v5969_v45, %v712_v48  ;;  %v701_v33 = vadd.f32 %v693_v0, %v665_v18 }
 0x1b9   :  { %v743_v11 = vmax.f32 %v735_v25, 0.0  ;;  %v6167_v16 = vpop.permute.xlu1 %1083 }
 0x1ba   :  { %v713_v23 = vadd.f32 %v5951_v40, %v701_v33  ;;  %v736_v7 = vadd.f32 %v5988_v15, %v724_v28  ;;  %v5144_v40 = vld [vmem:[%s8175_s1 + $0x50] ss:$12 sps:$4 sm:$0xff]  }
 0x1bb   :  { %v748_v44 = vpack.c.bf16 %v743_v11, %v742_v31  ;;  %4857 = vmatprep.subr.bf16.mxu1 %v5144_v40 }
 0x1bc   :  { %v725_v6 = vmul.f32 %v5969_v45, %v713_v23  ;;  %v744_v59 = vmax.f32 %v736_v7, 0.0  ;;  %4858 = vmatpush3.bf16.msra.mxu1 %v5144_v40  ;;  %v5145_v45 = vld [vmem:[%s8175_s1 + $0x38] ss:$12 sps:$4 sm:$0xff]  }
 0x1bd   :  { %4893 = vmatprep.mubr.bf16.mxu0 %v748_v44  ;;  %4859 = vmatprep.subr.bf16.mxu1 %v5145_v45  ;;  %v6176_v46 = vpop.permute.xlu1 %1087 }
 0x1be   :  { %v737_v56 = vadd.f32 %v5988_v15, %v725_v6  ;;  %v5146_v15 = vld [vmem:[%s8175_s1 + $0x20] ss:$12 sps:$4 sm:$0xff]  }
 0x1c0   :  { %v745_v36 = vmax.f32 %v737_v56, 0.0  ;;  %4860 = vmatpush3.bf16.msra.mxu1 %v5145_v45 }
 0x1c1   :  { %4861 = vmatprep.subr.bf16.mxu1 %v5146_v15  ;;  %v6181_v43 = vpop.permute.xlu1 %1131 }
 0x1c2   :  { %v749_v38 = vpack.c.bf16 %v745_v36, %v744_v59 }
 0x1c4   :  { %4894 = vmatmul.mubr.bf16.gmra.mxu0 %v749_v38  ;;  %4862 = vmatpush3.bf16.msra.mxu1 %v5146_v15 }
 0x1c5   :  { %4863 = vmatprep.subr.bf16.mxu1 %v5147_v26  ;;  %v6185_v54 = vpop.permute.xlu1 %1135 }
 0x1c8   :  { %4864 = vmatpush3.bf16.msra.mxu1 %v5147_v26 }
 0x1c9   :  { %4897 = vmatprep.subr.mxu1 %v66_v51  ;;  %v6189_v1 = vpop.permute.xlu1 %1167 }
 0x1cb   :  { %4866 = vmatmul.mubr.bf16.vlgmr.msra.gmra.mxu1 %v5504_v22  ;;  %v6174_v22 = vpop.permute.xlu0 %1081 }
 0x1cc   :  { %4869 = vmatprep.mubr.bf16.mxu1 %v8288_v62  ;;  %4898 = vmatpush3.msra.mxu1 %v66_v51 }
 0x1cd   :  { %4911 = vmatprep.subr.bf16.mxu1 %v6172_v13  ;;  %v6193_v35 = vpop.permute.xlu1 %1171 }
 0x1cf   :  { %v6179_v4 = vpop.permute.xlu0 %1085 }
 0x1d1   :  { %v6197_v20 = vpop.permute.xlu1 %1091 }
 0x1d3   :  { %4870 = vmatmul.mubr.bf16.gmra.mxu1 %v8289_v27  ;;  %v6183_v58 = vpop.permute.xlu0 %1129 }
 0x1d5   :  { %v6201_v24 = vpop.permute.xlu1 %1223 }
 0x1d7   :  { %v6187_v52 = vpop.permute.xlu0 %1133 }
 0x1d9   :  { %v6205_v10 = vpop.permute.xlu1 %1227 }
 0x1db   :  { %v6191_v30 = vpop.permute.xlu0 %1165 }
 0x1dd   :  { %v6209_v48 = vpop.permute.xlu1 %1139 }
 0x1df   :  { %v6195_v57 = vpop.permute.xlu0 %1169 }
 0x1e1   :  { %v6213_v0 = vpop.permute.xlu1 %1275 }
 0x1e3   :  { %v6199_v29 = vpop.permute.xlu0 %1089 }
 0x1e5   :  { %v6217_v28 = vpop.permute.xlu1 %1279 }
 0x1e7   :  { %v6203_v47 = vpop.permute.xlu0 %1221 }
 0x1e9   :  { %v6221_v31 = vpop.permute.xlu1 %1175 }
 0x1eb   :  { %v6207_v53 = vpop.permute.xlu0 %1093 }
 0x1ed   :  { %v6225_v56 = vpop.permute.xlu1 %1179 }
 0x1ef   :  { %v6211_v18 = vpop.permute.xlu0 %1225 }
 0x1f1   :  { %v6229_v45 = vpop.permute.xlu1 %1331 }
 0x1f2   :  { %8291 = vst [vmem:[#allocation3_spill] sm:$0xff] %v6229_v45 }
 0x1f3   :  { %v6215_v25 = vpop.permute.xlu0 %1137 }
 0x1f5   :  { %v6233_v26 = vpop.permute.xlu1 %1335 }
 0x1f6   :  { %8292 = vst [vmem:[#allocation36_spill] sm:$0xff] %v6233_v26 }
 0x1f7   :  { %v6219_v33 = vpop.permute.xlu0 %1273 }
 0x1fb   :  { %v6223_v6 = vpop.permute.xlu0 %1141 }
 0x1fc   :  { %8290 = vst [vmem:[#allocation2_spill] sm:$0xff] %v6223_v6 }
 0x1ff   :  { %v6227_v40 = vpop.permute.xlu0 %1277 }
 0x203   :  { %v6231_v15 = vpop.permute.xlu0 %1173 }
 0x258   :  { %v4891_v11 = vpop.f32.mrf.mxu0 }
 0x259   :  { %v4521_v23 = vmul.f32 -1.442695, %v4891_v11 }
 0x25a   :  { %v832_v44 = vpop.f32.mrf.mxu0 }
 0x25b   :  { %v4519_v7 = vmul.f32 -1.442695, %v832_v44  ;;  %v6235_v44 = vpop.permute.xlu0 %1177 }
 0x25c   :  { %v4892_v59 = vpop.f32.mrf.mxu0  ;;  %8293 = vst [vmem:[#allocation37_spill] sm:$0xff] %v6235_v44  ;;  %v8315_v44 = vld [vmem:[#allocation12_spill] sm:$0xff] }
 0x25d   :  { %5220 = vpow2.f32 %v4519_v7  ;;  %v4522_v36 = vmul.f32 -1.442695, %v4892_v59  ;;  %v6237_v7 = vpop.permute.xlu1 %1231 }
 0x25e   :  { %5222 = vpow2.f32 %v4521_v23  ;;  %v835_v38 = vpop.f32.mrf.mxu0  ;;  %8294 = vst [vmem:[#allocation38_spill] sm:$0xff] %v6237_v7 }
 0x25f   :  { %v4520_v19 = vmul.f32 -1.442695, %v835_v38  ;;  %5224 = vpow2.f32 %v4522_v36  ;;  %v6244_v32 = vpop.permute.xlu0 %1329 }
 0x260   :  { %8295 = vst [vmem:[#allocation39_spill] sm:$0xff] %v6244_v32 }
 0x261   :  { %5226 = vpow2.f32 %v4520_v19  ;;  %v6242_v19 = vld [vmem:[%s8178_s11 + $0x10] sm:$0xff] }
 0x262   :  { %v6288_v45 = vrot.slane %v6242_v19, %v5834_v3 }
 0x263   :  { %v6268_v2 = vpop.permute.xlu0 %1333 }
 0x264   :  { %v1185_v6 = vmul.f32 %v6288_v45, %v6191_v30 }
 0x26a   :  { %v5221_v62 = vpop.eup %5220 }
 0x26b   :  { %v5223_v27 = vpop.eup %5222  ;;  %v887_v51 = vadd.f32 1.0, %v5221_v62  ;;  %v6246_v62 = vpop.permute.xlu1 %1235 }
 0x26c   :  { %v5225_v11 = vpop.eup %5224  ;;  %v889_v59 = vadd.f32 1.0, %v5223_v27  ;;  %8296 = vst [vmem:[#allocation40_spill] sm:$0xff] %v6246_v62  ;;  %v6254_v27 = vrot.slane %v6242_v19, %v8298_v9  ;;  %v8308_v62 = vld [vmem:[#allocation21_spill] sm:$0xff] }
 0x26d   :  { %5228 = vrcp.f32 %v887_v51  ;;  %v890_v38 = vadd.f32 1.0, %v5225_v11  ;;  %v6250_v51 = vrot.slane %v6242_v19, %v8297_v14  ;;  %v8300_v11 = vld [vmem:[#allocation28_spill] sm:$0xff] }
 0x26e   :  { %v5227_v23 = vpop.eup %5226  ;;  %8299 = vst [vmem:[#allocation41_spill] sm:$0xff] %v6254_v27  ;;  %v6274_v61 = vmul.f32 %v6254_v27, %v5910_v21 }
 0x26f   :  { %v888_v36 = vadd.f32 1.0, %v5227_v23  ;;  %v6258_v23 = vrot.slane %v6242_v19, %v8300_v11  ;;  %v1113_v9 = vmul.f32 %v6250_v51, %v8304_v41  ;;  %v8306_v11 = vld [vmem:[#allocation5_spill] sm:$0xff]  ;;  %v6280_v26 = vpop.permute.xlu1 %1283  ;;  %v8309_v41 = vld [vmem:[#allocation8_spill] sm:$0xff] }
 0x270   :  { %8305 = vst [vmem:[#allocation19_spill] sm:$0xff] %v6274_v61  ;;  %8307 = vst [vmem:[#allocation42_spill] sm:$0xff] %v6280_v26  ;;  %v6299_v61 = vmul.f32 %v6254_v27, %v5918_v42  ;;  %v8313_v26 = vld [vmem:[#allocation22_spill] sm:$0xff] }
 0x271   :  { %5230 = vrcp.f32 %v888_v36  ;;  %v6278_v34 = vmul.f32 %v6258_v23, %v8306_v11  ;;  %v6292_v21 = vmul.f32 %v6258_v23, %v8309_v41  ;;  %v8310_v11 = vld [vmem:[#allocation20_spill] sm:$0xff]  ;;  %v1116_v41 = vmul.f32 %v6250_v51, %v8313_v26 }
 0x272   :  { %5232 = vrcp.f32 %v889_v59  ;;  %v8301_v59 = vld [vmem:[#allocation23_spill] sm:$0xff]  ;;  %v1115_v32 = vmul.f32 %v6250_v51, %v8310_v11  ;;  %8311 = vst [vmem:[#allocation21_spill] sm:$0xff] %v6299_v61  ;;  %v6317_v42 = vmul.f32 %v6258_v23, %v8315_v44  ;;  %v8316_v61 = vld [vmem:[#allocation25_spill] sm:$0xff]  ;;  %v6326_v26 = vmul.f32 %v6254_v27, %v5933_v55  ;;  %v6342_v55 = vpop.permute.xlu0 %1229 }
 0x273   :  { %5234 = vrcp.f32 %v890_v38  ;;  %v6262_v36 = vrot.slane %v6242_v19, %v8301_v59  ;;  %v6266_v38 = vrot.slane %v6242_v19, %v8302_v60  ;;  %8303 = vst [vmem:[#allocation23_spill] sm:$0xff] %v6268_v2  ;;  %v1114_v60 = vmul.f32 %v6250_v51, %v8308_v62  ;;  %v8312_v62 = vld [vmem:[#allocation10_spill] sm:$0xff] }
 0x274   :  { %v6305_v3 = vmul.f32 %v6258_v23, %v8312_v62  ;;  %v1117_v7 = vmul.f32 %v6250_v51, %v8316_v61  ;;  %v6340_v61 = vmul.f32 %v6258_v23, %v5690_v8  ;;  %v6355_v8 = vmul.f32 %v6254_v27, %v6032_v50 }
 0x275   :  { %v1101_v2 = vmul.f32 %v6262_v36, %v6174_v22  ;;  %v1102_v22 = vmul.f32 %v6262_v36, %v6167_v16  ;;  %v1149_v11 = vmul.f32 %v6266_v38, %v6183_v58  ;;  %v5149_v16 = vld [vmem:[%s8180_s5 + $0x30] sm:$0xff]   ;;  %v6332_v58 = vmul.f32 %v6258_v23, %v5656_v63 }
 0x276   :  { %v1104_v14 = vmul.f32 %v6262_v36, %v6176_v46  ;;  %v8317_v46 = vld [vmem:[#allocation29_spill] sm:$0xff]  ;;  %8318 = vst [vmem:[#allocation22_spill] sm:$0xff] %v6355_v8  ;;  %v1151_v50 = vmul.f32 %v6266_v38, %v6187_v52  ;;  %v6376_v8 = vmul.f32 %v6258_v23, %v5703_v12  ;;  %v1105_v52 = vmul.f32 %v6262_v36, %v6199_v29 }
 0x277   :  { %v1122_v63 = vadd.f32 %v1114_v60, %v1102_v22  ;;  %v1118_v30 = vmul.f32 %v6250_v51, %v8317_v46  ;;  %v5150_v60 = vld [vmem:[%s8180_s5 + $0x28] sm:$0xff]   ;;  %v6368_v22 = vmul.f32 %v6254_v27, %v6045_v37  ;;  %v1188_v46 = vmul.f32 %v6288_v45, %v6193_v35 }
 0x278   :  { %v1187_v37 = vmul.f32 %v6288_v45, %v6195_v57  ;;  %v5151_v57 = vld [vmem:[%s8180_s5 + $0x20] sm:$0xff]  }
 0x27a   :  { %v5229_v49 = vpop.eup %5228 }
 0x27b   :  { %4899 = vmatprep.mubr.msk.f32.mxu1 %vm911_vm2, %v5229_v49  ;;  %v6311_v49 = vmul.f32 %v6254_v27, %v5948_v39  ;;  %v1150_v39 = vmul.f32 %v6266_v38, %v6181_v43  ;;  %v1103_v43 = vmul.f32 %v6262_v36, %v6179_v4  ;;  %v1152_v4 = vmul.f32 %v6266_v38, %v6185_v54 }
 0x27d   :  { %8314 = vst [vmem:[#allocation20_spill] sm:$0xff] %v6311_v49  ;;  %v1121_v49 = vadd.f32 %v1113_v9, %v1101_v2  ;;  %v1186_v2 = vmul.f32 %v6288_v45, %v6189_v1  ;;  %v1096_v9 = vpop.permute.xlu1 %1095 }
 0x27e   :  { %v5231_v62 = vpop.eup %5230 }
 0x27f   :  { %v5233_v44 = vpop.eup %5232  ;;  %4900 = vmatmul.mubr.msk.f32.vlgmr.msra.gmra.mxu1 %vm911_vm2, %v5231_v62  ;;  %v1157_v62 = vadd.f32 %v1149_v11, %v1121_v49  ;;  %v1158_v49 = vadd.f32 %v1150_v39, %v1122_v63  ;;  %v1124_v11 = vadd.f32 %v1116_v41, %v1104_v14  ;;  %v1120_v14 = vmul.f32 %v6250_v51, %v6052_v5  ;;  %v6389_v39 = vpop.permute.xlu0 %1233 }
 0x280   :  { %4902 = vmatprep.mubr.msk.f32.mxu1 %vm911_vm2, %v5233_v44  ;;  %4912 = vmatpush3.bf16.msra.mxu1 %v6172_v13  ;;  %v5235_v1 = vpop.eup %5234  ;;  %v8319_v44 = vld [vmem:[#allocation31_spill] sm:$0xff]  ;;  %v1106_v5 = vmul.f32 %v6262_v36, %v6197_v20  ;;  %v1154_v20 = vmul.f32 %v6266_v38, %v6209_v48  ;;  %v1153_v48 = vmul.f32 %v6266_v38, %v6215_v25 }
 0x281   :  { %4913 = vmatprep.subr.bf16.mxu1 %v5149_v16  ;;  %v6364_v13 = vmul.f32 %v6250_v51, %v8319_v44  ;;  %v1193_v54 = vadd.f32 %v1185_v6, %v1157_v62  ;;  %v1123_v44 = vadd.f32 %v1115_v32, %v1103_v43  ;;  %v1194_v27 = vadd.f32 %v1186_v2, %v1158_v49  ;;  %v8320_v6 = vld [vmem:[#allocation30_spill] sm:$0xff]  ;;  %v8321_v51 = vld [vmem:[#allocation32_spill] sm:$0xff]  ;;  %v1144_v43 = vpop.permute.xlu1 %1143 }
 0x282   :  { %v1160_v35 = vadd.f32 %v1152_v4, %v1124_v11  ;;  %v6387_v41 = vrot.slane %v6242_v19, %v8320_v6  ;;  %v6393_v32 = vmul.f32 %v6258_v23, %v5962_v17  ;;  %v1125_v6 = vadd.f32 %v1117_v7, %v1105_v52 }
 0x283   :  { %4903 = vmatmul.mubr.msk.f32.gmra.mxu1 %vm911_vm2, %v5235_v1  ;;  %v1159_v29 = vadd.f32 %v1151_v50, %v1123_v44  ;;  %v1213_v23 = vadd.f32 %v6278_v34, %v1193_v54  ;;  %v1108_v1 = vmul.f32 %v6262_v36, %v1096_v9  ;;  %v1214_v50 = vadd.f32 %v6292_v21, %v1194_v27  ;;  %v5152_v34 = vld [vmem:[%s8180_s5 + $0x18] sm:$0xff]  }
 0x284   :  { %v4895_v63 = vpop.f32.mrf.mxu0  ;;  %4914 = vmatpush3.bf16.msra.mxu1 %v5149_v16  ;;  %v6402_v16 = vrot.slane %v6242_v19, %v8321_v51  ;;  %v1196_v4 = vadd.f32 %v1188_v46, %v1160_v35  ;;  %v1241_v19 = vmul.f32 %v6387_v41, %v6203_v47  ;;  %v1126_v7 = vadd.f32 %v1118_v30, %v1106_v5 }
 0x285   :  { %4915 = vmatprep.subr.bf16.mxu1 %v5150_v60  ;;  %v4525_v2 = vmul.f32 -1.442695, %v4895_v63  ;;  %v1195_v11 = vadd.f32 %v1187_v37, %v1159_v29  ;;  %v1156_v63 = vmul.f32 %v6266_v38, %v1144_v43  ;;  %v1242_v27 = vmul.f32 %v6387_v41, %v6201_v24 }
 0x286   :  { %v848_v62 = vpop.f32.mrf.mxu0  ;;  %v1216_v47 = vadd.f32 %v6317_v42, %v1196_v4  ;;  %v1190_v9 = vmul.f32 %v6288_v45, %v6221_v31  ;;  %v1128_v54 = vadd.f32 %v1120_v14, %v1108_v1  ;;  %v1244_v52 = vmul.f32 %v6387_v41, %v6205_v10  ;;  %v6433_v31 = vld [vmem:[%s8178_s11 + $0x18] sm:$0xff]  ;;  %v5153_v10 = vld [vmem:[%s8180_s5 + $0x10] sm:$0xff]  }
 0x287   :  { %v4523_v49 = vmul.f32 -1.442695, %v848_v62  ;;  %v1162_v30 = vadd.f32 %v1154_v20, %v1126_v7  ;;  %v1189_v24 = vmul.f32 %v6288_v45, %v6231_v15  ;;  %v1293_v25 = vmul.f32 %v6402_v16, %v6219_v33  ;;  %v8324_v20 = vld [vmem:[#allocation38_spill] sm:$0xff]  ;;  %v8325_v7 = vld [vmem:[#allocation37_spill] sm:$0xff] }
 0x288   :  { %v4896_v44 = vpop.f32.mrf.mxu0  ;;  %4916 = vmatpush3.bf16.msra.mxu1 %v5150_v60  ;;  %v1282_v60 = vpop.permute.xlu0 %1281  ;;  %v1294_v42 = vmul.f32 %v6402_v16, %v6213_v0  ;;  %v1164_v14 = vadd.f32 %v1156_v63, %v1128_v54  ;;  %v1249_v15 = vadd.f32 %v1241_v19, %v1213_v23  ;;  %v1107_v35 = vmul.f32 %v6262_v36, %v6207_v53  ;;  %v8327_v54 = vld [vmem:[#allocation21_spill] sm:$0xff] }
 0x289   :  { %5236 = vpow2.f32 %v4523_v49  ;;  %v4526_v46 = vmul.f32 -1.442695, %v4896_v44  ;;  %4917 = vmatprep.subr.bf16.mxu1 %v5151_v57  ;;  %v1250_v33 = vadd.f32 %v1242_v27, %v1214_v50  ;;  %v1243_v0 = vmul.f32 %v6387_v41, %v6211_v18  ;;  %v1340_v53 = vpop.permute.xlu1 %1339 }
 0x28a   :  { %5238 = vpow2.f32 %v4525_v2  ;;  %v851_v21 = vpop.f32.mrf.mxu0  ;;  %v1296_v29 = vmul.f32 %v6402_v16, %v6217_v28  ;;  %v1198_v5 = vadd.f32 %v1190_v9, %v1162_v30  ;;  %v1192_v43 = vmul.f32 %v6288_v45, %v6225_v56  ;;  %v8322_v56 = vld [vmem:[#allocation2_spill] sm:$0xff]  ;;  %v8329_v30 = vld [vmem:[#allocation39_spill] sm:$0xff] }
 0x28b   :  { %v4524_v37 = vmul.f32 -1.442695, %v851_v21  ;;  %5240 = vpow2.f32 %v4526_v46  ;;  %v1215_v2 = vadd.f32 %v6305_v3, %v1195_v11  ;;  %v1252_v62 = vadd.f32 %v1244_v52, %v1216_v47  ;;  %v5154_v3 = vld [vmem:[%s8180_s5 + $0x8] sm:$0xff]   ;;  %v8323_v11 = vld [vmem:[#allocation24_spill] sm:$0xff] }
 0x28c   :  { %4918 = vmatpush3.bf16.msra.mxu1 %v5151_v57  ;;  %v1161_v57 = vadd.f32 %v1153_v48, %v1125_v6  ;;  %v6449_v23 = vrot.slane %v6433_v31, %v8301_v59  ;;  %v1301_v36 = vadd.f32 %v1293_v25, %v1249_v15  ;;  %v1302_v6 = vadd.f32 %v1294_v42, %v1250_v33  ;;  %v1286_v28 = vpop.permute.xlu0 %1285  ;;  %v8326_v48 = vld [vmem:[#allocation42_spill] sm:$0xff] }
 0x28d   :  { %5242 = vpow2.f32 %v4524_v37  ;;  %4919 = vmatprep.subr.bf16.mxu1 %v5152_v34  ;;  %v1295_v18 = vmul.f32 %v6402_v16, %v6227_v40  ;;  %v1200_v1 = vadd.f32 %v1192_v43, %v1164_v14  ;;  %v1155_v49 = vmul.f32 %v6266_v38, %v8322_v56  ;;  %v8328_v37 = vld [vmem:[#allocation19_spill] sm:$0xff]  ;;  %v1288_v42 = vpop.permute.xlu1 %1287 }
 0x28e   :  { %v1197_v4 = vadd.f32 %v1189_v24, %v1161_v57  ;;  %v6460_v50 = vrot.slane %v6433_v31, %v8323_v11  ;;  %v1246_v44 = vmul.f32 %v6387_v41, %v8324_v20  ;;  %v1245_v40 = vmul.f32 %v6387_v41, %v6342_v55 }
 0x28f   :  { %v1127_v19 = vadd.f32 %v6364_v13, %v1107_v35  ;;  %v1251_v63 = vadd.f32 %v1243_v0, %v1215_v2  ;;  %v1304_v46 = vadd.f32 %v1296_v29, %v1252_v62  ;;  %v1191_v27 = vmul.f32 %v6288_v45, %v8325_v7  ;;  %v5155_v45 = vld [vmem:[%s8180_s5] sm:$0xff]  }
 0x290   :  { %4920 = vmatpush3.bf16.msra.mxu1 %v5152_v34  ;;  %v1218_v34 = vadd.f32 %v6340_v61, %v1198_v5  ;;  %v1217_v38 = vadd.f32 %v6332_v58, %v1197_v4  ;;  %v1298_v21 = vmul.f32 %v6402_v16, %v8326_v48  ;;  %v1297_v47 = vmul.f32 %v6402_v16, %v1282_v60  ;;  %v1338_v57 = vpop.permute.xlu0 %1337  ;;  %v8332_v5 = vld [vmem:[#allocation23_spill] sm:$0xff] }
 0x291   :  { %4921 = vmatprep.subr.bf16.mxu1 %v5153_v10  ;;  %v1303_v9 = vadd.f32 %v1295_v18, %v1251_v63  ;;  %v1322_v55 = vadd.f32 %v8327_v54, %v1302_v6  ;;  %v1321_v13 = vadd.f32 %v8328_v37, %v1301_v36  ;;  %v1220_v52 = vadd.f32 %v6393_v32, %v1200_v1  ;;  %v8331_v32 = vld [vmem:[#allocation40_spill] sm:$0xff]  ;;  %v1344_v37 = vpop.permute.xlu1 %1343 }
 0x292   :  { %v1163_v58 = vadd.f32 %v1155_v49, %v1127_v19  ;;  %v1349_v24 = vmul.f32 %v6449_v23, %v8329_v30  ;;  %v1254_v25 = vadd.f32 %v1246_v44, %v1218_v34  ;;  %v1253_v60 = vadd.f32 %v1245_v40, %v1217_v38  ;;  %v8333_v36 = vld [vmem:[#allocation20_spill] sm:$0xff]  ;;  %v8335_v38 = vld [vmem:[#allocation22_spill] sm:$0xff] }
 0x293   :  { %v1324_v35 = vadd.f32 %v6326_v26, %v1304_v46  ;;  %v1248_v33 = vmul.f32 %v6387_v41, %v8331_v32  ;;  %v1351_v43 = vmul.f32 %v6449_v23, %v8332_v5  ;;  %v1323_v6 = vadd.f32 %v8333_v36, %v1303_v9  ;;  %v8334_v19 = vld [vmem:[#allocation36_spill] sm:$0xff] }
 0x294   :  { %4922 = vmatpush3.bf16.msra.mxu1 %v5153_v10  ;;  %v8330_v10 = vld [vmem:[#allocation3_spill] sm:$0xff]  ;;  %v1199_v29 = vadd.f32 %v1191_v27, %v1163_v58  ;;  %v1306_v2 = vadd.f32 %v1298_v21, %v1254_v25  ;;  %v1305_v62 = vadd.f32 %v1297_v47, %v1253_v60  ;;  %v1300_v1 = vmul.f32 %v6402_v16, %v1288_v42 }
 0x295   :  { %4923 = vmatprep.subr.bf16.mxu1 %v5154_v3  ;;  %v1350_v15 = vmul.f32 %v6449_v23, %v8330_v10  ;;  %v1256_v18 = vadd.f32 %v1248_v33, %v1220_v52  ;;  %v1357_v56 = vadd.f32 %v1349_v24, %v1321_v13  ;;  %v1353_v49 = vmul.f32 %v6449_v23, %v1338_v57  ;;  %v8340_v33 = vld [vmem:[#allocation27_spill] sm:$0xff] }
 0x296   :  { %v5237_v61 = vpop.eup %5236  ;;  %v1354_v20 = vmul.f32 %v6449_v23, %v1340_v53  ;;  %v1352_v63 = vmul.f32 %v6449_v23, %v8334_v19  ;;  %v1359_v34 = vadd.f32 %v1351_v43, %v1323_v6  ;;  %v1219_v7 = vadd.f32 %v6376_v8, %v1199_v29 }
 0x297   :  { %v5239_v14 = vpop.eup %5238  ;;  %v891_v0 = vadd.f32 1.0, %v5237_v61  ;;  %v1358_v40 = vadd.f32 %v1350_v15, %v1322_v55  ;;  %v1325_v27 = vadd.f32 %v6368_v22, %v1305_v62  ;;  %v1326_v48 = vadd.f32 %v8335_v38, %v1306_v2  ;;  %v8338_v22 = vld [vmem:[#allocation26_spill] sm:$0xff] }
 0x298   :  { %4924 = vmatpush3.bf16.msra.mxu1 %v5154_v3  ;;  %v5241_v4 = vpop.eup %5240  ;;  %v893_v44 = vadd.f32 1.0, %v5239_v14  ;;  %v1247_v3 = vmul.f32 %v6387_v41, %v6389_v39  ;;  %v1299_v21 = vmul.f32 %v6402_v16, %v1286_v28  ;;  %v1308_v53 = vadd.f32 %v1300_v1, %v1256_v18  ;;  %v8336_v41 = vld [vmem:[#allocation35_spill] sm:$0xff]  ;;  %v8337_v39 = vld [vmem:[#allocation41_spill] sm:$0xff]  ;;  %v1342_v28 = vpop.permute.xlu0 %1341  ;;  %v8339_v14 = vld [vmem:[#allocation34_spill] sm:$0xff] }
 0x299   :  { %5244 = vrcp.f32 %v891_v0  ;;  %4925 = vmatprep.subr.bf16.mxu1 %v5155_v45  ;;  %v894_v47 = vadd.f32 1.0, %v5241_v4  ;;  %v1369_v9 = vadd.f32 %v6460_v50, %v1357_v56  ;;  %v1361_v54 = vadd.f32 %v1353_v49, %v1325_v27 }
 0x29a   :  { %v5243_v26 = vpop.eup %5242  ;;  %v1362_v55 = vadd.f32 %v1354_v20, %v1326_v48  ;;  %v1320_v13 = vmul.f32 %v8337_v39, %v8336_v41  ;;  %v1360_v8 = vadd.f32 %v1352_v63, %v1324_v35  ;;  %v1255_v52 = vadd.f32 %v1247_v3, %v1219_v7 }
 0x29b   :  { %v892_v46 = vadd.f32 1.0, %v5243_v26  ;;  %v1380_v61 = vrot.slane %v6433_v31, %v8338_v22  ;;  %v1371_v16 = vadd.f32 %v6460_v50, %v1359_v34  ;;  %v1356_v24 = vmul.f32 %v6449_v23, %v1344_v37  ;;  %v6523_v37 = vpop.f32.mrf.mxu1 }
 0x29c   :  { %4926 = vmatpush3.bf16.msra.mxu1 %v5155_v45  ;;  %v1370_v45 = vadd.f32 %v6460_v50, %v1358_v40  ;;  %v1307_v58 = vadd.f32 %v1299_v21, %v1255_v52  ;;  %v1328_v30 = vadd.f32 %v1320_v13, %v1308_v53  ;;  %v1373_v60 = vadd.f32 %v6460_v50, %v1361_v54 }
 0x29d   :  { %5246 = vrcp.f32 %v892_v46  ;;  %v1381_v25 = vmul.f32 %v1380_v61, %v1369_v9  ;;  %v1374_v42 = vadd.f32 %v6460_v50, %v1362_v55  ;;  %v1319_v10 = vmul.f32 %v8337_v39, %v8339_v14  ;;  %v6525_v41 = vpop.f32.mrf.mxu1 }
 0x29e   :  { %5248 = vrcp.f32 %v893_v44  ;;  %v1372_v15 = vadd.f32 %v6460_v50, %v1360_v8  ;;  %v1355_v35 = vmul.f32 %v6449_v23, %v1342_v28  ;;  %v1382_v32 = vmul.f32 %v1380_v61, %v1370_v45 }
 0x29f   :  { %5250 = vrcp.f32 %v894_v47  ;;  %v1392_v57 = vrot.slane %v6433_v31, %v8340_v33  ;;  %v1383_v0 = vmul.f32 %v1380_v61, %v1371_v16  ;;  %v1327_v29 = vadd.f32 %v1319_v10, %v1307_v58  ;;  %v6527_v39 = vpop.f32.mrf.mxu1 }
 0x2a0   :  { %v1364_v5 = vadd.f32 %v1356_v24, %v1328_v30  ;;  %v1385_v2 = vmul.f32 %v1380_v61, %v1373_v60  ;;  %v1386_v62 = vmul.f32 %v1380_v61, %v1374_v42  ;;  %v1384_v36 = vmul.f32 %v1380_v61, %v1372_v15 }
 0x2a1   :  { %v1393_v4 = vadd.f32 %v1392_v57, %v1381_v25  ;;  %v1363_v6 = vadd.f32 %v1355_v35, %v1327_v29  ;;  %v1394_v18 = vadd.f32 %v1392_v57, %v1382_v32  ;;  %v1395_v1 = vadd.f32 %v1392_v57, %v1383_v0  ;;  %v6529_v13 = vpop.f32.mrf.mxu1 }
 0x2a2   :  { %v1376_v26 = vadd.f32 %v6460_v50, %v1364_v5  ;;  %v1397_v49 = vadd.f32 %v1392_v57, %v1385_v2  ;;  %v1398_v20 = vadd.f32 %v1392_v57, %v1386_v62  ;;  %v1396_v44 = vadd.f32 %v1392_v57, %v1384_v36 }
 0x2a3   :  { %v1401_v56 = vmax.f32 %v1393_v4, 0.0  ;;  %v1375_v40 = vadd.f32 %v6460_v50, %v1363_v6  ;;  %v1402_v19 = vmax.f32 %v1394_v18, 0.0  ;;  %v1403_v63 = vmax.f32 %v1395_v1, 0.0  ;;  %v6531_v8 = vpop.f32.mrf.mxu1 }
 0x2a4   :  { %v1388_v3 = vmul.f32 %v1380_v61, %v1376_v26  ;;  %v1405_v7 = vmax.f32 %v1397_v49, 0.0  ;;  %v1406_v27 = vmax.f32 %v1398_v20, 0.0  ;;  %v1404_v38 = vmax.f32 %v1396_v44, 0.0  ;;  %8341 = vst [vmem:[#allocation25_spill] sm:$0xff] %v6531_v8 }
 0x2a5   :  { %v1409_v34 = vpack.c.bf16 %v1402_v19, %v1401_v56  ;;  %v1387_v48 = vmul.f32 %v1380_v61, %v1375_v40  ;;  %v6533_v52 = vpop.f32.mrf.mxu1 }
 0x2a6   :  { %v5245_v43 = vpop.eup %5244  ;;  %v1410_v21 = vpack.c.bf16 %v1404_v38, %v1403_v63  ;;  %v1400_v53 = vadd.f32 %v1392_v57, %v1388_v3  ;;  %v1411_v47 = vpack.c.bf16 %v1406_v27, %v1405_v7 }
 0x2a7   :  { %4905 = vmatprep.mubr.msk.f32.mxu1 %vm911_vm2, %v5245_v43  ;;  %v1399_v50 = vadd.f32 %v1392_v57, %v1387_v48  ;;  %v6535_v61 = vpop.f32.mrf.mxu1 }
 0x2a8   :  { %v1408_v9 = vmax.f32 %v1400_v53, 0.0  ;;  %8342 = vst [vmem:[#allocation29_spill] sm:$0xff] %v6535_v61 }
 0x2a9   :  { %v1407_v54 = vmax.f32 %v1399_v50, 0.0  ;;  %v6537_v45 = vpop.f32.mrf.mxu1 }
 0x2aa   :  { %v5247_v23 = vpop.eup %5246 }
 0x2ab   :  { %v5249_v31 = vpop.eup %5248  ;;  %4906 = vmatmul.mubr.msk.f32.gmra.mxu1 %vm911_vm2, %v5247_v23  ;;  %v1412_v55 = vpack.c.bf16 %v1408_v9, %v1407_v54 }
 0x2ac   :  { %4908 = vmatprep.mubr.msk.f32.mxu1 %vm911_vm2, %v5249_v31  ;;  %v5251_v46 = vpop.eup %5250 }
 0x2af   :  { %4909 = vmatmul.mubr.msk.f32.gmra.mxu1 %vm911_vm2, %v5251_v46 }
 0x2b0   :  { %4927 = vmatprep.mubr.bf16.mxu1 %v1409_v34 }
 0x2b3   :  { %4928 = vmatmul.mubr.bf16.vlgmr.msra.gmra.mxu1 %v1410_v21 }
 0x2b4   :  { %4931 = vmatprep.mubr.bf16.mxu1 %v1411_v47 }
 0x2bb   :  { %4932 = vmatmul.mubr.bf16.gmra.mxu1 %v1412_v55  ;;  %v5156_v55 = vld [vmem:[%s8181_s6 + $0x78] sm:$0xff]  }
 0x2bc   :  { %4703 = vmatprep.subr.bf16.mxu0 %v5156_v55 }
 0x33f   :  { %v6539_v16 = vpop.f32.mrf.mxu1 }
 0x341   :  { %v6541_v28 = vpop.f32.mrf.mxu1 }
 0x343   :  { %v6543_v58 = vpop.f32.mrf.mxu1 }
 0x345   :  { %v6545_v30 = vpop.f32.mrf.mxu1 }
 0x36b   :  { %v6547_v24 = vpop.f32.mrf.mxu1 }
 0x36d   :  { %v6549_v25 = vpop.f32.mrf.mxu1 }
 0x36f   :  { %v6551_v60 = vpop.f32.mrf.mxu1 }
 0x371   :  { %v6553_v42 = vpop.f32.mrf.mxu1 }
 0x373   :  { %v4929_v14 = vpop.f32.mrf.mxu1 }
 0x374   :  { %v4545_v10 = vmul.f32 -1.442695, %v4929_v14  ;;  %v5157_v14 = vld [vmem:[%s8181_s6 + $0x38] sm:$0xff]  }
 0x375   :  { %v1495_v15 = vpop.f32.mrf.mxu1 }
 0x376   :  { %v4543_v35 = vmul.f32 -1.442695, %v1495_v15  ;;  %5252 = vpow2.f32 %v4545_v10  ;;  %v5158_v10 = vld [vmem:[%s8181_s6 + $0x70] sm:$0xff]  }
 0x377   :  { %v4930_v32 = vpop.f32.mrf.mxu1  ;;  %v5159_v15 = vld [vmem:[%s8181_s6 + $0x30] sm:$0xff]  }
 0x378   :  { %5254 = vpow2.f32 %v4543_v35  ;;  %v4546_v57 = vmul.f32 -1.442695, %v4930_v32  ;;  %v5160_v35 = vld [vmem:[%s8181_s6 + $0x68] sm:$0xff]  }
 0x379   :  { %v1498_v0 = vpop.f32.mrf.mxu1  ;;  %v5161_v32 = vld [vmem:[%s8181_s6 + $0x28] sm:$0xff]  }
 0x37a   :  { %v4544_v29 = vmul.f32 -1.442695, %v1498_v0  ;;  %5256 = vpow2.f32 %v4546_v57  ;;  %v5162_v57 = vld [vmem:[%s8181_s6 + $0x60] sm:$0xff]  }
 0x37b   :  { %v4933_v5 = vpop.f32.mrf.mxu1  ;;  %v5163_v0 = vld [vmem:[%s8181_s6 + $0x20] sm:$0xff]  }
 0x37c   :  { %5258 = vpow2.f32 %v4544_v29  ;;  %v4549_v43 = vmul.f32 -1.442695, %v4933_v5  ;;  %v5164_v29 = vld [vmem:[%s8181_s6 + $0x58] sm:$0xff]  }
 0x37d   :  { %v1511_v2 = vpop.f32.mrf.mxu1  ;;  %v5165_v5 = vld [vmem:[%s8181_s6 + $0x18] sm:$0xff]  }
 0x37e   :  { %v4547_v62 = vmul.f32 -1.442695, %v1511_v2  ;;  %v5167_v2 = vld [vmem:[%s8181_s6 + $0x10] sm:$0xff]  }
 0x37f   :  { %v4934_v4 = vpop.f32.mrf.mxu1 }
 0x380   :  { %5260 = vpow2.f32 %v4547_v62  ;;  %v4550_v36 = vmul.f32 -1.442695, %v4934_v4  ;;  %v5168_v62 = vld [vmem:[%s8181_s6 + $0x48] sm:$0xff]  }
 0x381   :  { %5262 = vpow2.f32 %v4549_v43  ;;  %v1514_v6 = vpop.f32.mrf.mxu1  ;;  %v5166_v43 = vld [vmem:[%s8181_s6 + $0x50] sm:$0xff]   ;;  %v5169_v4 = vld [vmem:[%s8181_s6 + $0x8] sm:$0xff]  }
 0x382   :  { %v4548_v18 = vmul.f32 -1.442695, %v1514_v6  ;;  %5264 = vpow2.f32 %v4550_v36  ;;  %v5170_v36 = vld [vmem:[%s8181_s6 + $0x40] sm:$0xff]  }
 0x383   :  { %v5253_v1 = vpop.eup %5252  ;;  %v5171_v6 = vld [vmem:[%s8181_s6] sm:$0xff]  }
 0x384   :  { %5266 = vpow2.f32 %v4548_v18  ;;  %v1552_v20 = vadd.f32 1.0, %v5253_v1  ;;  %v8343_v18 = vld [vmem:[#allocation4_spill] sm:$0xff] }
 0x385   :  { %v5255_v26 = vpop.eup %5254  ;;  %v6613_v1 = vmul.f32 %v6541_v28, %v8343_v18 }
 0x386   :  { %v1550_v23 = vadd.f32 1.0, %v5255_v26  ;;  %v8344_v26 = vld [vmem:[#allocation7_spill] sm:$0xff] }
 0x387   :  { %v5257_v56 = vpop.eup %5256 }
 0x388   :  { %5268 = vrcp.f32 %v1550_v23  ;;  %v1553_v44 = vadd.f32 1.0, %v5257_v56  ;;  %v6617_v23 = vmul.f32 %v6539_v16, %v8344_v26  ;;  %v8345_v56 = vld [vmem:[#allocation9_spill] sm:$0xff] }
 0x389   :  { %v5259_v49 = vpop.eup %5258 }
 0x38a   :  { %v1551_v31 = vadd.f32 1.0, %v5259_v49  ;;  %v6621_v49 = vmul.f32 %v6545_v30, %v8345_v56  ;;  %v8347_v30 = vld [vmem:[#allocation15_spill] sm:$0xff] }
 0x38c   :  { %5270 = vrcp.f32 %v1551_v31  ;;  %v8346_v31 = vld [vmem:[#allocation11_spill] sm:$0xff] }
 0x38d   :  { %v5261_v40 = vpop.eup %5260  ;;  %5272 = vrcp.f32 %v1552_v20  ;;  %v1711_v20 = vrot.slane %v6613_v1, 4 }
 0x38e   :  { %v5263_v19 = vpop.eup %5262  ;;  %v1554_v63 = vadd.f32 1.0, %v5261_v40  ;;  %5274 = vrcp.f32 %v1553_v44  ;;  %v6626_v44 = vmul.f32 %v6543_v58, %v8346_v31  ;;  %v1717_v40 = vrot.slane %v6617_v23, 4 }
 0x38f   :  { %v5265_v3 = vpop.eup %5264  ;;  %v1556_v34 = vadd.f32 1.0, %v5263_v19  ;;  %v1723_v19 = vrot.slane %v6621_v49, 4  ;;  %v1712_v28 = vadd.f32 %v1711_v20, %v6613_v1 }
 0x390   :  { %5276 = vrcp.f32 %v1554_v63  ;;  %v1557_v27 = vadd.f32 1.0, %v5265_v3  ;;  %v1729_v63 = vrot.slane %v6626_v44, 4  ;;  %v1718_v16 = vadd.f32 %v1717_v40, %v6617_v23 }
 0x391   :  { %v5267_v46 = vpop.eup %5266  ;;  %v1724_v3 = vadd.f32 %v1723_v19, %v6621_v49 }
 0x392   :  { %v1555_v7 = vadd.f32 1.0, %v5267_v46  ;;  %v6636_v46 = vmul.f32 %v6547_v24, %v8347_v30 }
 0x394   :  { %5278 = vrcp.f32 %v1555_v7  ;;  %v1713_v7 = vrot.slane %v1712_v28, 2 }
 0x395   :  { %5280 = vrcp.f32 %v1556_v34  ;;  %v5269_v38 = vpop.eup %5268  ;;  %v8348_v34 = vld [vmem:[#allocation13_spill] sm:$0xff] }
 0x396   :  { %4937 = vmatprep.mubr.msk.f32.mxu0 %vm911_vm2, %v5269_v38  ;;  %5282 = vrcp.f32 %v1557_v27  ;;  %v6640_v58 = vmul.f32 %v6549_v25, %v8348_v34  ;;  %v1730_v27 = vadd.f32 %v1729_v63, %v6626_v44  ;;  %v1719_v38 = vrot.slane %v1718_v16, 2 }
 0x398   :  { %v1731_v24 = vrot.slane %v1730_v27, 2 }
 0x399   :  { %v5271_v48 = vpop.eup %5270 }
 0x39a   :  { %v5273_v21 = vpop.eup %5272  ;;  %4938 = vmatmul.mubr.msk.f32.vlgmr.msra.gmra.mxu0 %vm911_vm2, %v5271_v48  ;;  %v1725_v48 = vrot.slane %v1724_v3, 2 }
 0x39b   :  { %4940 = vmatprep.mubr.msk.f32.mxu0 %vm911_vm2, %v5273_v21  ;;  %v5275_v53 = vpop.eup %5274  ;;  %4704 = vmatpush3.bf16.msra.mxu0 %v5157_v14  ;;  %v1741_v21 = vrot.slane %v6636_v46, 4 }
 0x39c   :  { %4705 = vmatprep.subr.bf16.mxu0 %v5158_v10  ;;  %v1726_v55 = vadd.f32 %v1725_v48, %v1724_v3 }
 0x39d   :  { %v5277_v47 = vpop.eup %5276  ;;  %v1742_v25 = vadd.f32 %v1741_v21, %v6636_v46 }
 0x39e   :  { %4941 = vmatmul.mubr.msk.f32.gmra.mxu0 %vm911_vm2, %v5275_v53  ;;  %v1735_v53 = vrot.slane %v6640_v58, 4 }
 0x39f   :  { %4943 = vmatprep.mubr.msk.f32.mxu0 %vm911_vm2, %v5277_v47  ;;  %4706 = vmatpush3.bf16.msra.mxu0 %v5159_v15  ;;  %v8349_v47 = vld [vmem:[#allocation17_spill] sm:$0xff] }
 0x3a0   :  { %4707 = vmatprep.subr.bf16.mxu0 %v5160_v35  ;;  %v1736_v14 = vadd.f32 %v1735_v53, %v6640_v58  ;;  %v8350_v35 = vld [vmem:[#allocation8_spill] sm:$0xff] }
 0x3a1   :  { %v5279_v50 = vpop.eup %5278 }
 0x3a2   :  { %v5281_v9 = vpop.eup %5280  ;;  %4944 = vmatmul.mubr.msk.f32.gmra.mxu0 %vm911_vm2, %v5279_v50  ;;  %v6647_v50 = vmul.f32 %v6553_v42, %v8349_v47  ;;  %v1737_v18 = vrot.slane %v1736_v14, 2 }
 0x3a3   :  { %4946 = vmatprep.mubr.msk.f32.mxu0 %vm911_vm2, %v5281_v9  ;;  %v5283_v54 = vpop.eup %5282  ;;  %4708 = vmatpush3.bf16.msra.mxu0 %v5161_v32  ;;  %v1714_v9 = vadd.f32 %v1713_v7, %v1712_v28  ;;  %v8354_v7 = vld [vmem:[#allocation10_spill] sm:$0xff] }
 0x3a4   :  { %4709 = vmatprep.subr.bf16.mxu0 %v5162_v57  ;;  %v1747_v15 = vrot.slane %v6647_v50, 4  ;;  %v1738_v53 = vadd.f32 %v1737_v18, %v1736_v14  ;;  %v8356_v18 = vld [vmem:[#allocation14_spill] sm:$0xff] }
 0x3a5   :  { %v1715_v57 = vrot.slane %v1714_v9, 1 }
 0x3a6   :  { %4947 = vmatmul.mubr.msk.f32.gmra.mxu0 %vm911_vm2, %v5283_v54  ;;  %v1720_v54 = vadd.f32 %v1719_v38, %v1718_v16  ;;  %v1748_v56 = vadd.f32 %v1747_v15, %v6647_v50 }
 0x3a7   :  { %4710 = vmatpush3.bf16.msra.mxu0 %v5163_v0  ;;  %v1732_v0 = vadd.f32 %v1731_v24, %v1730_v27  ;;  %v1716_v19 = vadd.f32 %v1715_v57, %v1714_v9 }
 0x3a8   :  { %4711 = vmatprep.subr.bf16.mxu0 %v5164_v29  ;;  %v8351_v29 = vld [vmem:[#allocation18_spill] sm:$0xff]  ;;  %v1749_v9 = vrot.slane %v1748_v56, 2 }
 0x3a9   :  { %v6657_v42 = vmul.f32 %v6551_v60, %v8351_v29  ;;  %v8353_v60 = vld [vmem:[#allocation12_spill] sm:$0xff]  ;;  %v1733_v28 = vrot.slane %v1732_v0, 1 }
 0x3ab   :  { %4712 = vmatpush3.bf16.msra.mxu0 %v5165_v5  ;;  %v1753_v63 = vrot.slane %v6657_v42, 4  ;;  %v1734_v57 = vadd.f32 %v1733_v28, %v1732_v0 }
 0x3ac   :  { %4713 = vmatprep.subr.bf16.mxu0 %v5166_v43 }
 0x3ad   :  { %v1754_v29 = vadd.f32 %v1753_v63, %v6657_v42 }
 0x3af   :  { %4714 = vmatpush3.bf16.msra.mxu0 %v5167_v2  ;;  %v8352_v2 = vld [vmem:[#allocation5_spill] sm:$0xff]  ;;  %v1755_v63 = vrot.slane %v1754_v29, 2 }
 0x3b0   :  { %4715 = vmatprep.subr.bf16.mxu0 %v5168_v62 }
 0x3b3   :  { %4716 = vmatpush3.bf16.msra.mxu0 %v5169_v4  ;;  %v1721_v4 = vrot.slane %v1720_v54, 1 }
 0x3b4   :  { %4717 = vmatprep.subr.bf16.mxu0 %v5170_v36  ;;  %v1727_v36 = vrot.slane %v1726_v55, 1 }
 0x3b5   :  { %v1722_v38 = vadd.f32 %v1721_v4, %v1720_v54 }
 0x3b6   :  { %v1728_v48 = vadd.f32 %v1727_v36, %v1726_v55  ;;  %v1739_v36 = vrot.slane %v1738_v53, 1 }
 0x3b7   :  { %4718 = vmatpush3.bf16.msra.mxu0 %v5171_v6  ;;  %v1743_v6 = vrot.slane %v1742_v25, 2 }
 0x3b9   :  { %v6675_v21 = vadd.f32 %v1743_v6, %v1742_v25 }
 0x45a   :  { %v4939_v10 = vpop.f32.mrf.mxu0 }
 0x45b   :  { %v6653_v32 = vmul.f32 %v4939_v10, %v8350_v35  ;;  %v1816_v35 = vsel %vm1815_vm3, %v1722_v38, %v1716_v19 }
 0x45c   :  { %v1664_v5 = vpop.f32.mrf.mxu0  ;;  %v1818_v4 = vsel %vm1817_vm4, %v1728_v48, %v1816_v35 }
 0x45d   :  { %v1765_v43 = vrot.slane %v6653_v32, 4  ;;  %v6661_v62 = vmul.f32 %v1664_v5, %v8352_v2  ;;  %v8355_v5 = vld [vmem:[#allocation16_spill] sm:$0xff] }
 0x45e   :  { %v4942_v26 = vpop.f32.mrf.mxu0 }
 0x45f   :  { %v1766_v20 = vadd.f32 %v1765_v43, %v6653_v32  ;;  %v1759_v31 = vrot.slane %v6661_v62, 4  ;;  %v6667_v40 = vmul.f32 %v4942_v26, %v8353_v60  ;;  %v1750_v60 = vadd.f32 %v1749_v9, %v1748_v56 }
 0x460   :  { %v1674_v16 = vpop.f32.mrf.mxu0 }
 0x461   :  { %v1767_v3 = vrot.slane %v1766_v20, 2  ;;  %v1760_v30 = vadd.f32 %v1759_v31, %v6661_v62  ;;  %v1777_v34 = vrot.slane %v6667_v40, 4  ;;  %v6673_v27 = vmul.f32 %v1674_v16, %v8354_v7 }
 0x462   :  { %v4945_v47 = vpop.f32.mrf.mxu0  ;;  %v1745_v31 = vrot.slane %v6675_v21, 1 }
 0x463   :  { %v1761_v24 = vrot.slane %v1760_v30, 2  ;;  %v1778_v10 = vadd.f32 %v1777_v34, %v6667_v40  ;;  %v1771_v15 = vrot.slane %v6673_v27, 4  ;;  %v6682_v43 = vmul.f32 %v4945_v47, %v8355_v5 }
 0x464   :  { %v1684_v54 = vpop.f32.mrf.mxu0  ;;  %v1768_v55 = vadd.f32 %v1767_v3, %v1766_v20  ;;  %v1740_v47 = vadd.f32 %v1739_v36, %v1738_v53 }
 0x465   :  { %v1762_v25 = vadd.f32 %v1761_v24, %v1760_v30  ;;  %v1779_v14 = vrot.slane %v1778_v10, 2  ;;  %v1772_v2 = vadd.f32 %v1771_v15, %v6673_v27  ;;  %v1789_v6 = vrot.slane %v6682_v43, 4 }
 0x466   :  { %v6688_v26 = vmul.f32 %v1684_v54, %v8356_v18  ;;  %v4948_v0 = vpop.f32.mrf.mxu0  ;;  %v1769_v34 = vrot.slane %v1768_v55, 1  ;;  %v1751_v15 = vrot.slane %v1750_v60, 1  ;;  %v1756_v54 = vadd.f32 %v1755_v63, %v1754_v29 }
 0x467   :  { %v1763_v19 = vrot.slane %v1762_v25, 1  ;;  %v1773_v28 = vrot.slane %v1772_v2, 2  ;;  %v1790_v20 = vadd.f32 %v1789_v6, %v6682_v43  ;;  %v6694_v3 = vmul.f32 %v4948_v0, %v5962_v17 }
 0x468   :  { %v1783_v16 = vrot.slane %v6688_v26, 4  ;;  %v1694_v30 = vpop.f32.mrf.mxu0  ;;  %v1780_v7 = vadd.f32 %v1779_v14, %v1778_v10  ;;  %v1770_v14 = vadd.f32 %v1769_v34, %v1768_v55  ;;  %v1746_v34 = vadd.f32 %v1745_v31, %v6675_v21 }
 0x469   :  { %v1774_v38 = vadd.f32 %v1773_v28, %v1772_v2  ;;  %v6697_v48 = vmul.f32 %v1694_v30, %v5703_v12  ;;  %v1791_v56 = vrot.slane %v1790_v20, 2  ;;  %v1801_v24 = vrot.slane %v6694_v3, 4 }
 0x46a   :  { %v1784_v9 = vadd.f32 %v1783_v16, %v6688_v26  ;;  %v1764_v35 = vadd.f32 %v1763_v19, %v1762_v25  ;;  %v1781_v2 = vrot.slane %v1780_v7, 1  ;;  %v1820_v28 = vsel %vm1819_vm5, %v1734_v57, %v1818_v4 }
 0x46b   :  { %v1775_v5 = vrot.slane %v1774_v38, 1  ;;  %v1795_v17 = vrot.slane %v6697_v48, 4  ;;  %v1792_v6 = vadd.f32 %v1791_v56, %v1790_v20  ;;  %v1802_v10 = vadd.f32 %v1801_v24, %v6694_v3 }
 0x46c   :  { %v1785_v18 = vrot.slane %v1784_v9, 2  ;;  %v1752_v16 = vadd.f32 %v1751_v15, %v1750_v60  ;;  %v1838_v25 = vsel %vm1815_vm3, %v1770_v14, %v1764_v35  ;;  %v1822_v29 = vsel %vm1821_vm6, %v1740_v47, %v1820_v28  ;;  %v2025_v28 = vld [vmem:[%s8182_s7 + $0x18] sm:$0xff] }
 0x46d   :  { %v1776_v12 = vadd.f32 %v1775_v5, %v1774_v38  ;;  %v1796_v53 = vadd.f32 %v1795_v17, %v6697_v48  ;;  %v1803_v0 = vrot.slane %v1802_v10, 2  ;;  %v1793_v20 = vrot.slane %v1792_v6, 1 }
 0x46e   :  { %v1786_v36 = vadd.f32 %v1785_v18, %v1784_v9  ;;  %v1757_v38 = vrot.slane %v1756_v54, 1  ;;  %v1782_v56 = vadd.f32 %v1781_v2, %v1780_v7  ;;  %v1824_v4 = vsel %vm1823_vm7, %v1746_v34, %v1822_v29  ;;  %v6742_v29 = vld [vmem:[%s8179_s3] sm:$0xff] }
 0x46f   :  { %v1797_v19 = vrot.slane %v1796_v53, 2  ;;  %v1839_v63 = vsel %vm1817_vm4, %v1776_v12, %v1838_v25  ;;  %v1804_v55 = vadd.f32 %v1803_v0, %v1802_v10  ;;  %v1794_v15 = vadd.f32 %v1793_v20, %v1792_v6  ;;  %v2029_v6 = vld [vmem:[%s8182_s7 + $0x38] sm:$0xff]  ;;  %v2026_v0 = vld [vmem:[%s8182_s7 + $0x20] sm:$0xff]  ;;  %v2023_v25 = vld [vmem:[%s8182_s7 + $0x8] sm:$0xff]  ;;  %8357 = vst [vmem:[#allocation31_spill] sm:$0xff] %v6742_v29 }
 0x470   :  { %v1787_v30 = vrot.slane %v1786_v36, 1  ;;  %v1840_v60 = vsel %vm1819_vm5, %v1782_v56, %v1839_v63  ;;  %v1826_v47 = vsel %vm1825_vm8, %v1752_v16, %v1824_v4  ;;  %v1758_v17 = vadd.f32 %v1757_v38, %v1756_v54  ;;  %v2028_v54 = vld [vmem:[%s8182_s7 + $0x30] sm:$0xff]  ;;  %2058 = vmatprep.subr.mxu0 %v2029_v6 }
 0x471   :  { %v1798_v9 = vadd.f32 %v1797_v19, %v1796_v53  ;;  %v1805_v5 = vrot.slane %v1804_v55, 1  ;;  %v2027_v53 = vld [vmem:[%s8182_s7 + $0x28] sm:$0xff]  ;;  %v2024_v16 = vld [vmem:[%s8182_s7 + $0x10] sm:$0xff]  ;;  %v2022_v19 = vld [vmem:[%s8182_s7] sm:$0xff] }
 0x472   :  { %v1788_v24 = vadd.f32 %v1787_v30, %v1786_v36  ;;  %v1828_v31 = vsel %vm1827_vm9, %v1758_v17, %v1826_v47  ;;  %v5375_v36 = vmov 0.0  }
 0x473   :  { %v1799_v57 = vrot.slane %v1798_v9, 1  ;;  %v1806_v10 = vadd.f32 %v1805_v5, %v1804_v55  ;;  %v1846_v12 = vpack.c.bf16 %v1828_v31, %v1828_v31  ;;  %v5376_v5 = vmov 1966171168  }
 0x474   :  { %v1841_v35 = vsel %vm1821_vm6, %v1788_v24, %v1840_v60  ;;  %v8358_v60 = vld [vmem:[#allocation6_spill] sm:$0xff] }
 0x475   :  { %v1800_v18 = vadd.f32 %v1799_v57, %v1798_v9  ;;  %v1842_v21 = vsel %vm1823_vm7, %v1794_v15, %v1841_v35  ;;  %v2108_v57 = vunpack.c.l.s4 %v5376_v5 }
 0x477   :  { %v1843_v7 = vsel %vm1825_vm8, %v1800_v18, %v1842_v21  ;;  %v2109_v4 = vunpack.c.0.s8 %v2108_v57 }
 0x478   :  { %v1844_v14 = vsel %vm1827_vm9, %v1806_v10, %v1843_v7 }
 0x479   :  { %v1847_v2 = vpack.c.bf16 %v1844_v14, %v1844_v14  ;;  %v2112_v15 = vsub.s32 %v2109_v4, %v8358_v60  ;;  %v8363_v60 = vld [vmem:[#allocation30_spill] sm:$0xff] }
 0x47b   :  { %2008 = vmatprep.mubr.bf16.mxu0 %v1847_v2 }
 0x47c   :  { %2009 = vmatmul.mubr.bf16.vlgmr.msra.gmra.mxu0 %v1846_v12 }
 0x47d   :  { %2098 = vmatprep.mubr.f32.mxu0 %v5375_v36  ;;  %2059 = vmatpush1.msra.mxu0 %v2028_v54 }
 0x47e   :  { %2060 = vmatprep.subr.mxu0 %v2027_v53 }
 0x47f   :  { %2061 = vmatpush1.msra.mxu0 %v2026_v0 }
 0x480   :  { %2062 = vmatprep.subr.mxu0 %v2025_v28 }
 0x481   :  { %2063 = vmatpush1.msra.mxu0 %v2024_v16 }
 0x482   :  { %2064 = vmatprep.subr.mxu0 %v2023_v25 }
 0x483   :  { %2065 = vmatpush1.msra.mxu0 %v2022_v19 }
 0x484   :  { %4973 = vmatprep.subr.mxu0 %v6742_v29 }
 0x53c   :  { %v4719_v63 = vpop.f32.mrf.mxu0 }
 0x53e   :  { %v4720_v20 = vpop.f32.mrf.mxu0 }
 0x53f   :  { %v4721_v30 = vadd.f32 %v4720_v20, %v4719_v63 }
 0x540   :  { %v4722_v55 = vpop.f32.mrf.mxu0 }
 0x541   :  { %v4575_v34 = vmul.f32 -1.442695, %v4721_v30 }
 0x542   :  { %v4723_v38 = vpop.f32.mrf.mxu0 }
 0x543   :  { %5284 = vpow2.f32 %v4575_v34 }
 0x550   :  { %v5285_v56 = vpop.eup %5284 }
 0x551   :  { %v2019_v9 = vadd.f32 1.0, %v5285_v56 }
 0x553   :  { %5286 = vrcp.f32 %v2019_v9 }
 0x560   :  { %v5287_v24 = vpop.eup %5286 }
 0x561   :  { %4576 = vmatmul.mubr.msk.f32.vlgmr.msra.gmra.mxu0 %vm2030_vm10, %v5287_v24 }
 0x562   :  { %4974 = vmatpush3.msra.mxu0 %v6742_v29 }
 0x621   :  { %v2100_v47 = vpop.f32.mrf.mxu0 }
 0x622   :  { %v2113_v35 = vrot.slane %v2100_v47, %v2112_v15  ;;  %v2106_v10 = vcombine.high %v2100_v47, %v2100_v47 }
 0x623   :  { %v2102_v17 = vpop.f32.mrf.mxu0 }
 0x624   :  { %v2204_v18 = vcombine.high %v2102_v17, %v2102_v17  ;;  %v2121_v21 = vcombine.high %v2113_v35, %v2113_v35  ;;  %v2211_v31 = vrot.slane %v2102_v17, %v2112_v15  ;;  %v2129_v14 = vrot.slane %v2113_v35, %v2112_v15 }
 0x625   :  { %v2120_v2 = vrot.slane %v2106_v10, %v2112_v15 }
 0x626   :  { %v2218_v7 = vrot.slane %v2204_v18, %v2112_v15  ;;  %v2143_v12 = vrot.slane %v2121_v21, %v2112_v15  ;;  %v2219_v6 = vcombine.high %v2211_v31, %v2211_v31  ;;  %v2227_v54 = vrot.slane %v2211_v31, %v2112_v15 }
 0x627   :  { %v2158_v36 = vrot.slane %v2129_v14, %v8301_v59  ;;  %v2122_v0 = vcombine.high %v2120_v2, %v2120_v2  ;;  %v2136_v34 = vrot.slane %v2120_v2, %v2112_v15  ;;  %v2151_v38 = vcombine.high %v2129_v14, %v2129_v14 }
 0x628   :  { %v2220_v53 = vcombine.high %v2218_v7, %v2218_v7  ;;  %v2162_v28 = vrot.slane %v2143_v12, %v8301_v59  ;;  %v2241_v16 = vrot.slane %v2219_v6, %v2112_v15  ;;  %v2249_v25 = vcombine.high %v2227_v54, %v2227_v54 }
 0x629   :  { %v2256_v19 = vrot.slane %v2227_v54, %v8301_v59  ;;  %v2234_v63 = vrot.slane %v2218_v7, %v2112_v15  ;;  %v2195_v56 = vmul.f32 %v2158_v36, %v6613_v1  ;;  %v2150_v24 = vrot.slane %v2122_v0, %v2112_v15 }
 0x62a   :  { %v2248_v20 = vrot.slane %v2220_v53, %v2112_v15  ;;  %v2251_v30 = vcombine.high %v2241_v16, %v2241_v16  ;;  %v2260_v55 = vrot.slane %v2241_v16, %v8301_v59  ;;  %v2153_v5 = vcombine.high %v2143_v12, %v2143_v12 }
 0x62b   :  { %v2293_v9 = vmul.f32 %v2256_v19, %v6661_v62  ;;  %v2196_v57 = vmul.f32 %v2162_v28, %v6617_v23  ;;  %v2264_v47 = vrot.slane %v2249_v25, %v8301_v59  ;;  %v2250_v17 = vcombine.high %v2234_v63, %v2234_v63 }
 0x62c   :  { %v2294_v4 = vmul.f32 %v2260_v55, %v6653_v32  ;;  %v2252_v18 = vcombine.high %v2248_v20, %v2248_v20  ;;  %v2268_v10 = vrot.slane %v2251_v30, %v8301_v59  ;;  %v2166_v1 = vrot.slane %v2151_v38, %v8301_v59 }
 0x62d   :  { %v6756_v35 = vadd.f32 %v2293_v9, %v2195_v56  ;;  %v2152_v62 = vcombine.high %v2136_v34, %v2136_v34  ;;  %v2154_v15 = vcombine.high %v2150_v24, %v2150_v24  ;;  %v2170_v23 = vrot.slane %v2153_v5, %v8301_v59 }
 0x62e   :  { %v6759_v21 = vadd.f32 %v2294_v4, %v2196_v57  ;;  %v2295_v32 = vmul.f32 %v2264_v47, %v6673_v27  ;;  %v2280_v31 = vrot.slane %v2250_v17, %v8301_v59  ;;  %v2284_v7 = vrot.slane %v2252_v18, %v8301_v59 }
 0x62f   :  { %2409 = vrot.lane.b32.xlu0 %v6756_v35, %s5373_s15  ;;  %v2296_v14 = vmul.f32 %v2268_v10, %v6667_v40  ;;  %v2197_v2 = vmul.f32 %v2166_v1, %v6621_v49  ;;  %v2182_v12 = vrot.slane %v2152_v62, %v8301_v59  ;;  %v2186_v6 = vrot.slane %v2154_v15, %v8301_v59 }
 0x630   :  { %2411 = vrot.lane.b32.xlu1 %v6759_v21, %s5373_s15  ;;  %v2198_v54 = vmul.f32 %v2170_v23, %v6626_v44  ;;  %v2272_v27 = vrot.slane %v2234_v63, %v8301_v59  ;;  %v2276_v40 = vrot.slane %v2248_v20, %v8301_v59  ;;  %v2299_v49 = vmul.f32 %v2280_v31, %v6697_v48 }
 0x631   :  { %v6780_v53 = vadd.f32 %v2295_v32, %v2197_v2  ;;  %v2300_v36 = vmul.f32 %v2284_v7, %v6694_v3  ;;  %v2174_v28 = vrot.slane %v2136_v34, %v8301_v59  ;;  %v2178_v44 = vrot.slane %v2150_v24, %v8301_v59  ;;  %v6799_v3 = vld [vmem:[%s8178_s11 + $0x20] sm:$0xff] }
 0x632   :  { %v6785_v0 = vadd.f32 %v2296_v14, %v2198_v54  ;;  %v2201_v16 = vmul.f32 %v2182_v12, %v6647_v50  ;;  %v2202_v25 = vmul.f32 %v2186_v6, %v6657_v42  ;;  %v2297_v48 = vmul.f32 %v2272_v27, %v6688_v26  ;;  %v8359_v26 = vld [vmem:[#allocation28_spill] sm:$0xff] }
 0x633   :  { %2465 = vrot.lane.b32.xlu0 %v6756_v35, %s5374_s16  ;;  %v2298_v19 = vmul.f32 %v2276_v40, %v6682_v43  ;;  %v2199_v50 = vmul.f32 %v2174_v28, %v6640_v58  ;;  %v2200_v42 = vmul.f32 %v2178_v44, %v6636_v46  ;;  %v6814_v30 = vrot.slane %v6799_v3, %v8359_v26 }
 0x634   :  { %2467 = vrot.lane.b32.xlu1 %v6759_v21, %s5374_s16  ;;  %v6802_v63 = vadd.f32 %v2299_v49, %v2201_v16  ;;  %v6804_v20 = vadd.f32 %v2300_v36, %v2202_v25  ;;  %v2309_v46 = vrot.slane %v6756_v35, 7  ;;  %v2310_v38 = vrot.slane %v6759_v21, 7 }
 0x635   :  { %v6816_v55 = vadd.f32 %v2297_v48, %v2199_v50  ;;  %v6818_v43 = vadd.f32 %v2298_v19, %v2200_v42  ;;  %v2501_v24 = vrot.slane %v6756_v35, 1  ;;  %v2502_v5 = vrot.slane %v6759_v21, 1 }
 0x636   :  { %v6822_v34 = vmul.f32 %v6814_v30, %v6802_v63  ;;  %v6826_v58 = vmul.f32 %v6814_v30, %v6804_v20  ;;  %v6840_v56 = vsel %vm78_vm0, %v2309_v46, 0.0  ;;  %v6846_v9 = vsel %vm78_vm0, %v2310_v38, 0.0 }
 0x637   :  { %2413 = vrot.lane.b32.xlu0 %v6780_v53, %s5373_s15  ;;  %v6858_v57 = vsel %vm79_vm1, %v2501_v24, 0.0  ;;  %v6864_v4 = vsel %vm79_vm1, %v2502_v5, 0.0  ;;  %v2311_v47 = vrot.slane %v6780_v53, 7  ;;  %v2312_v17 = vrot.slane %v6785_v0, 7 }
 0x638   :  { %2415 = vrot.lane.b32.xlu1 %v6785_v0, %s5373_s15  ;;  %8360 = vst [vmem:[#allocation2_spill] sm:$0xff] %v6826_v58  ;;  %v2503_v1 = vrot.slane %v6780_v53, 1  ;;  %v2504_v62 = vrot.slane %v6785_v0, 1  ;;  %v2313_v32 = vrot.slane %v6816_v55, 7  ;;  %v2314_v31 = vrot.slane %v6818_v43, 7 }
 0x639   :  { %v6884_v18 = vsel %vm78_vm0, %v2311_v47, 0.0  ;;  %v6890_v10 = vsel %vm78_vm0, %v2312_v17, 0.0  ;;  %v2505_v2 = vrot.slane %v6816_v55, 1  ;;  %v2506_v12 = vrot.slane %v6818_v43, 1 }
 0x63a   :  { %v6902_v15 = vsel %vm79_vm1, %v2503_v1, 0.0  ;;  %v6908_v23 = vsel %vm79_vm1, %v2504_v62, 0.0  ;;  %v6920_v7 = vsel %vm78_vm0, %v2313_v32, 0.0  ;;  %v6926_v14 = vsel %vm78_vm0, %v2314_v31, 0.0 }
 0x63b   :  { %2469 = vrot.lane.b32.xlu0 %v6780_v53, %s5374_s16  ;;  %v6938_v6 = vsel %vm79_vm1, %v2505_v2, 0.0  ;;  %v6944_v54 = vsel %vm79_vm1, %v2506_v12, 0.0  ;;  %v2315_v27 = vrot.slane %v6802_v63, 7  ;;  %v2316_v40 = vrot.slane %v6804_v20, 7 }
 0x63c   :  { %2471 = vrot.lane.b32.xlu1 %v6785_v0, %s5374_s16  ;;  %v2507_v28 = vrot.slane %v6802_v63, 1  ;;  %v2508_v44 = vrot.slane %v6804_v20, 1  ;;  %v7006_v1 = vrot.slane %v6799_v3, %v8301_v59  ;;  %v7010_v62 = vrot.slane %v6799_v3, %v8323_v11 }
 0x63d   :  { %v6956_v49 = vsel %vm78_vm0, %v2315_v27, 0.0  ;;  %v6962_v36 = vsel %vm78_vm0, %v2316_v40, 0.0  ;;  %v7015_v12 = vrot.slane %v6799_v3, %v8338_v22  ;;  %v7020_v40 = vrot.slane %v6799_v3, %v8340_v33 }
 0x63e   :  { %v6974_v16 = vsel %vm79_vm1, %v2507_v28, 0.0  ;;  %v6980_v25 = vsel %vm79_vm1, %v2508_v44, 0.0  ;;  %v2357_v28 = vmul.f32 %v7010_v62, %v6840_v56  ;;  %v2358_v44 = vmul.f32 %v7010_v62, %v6846_v9 }
 0x63f   :  { %2417 = vrot.lane.b32.xlu0 %v6816_v55, %s5373_s15  ;;  %8361 = vst [vmem:[#allocation24_spill] sm:$0xff] %v6974_v16  ;;  %8362 = vst [vmem:[#allocation38_spill] sm:$0xff] %v6980_v25  ;;  %v7031_v33 = vrot.slane %v6799_v3, %v8363_v60 }
 0x640   :  { %2419 = vrot.lane.b32.xlu1 %v6818_v43, %s5373_s15 }
 0x643   :  { %2473 = vrot.lane.b32.xlu0 %v6816_v55, %s5374_s16 }
 0x644   :  { %2475 = vrot.lane.b32.xlu1 %v6818_v43, %s5374_s16 }
 0x647   :  { %2325 = vrot.lane.b32.xlu0 %v6840_v56, %s5373_s15 }
 0x648   :  { %2327 = vrot.lane.b32.xlu1 %v6846_v9, %s5373_s15 }
 0x64b   :  { %2373 = vrot.lane.b32.xlu0 %v6840_v56, %s5374_s16 }
 0x64c   :  { %2375 = vrot.lane.b32.xlu1 %v6846_v9, %s5374_s16 }
 0x64f   :  { %2517 = vrot.lane.b32.xlu0 %v6858_v57, %s5373_s15 }
 0x650   :  { %2519 = vrot.lane.b32.xlu1 %v6864_v4, %s5373_s15 }
 0x653   :  { %2573 = vrot.lane.b32.xlu0 %v6858_v57, %s5374_s16 }
 0x654   :  { %2575 = vrot.lane.b32.xlu1 %v6864_v4, %s5374_s16 }
 0x657   :  { %2421 = vrot.lane.b32.xlu0 %v6802_v63, %s5373_s15 }
 0x658   :  { %2423 = vrot.lane.b32.xlu1 %v6804_v20, %s5373_s15 }
 0x65b   :  { %2477 = vrot.lane.b32.xlu0 %v6802_v63, %s5374_s16 }
 0x65c   :  { %2479 = vrot.lane.b32.xlu1 %v6804_v20, %s5374_s16 }
 0x65f   :  { %2329 = vrot.lane.b32.xlu0 %v6884_v18, %s5373_s15 }
 0x660   :  { %2331 = vrot.lane.b32.xlu1 %v6890_v10, %s5373_s15 }
 0x663   :  { %2377 = vrot.lane.b32.xlu0 %v6884_v18, %s5374_s16 }
 0x664   :  { %2379 = vrot.lane.b32.xlu1 %v6890_v10, %s5374_s16 }
 0x667   :  { %2521 = vrot.lane.b32.xlu0 %v6902_v15, %s5373_s15 }
 0x668   :  { %2523 = vrot.lane.b32.xlu1 %v6908_v23, %s5373_s15 }
 0x66b   :  { %2577 = vrot.lane.b32.xlu0 %v6902_v15, %s5374_s16 }
 0x66c   :  { %2579 = vrot.lane.b32.xlu1 %v6908_v23, %s5374_s16 }
 0x66f   :  { %2333 = vrot.lane.b32.xlu0 %v6920_v7, %s5373_s15 }
 0x670   :  { %2335 = vrot.lane.b32.xlu1 %v6926_v14, %s5373_s15 }
 0x673   :  { %2381 = vrot.lane.b32.xlu0 %v6920_v7, %s5374_s16 }
 0x674   :  { %2383 = vrot.lane.b32.xlu1 %v6926_v14, %s5374_s16 }
 0x677   :  { %2525 = vrot.lane.b32.xlu0 %v6938_v6, %s5373_s15 }
 0x678   :  { %2527 = vrot.lane.b32.xlu1 %v6944_v54, %s5373_s15 }
 0x67b   :  { %2581 = vrot.lane.b32.xlu0 %v6938_v6, %s5374_s16 }
 0x67c   :  { %2583 = vrot.lane.b32.xlu1 %v6944_v54, %s5374_s16 }
 0x67f   :  { %2337 = vrot.lane.b32.xlu0 %v6956_v49, %s5373_s15 }
 0x680   :  { %2339 = vrot.lane.b32.xlu1 %v6962_v36, %s5373_s15 }
 0x683   :  { %2385 = vrot.lane.b32.xlu0 %v6956_v49, %s5374_s16 }
 0x684   :  { %2387 = vrot.lane.b32.xlu1 %v6962_v36, %s5374_s16 }
 0x687   :  { %2529 = vrot.lane.b32.xlu0 %v6974_v16, %s5373_s15 }
 0x688   :  { %2531 = vrot.lane.b32.xlu1 %v6980_v25, %s5373_s15 }
 0x68b   :  { %2585 = vrot.lane.b32.xlu0 %v6974_v16, %s5374_s16 }
 0x68c   :  { %2587 = vrot.lane.b32.xlu1 %v6980_v25, %s5374_s16 }
 0x6a1   :  { %v2410_v48 = vpop.permute.xlu0 %2409 }
 0x6a2   :  { %v2412_v19 = vpop.permute.xlu1 %2411 }
 0x6a3   :  { %v2430_v56 = vmul.f32 %v7020_v40, %v2412_v19  ;;  %v8364_v19 = vld [vmem:[#allocation33_spill] sm:$0xff] }
 0x6a5   :  { %v2466_v63 = vpop.permute.xlu0 %2465 }
 0x6a6   :  { %v2468_v20 = vpop.permute.xlu1 %2467 }
 0x6a9   :  { %v6988_v50 = vpop.permute.xlu0 %2413 }
 0x6aa   :  { %v6990_v42 = vpop.permute.xlu1 %2415 }
 0x6ad   :  { %v6992_v46 = vpop.permute.xlu0 %2469 }
 0x6ae   :  { %v6994_v38 = vpop.permute.xlu1 %2471 }
 0x6b1   :  { %v6996_v24 = vpop.permute.xlu0 %2417 }
 0x6b2   :  { %v6998_v5 = vpop.permute.xlu1 %2419 }
 0x6b5   :  { %v7000_v47 = vpop.permute.xlu0 %2473 }
 0x6b6   :  { %v7002_v17 = vpop.permute.xlu1 %2475 }
 0x6b9   :  { %v2326_v32 = vpop.permute.xlu0 %2325 }
 0x6ba   :  { %v2345_v31 = vmul.f32 %v7006_v1, %v2326_v32  ;;  %v2328_v2 = vpop.permute.xlu1 %2327 }
 0x6bb   :  { %v2346_v27 = vmul.f32 %v7006_v1, %v2328_v2  ;;  %v2429_v2 = vmul.f32 %v7020_v40, %v2410_v48  ;;  %v2450_v48 = vmul.f32 %v6814_v30, %v6759_v21 }
 0x6bc   :  { %v2365_v29 = vadd.f32 %v2357_v28, %v2345_v31  ;;  %v2449_v31 = vmul.f32 %v6814_v30, %v6756_v35 }
 0x6bd   :  { %v2374_v26 = vpop.permute.xlu0 %2373  ;;  %v2366_v8 = vadd.f32 %v2358_v44, %v2346_v27 }
 0x6be   :  { %v2393_v32 = vmul.f32 %v7015_v12, %v2374_v26  ;;  %v2376_v61 = vpop.permute.xlu1 %2375  ;;  %v7038_v26 = vrot.slane %v6799_v3, %v8321_v51 }
 0x6bf   :  { %v2394_v22 = vmul.f32 %v7015_v12, %v2376_v61 }
 0x6c0   :  { %v2401_v25 = vadd.f32 %v2393_v32, %v2365_v29  ;;  %v72_v29 = vld [vmem:[%s8178_s11 + $0x28] sm:$0xff] }
 0x6c1   :  { %v2402_v16 = vadd.f32 %v2394_v22, %v2366_v8  ;;  %v2518_v58 = vpop.permute.xlu0 %2517  ;;  %v7047_v22 = vrot.slane %v6799_v3, %v8364_v19  ;;  %v2485_v8 = vmul.f32 %v7031_v33, %v2466_v63  ;;  %v7053_v21 = vrot.slane %v72_v29, %v8301_v59 }
 0x6c2   :  { %v2437_v9 = vadd.f32 %v2429_v2, %v2401_v25  ;;  %v2520_v61 = vpop.permute.xlu1 %2519  ;;  %v2486_v25 = vmul.f32 %v7031_v33, %v2468_v20 }
 0x6c3   :  { %v2438_v27 = vadd.f32 %v2430_v56, %v2402_v16  ;;  %v2537_v16 = vmul.f32 %v7038_v26, %v2518_v58  ;;  %v2538_v51 = vmul.f32 %v7038_v26, %v2520_v61  ;;  %v2557_v3 = vmul.f32 %v7047_v22, %v6858_v57 }
 0x6c4   :  { %v2457_v35 = vadd.f32 %v2449_v31, %v2437_v9  ;;  %v2558_v63 = vmul.f32 %v7047_v22, %v6864_v4  ;;  %v7063_v58 = vrot.slane %v72_v29, %v8323_v11 }
 0x6c5   :  { %v2458_v28 = vadd.f32 %v2450_v48, %v2438_v27  ;;  %v2574_v44 = vpop.permute.xlu0 %2573 }
 0x6c6   :  { %v2493_v32 = vadd.f32 %v2485_v8, %v2457_v35  ;;  %v2576_v2 = vpop.permute.xlu1 %2575  ;;  %v2593_v27 = vmul.f32 %v7053_v21, %v2574_v44 }
 0x6c7   :  { %v2494_v56 = vadd.f32 %v2486_v25, %v2458_v28  ;;  %v2594_v61 = vmul.f32 %v7053_v21, %v2576_v2 }
 0x6c8   :  { %v2545_v19 = vadd.f32 %v2537_v16, %v2493_v32 }
 0x6c9   :  { %v2546_v20 = vadd.f32 %v2538_v51, %v2494_v56  ;;  %v7060_v9 = vpop.permute.xlu0 %2421  ;;  %v2359_v56 = vmul.f32 %v7010_v62, %v6884_v18  ;;  %v2431_v18 = vmul.f32 %v7020_v40, %v6988_v50  ;;  %v2488_v50 = vmul.f32 %v7031_v33, %v6994_v38 }
 0x6ca   :  { %v2565_v31 = vadd.f32 %v2557_v3, %v2545_v19  ;;  %v7066_v48 = vpop.permute.xlu1 %2423 }
 0x6cb   :  { %v2566_v8 = vadd.f32 %v2558_v63, %v2546_v20 }
 0x6cc   :  { %v2601_v35 = vadd.f32 %v2593_v27, %v2565_v31 }
 0x6cd   :  { %v2602_v57 = vadd.f32 %v2594_v61, %v2566_v8  ;;  %v7069_v25 = vpop.permute.xlu0 %2477 }
 0x6ce   :  { %v2613_v4 = vadd.f32 %v7063_v58, %v2601_v35  ;;  %v7072_v51 = vpop.permute.xlu1 %2479 }
 0x6cf   :  { %v2614_v19 = vadd.f32 %v7063_v58, %v2602_v57 }
 0x6d0   :  { %v7076_v29 = vmul.f32 %v2613_v4, %v6525_v41  ;;  %v2360_v41 = vmul.f32 %v7010_v62, %v6890_v10  ;;  %v2432_v10 = vmul.f32 %v7020_v40, %v6990_v42  ;;  %v2451_v4 = vmul.f32 %v6814_v30, %v6780_v53 }
 0x6d1   :  { %v7079_v28 = vmul.f32 %v2614_v19, %v6529_v13  ;;  %v2330_v44 = vpop.permute.xlu0 %2329 }
 0x6d2   :  { %v2347_v32 = vmul.f32 %v7006_v1, %v2330_v44  ;;  %2729 = vrot.lane.b32.xlu0 %v7076_v29, %s5373_s15  ;;  %v2332_v16 = vpop.permute.xlu1 %2331 }
 0x6d3   :  { %v2348_v2 = vmul.f32 %v7006_v1, %v2332_v16  ;;  %2731 = vrot.lane.b32.xlu1 %v7079_v28, %s5373_s15  ;;  %v2487_v16 = vmul.f32 %v7031_v33, %v6992_v46  ;;  %v2560_v46 = vmul.f32 %v7047_v22, %v6908_v23  ;;  %v2362_v23 = vmul.f32 %v7010_v62, %v6926_v14 }
 0x6d4   :  { %v2367_v3 = vadd.f32 %v2359_v56, %v2347_v32  ;;  %v2452_v32 = vmul.f32 %v6814_v30, %v6785_v0  ;;  %v2434_v14 = vmul.f32 %v7020_v40, %v6998_v5 }
 0x6d5   :  { %v2378_v13 = vpop.permute.xlu0 %2377  ;;  %v2368_v31 = vadd.f32 %v2360_v41, %v2348_v2 }
 0x6d6   :  { %v2395_v63 = vmul.f32 %v7015_v12, %v2378_v13  ;;  %2785 = vrot.lane.b32.xlu0 %v7076_v29, %s5374_s16  ;;  %v2380_v20 = vpop.permute.xlu1 %2379 }
 0x6d7   :  { %v2396_v27 = vmul.f32 %v7015_v12, %v2380_v20  ;;  %2787 = vrot.lane.b32.xlu1 %v7079_v28, %s5374_s16  ;;  %v2559_v20 = vmul.f32 %v7047_v22, %v6902_v15  ;;  %v2361_v15 = vmul.f32 %v7010_v62, %v6920_v7 }
 0x6d8   :  { %v2403_v8 = vadd.f32 %v2395_v63, %v2367_v3 }
 0x6d9   :  { %v2404_v61 = vadd.f32 %v2396_v27, %v2368_v31  ;;  %v2522_v35 = vpop.permute.xlu0 %2521 }
 0x6da   :  { %v2439_v57 = vadd.f32 %v2431_v18, %v2403_v8  ;;  %v2524_v19 = vpop.permute.xlu1 %2523  ;;  %v2539_v13 = vmul.f32 %v7038_v26, %v2522_v35 }
 0x6db   :  { %v2440_v44 = vadd.f32 %v2432_v10, %v2404_v61  ;;  %v2540_v53 = vmul.f32 %v7038_v26, %v2524_v19 }
 0x6dc   :  { %v2459_v2 = vadd.f32 %v2451_v4, %v2439_v57 }
 0x6dd   :  { %v2460_v56 = vadd.f32 %v2452_v32, %v2440_v44  ;;  %v2578_v42 = vpop.permute.xlu0 %2577 }
 0x6de   :  { %v2495_v41 = vadd.f32 %v2487_v16, %v2459_v2  ;;  %v2580_v3 = vpop.permute.xlu1 %2579  ;;  %v2595_v38 = vmul.f32 %v7053_v21, %v2578_v42 }
 0x6df   :  { %v2496_v63 = vadd.f32 %v2488_v50, %v2460_v56  ;;  %v2596_v35 = vmul.f32 %v7053_v21, %v2580_v3 }
 0x6e0   :  { %v2547_v0 = vadd.f32 %v2539_v13, %v2495_v41  ;;  %v2433_v13 = vmul.f32 %v7020_v40, %v6996_v24 }
 0x6e1   :  { %v2548_v31 = vadd.f32 %v2540_v53, %v2496_v63  ;;  %v2334_v27 = vpop.permute.xlu0 %2333 }
 0x6e2   :  { %v2567_v18 = vadd.f32 %v2559_v20, %v2547_v0  ;;  %v2349_v8 = vmul.f32 %v7006_v1, %v2334_v27  ;;  %v2336_v10 = vpop.permute.xlu1 %2335  ;;  %v2490_v27 = vmul.f32 %v7031_v33, %v7002_v17  ;;  %v2562_v17 = vmul.f32 %v7047_v22, %v6944_v54 }
 0x6e3   :  { %v2568_v61 = vadd.f32 %v2560_v46, %v2548_v31  ;;  %v2350_v57 = vmul.f32 %v7006_v1, %v2336_v10  ;;  %v2453_v46 = vmul.f32 %v6814_v30, %v6816_v55 }
 0x6e4   :  { %v2603_v4 = vadd.f32 %v2595_v38, %v2567_v18  ;;  %v2369_v16 = vadd.f32 %v2361_v15, %v2349_v8 }
 0x6e5   :  { %v2604_v19 = vadd.f32 %v2596_v35, %v2568_v61  ;;  %v2382_v44 = vpop.permute.xlu0 %2381  ;;  %v2370_v42 = vadd.f32 %v2362_v23, %v2350_v57  ;;  %v2363_v23 = vmul.f32 %v7010_v62, %v6956_v49 }
 0x6e6   :  { %v2615_v32 = vadd.f32 %v7063_v58, %v2603_v4  ;;  %v2397_v2 = vmul.f32 %v7015_v12, %v2382_v44  ;;  %v2384_v50 = vpop.permute.xlu1 %2383 }
 0x6e7   :  { %v2616_v56 = vadd.f32 %v7063_v58, %v2604_v19  ;;  %v2398_v41 = vmul.f32 %v7015_v12, %v2384_v50 }
 0x6e8   :  { %v7130_v7 = vmul.f32 %v6523_v37, %v2615_v32  ;;  %v2405_v3 = vadd.f32 %v2397_v2, %v2369_v16  ;;  %v2454_v37 = vmul.f32 %v6814_v30, %v6818_v43  ;;  %v2364_v2 = vmul.f32 %v7010_v62, %v6962_v36 }
 0x6e9   :  { %v7135_v63 = vmul.f32 %v6527_v39, %v2616_v56  ;;  %v2406_v53 = vadd.f32 %v2398_v41, %v2370_v42  ;;  %v2526_v20 = vpop.permute.xlu0 %2525  ;;  %v2489_v39 = vmul.f32 %v7031_v33, %v7000_v47  ;;  %v2561_v47 = vmul.f32 %v7047_v22, %v6938_v6 }
 0x6ea   :  { %v2441_v0 = vadd.f32 %v2433_v13, %v2405_v3  ;;  %2733 = vrot.lane.b32.xlu0 %v7130_v7, %s5373_s15  ;;  %v2528_v24 = vpop.permute.xlu1 %2527  ;;  %v2541_v8 = vmul.f32 %v7038_v26, %v2526_v20  ;;  %v2436_v62 = vmul.f32 %v7020_v40, %v7066_v48 }
 0x6eb   :  { %v2442_v31 = vadd.f32 %v2434_v14, %v2406_v53  ;;  %2735 = vrot.lane.b32.xlu1 %v7135_v63, %s5373_s15  ;;  %v2542_v43 = vmul.f32 %v7038_v26, %v2528_v24 }
 0x6ec   :  { %v2461_v5 = vadd.f32 %v2453_v46, %v2441_v0 }
 0x6ed   :  { %v2462_v18 = vadd.f32 %v2454_v37, %v2442_v31  ;;  %v2582_v55 = vpop.permute.xlu0 %2581 }
 0x6ee   :  { %v2497_v38 = vadd.f32 %v2489_v39, %v2461_v5  ;;  %2789 = vrot.lane.b32.xlu0 %v7130_v7, %s5374_s16  ;;  %v2584_v10 = vpop.permute.xlu1 %2583  ;;  %v2597_v15 = vmul.f32 %v7053_v21, %v2582_v55  ;;  %v2629_v39 = vrot.slane %v7076_v29, 7 }
 0x6ef   :  { %v2498_v30 = vadd.f32 %v2490_v27, %v2462_v18  ;;  %2791 = vrot.lane.b32.xlu1 %v7135_v63, %s5374_s16  ;;  %v2598_v16 = vmul.f32 %v7053_v21, %v2584_v10  ;;  %v2630_v18 = vrot.slane %v7079_v28, 7  ;;  %v8367_v10 = vld [vmem:[#allocation38_spill] sm:$0xff] }
 0x6f0   :  { %v2549_v61 = vadd.f32 %v2541_v8, %v2497_v38 }
 0x6f1   :  { %v2550_v35 = vadd.f32 %v2542_v43, %v2498_v30  ;;  %v2338_v57 = vpop.permute.xlu0 %2337  ;;  %v2564_v30 = vmul.f32 %v7047_v22, %v8367_v10 }
 0x6f2   :  { %v2569_v4 = vadd.f32 %v2561_v47, %v2549_v61  ;;  %v2351_v19 = vmul.f32 %v7006_v1, %v2338_v57  ;;  %v2340_v44 = vpop.permute.xlu1 %2339  ;;  %v7205_v61 = vsel %vm78_vm0, %v2629_v39, 0.0 }
 0x6f3   :  { %v2570_v32 = vadd.f32 %v2562_v17, %v2550_v35  ;;  %v2352_v6 = vmul.f32 %v7006_v1, %v2340_v44  ;;  %v2435_v1 = vmul.f32 %v7020_v40, %v7060_v9  ;;  %v8365_v40 = vld [vmem:[#allocation2_spill] sm:$0xff]  ;;  %v7212_v35 = vsel %vm78_vm0, %v2630_v18, 0.0 }
 0x6f4   :  { %v2605_v54 = vadd.f32 %v2597_v15, %v2569_v4  ;;  %v2371_v50 = vadd.f32 %v2363_v23, %v2351_v19  ;;  %v2821_v19 = vrot.slane %v7076_v29, 1  ;;  %v2822_v44 = vrot.slane %v7079_v28, 1 }
 0x6f5   :  { %v2606_v56 = vadd.f32 %v2598_v16, %v2570_v32  ;;  %v2372_v42 = vadd.f32 %v2364_v2, %v2352_v6  ;;  %v2386_v41 = vpop.permute.xlu0 %2385  ;;  %v7251_v6 = vld [vmem:[%s8183_s2 + $0x30] sm:$0xff]   ;;  %v8369_v2 = vld [vmem:[#allocation25_spill] sm:$0xff] }
 0x6f6   :  { %v2617_v13 = vadd.f32 %v7063_v58, %v2605_v54  ;;  %v2399_v3 = vmul.f32 %v7015_v12, %v2386_v41  ;;  %v2388_v14 = vpop.permute.xlu1 %2387  ;;  %v7233_v16 = vsel %vm79_vm1, %v2822_v44, 0.0  ;;  %v7270_v41 = vld [vmem:[%s8183_s2 + $0x28] sm:$0xff]  }
 0x6f7   :  { %v2618_v49 = vadd.f32 %v7063_v58, %v2606_v56  ;;  %v2400_v53 = vmul.f32 %v7015_v12, %v2388_v14 }
 0x6f8   :  { %v7174_v20 = vmul.f32 %v2617_v13, %v6533_v52  ;;  %v2407_v36 = vadd.f32 %v2399_v3, %v2371_v50  ;;  %v2491_v52 = vmul.f32 %v7031_v33, %v7069_v25  ;;  %v8370_v50 = vld [vmem:[#allocation29_spill] sm:$0xff]  ;;  %v2632_v13 = vrot.slane %v7135_v63, 7 }
 0x6f9   :  { %v7179_v0 = vmul.f32 %v2618_v49, %v6537_v45  ;;  %v2408_v46 = vadd.f32 %v2400_v53, %v2372_v42  ;;  %v2530_v24 = vpop.permute.xlu0 %2529  ;;  %v2492_v45 = vmul.f32 %v7031_v33, %v7072_v51  ;;  %v8366_v33 = vld [vmem:[#allocation24_spill] sm:$0xff]  ;;  %v2631_v42 = vrot.slane %v7130_v7, 7  ;;  %v7294_v49 = vld [vmem:[%s8183_s2 + $0x20] sm:$0xff]  }
 0x6fa   :  { %v2443_v31 = vadd.f32 %v2435_v1, %v2407_v36  ;;  %2737 = vrot.lane.b32.xlu0 %v7174_v20, %s5373_s15  ;;  %v2532_v12 = vpop.permute.xlu1 %2531  ;;  %v2543_v27 = vmul.f32 %v7038_v26, %v2530_v24  ;;  %v7287_v14 = vsel %vm78_vm0, %v2632_v13, 0.0  ;;  %v2823_v53 = vrot.slane %v7130_v7, 1 }
 0x6fb   :  { %v2444_v37 = vadd.f32 %v2436_v62, %v2408_v46  ;;  %2739 = vrot.lane.b32.xlu1 %v7179_v0, %s5373_s15  ;;  %v2544_v25 = vmul.f32 %v7038_v26, %v2532_v12  ;;  %v7281_v3 = vsel %vm78_vm0, %v2631_v42, 0.0  ;;  %v2824_v1 = vrot.slane %v7135_v63, 1  ;;  %v7317_v46 = vld [vmem:[%s8183_s2 + $0x18] sm:$0xff]   ;;  %v7330_v12 = vld [vmem:[%s8183_s2 + $0x10] sm:$0xff]  }
 0x6fc   :  { %v2463_v9 = vadd.f32 %v6822_v34, %v2443_v31  ;;  %v2563_v34 = vmul.f32 %v7047_v22, %v8366_v33  ;;  %v7306_v36 = vsel %vm79_vm1, %v2823_v53, 0.0  ;;  %8371 = vst [vmem:[#allocation37_spill] sm:$0xff] %v7317_v46  ;;  %v2633_v24 = vrot.slane %v7174_v20, 7  ;;  %8372 = vst [vmem:[#allocation42_spill] sm:$0xff] %v7330_v12  ;;  %v8376_v53 = vld [vmem:[#allocation26_spill] sm:$0xff] }
 0x6fd   :  { %v2464_v48 = vadd.f32 %v8365_v40, %v2444_v37  ;;  %v2586_v38 = vpop.permute.xlu0 %2585  ;;  %v7312_v62 = vsel %vm79_vm1, %v2824_v1, 0.0  ;;  %v2634_v31 = vrot.slane %v7179_v0, 7  ;;  %v7335_v37 = vld [vmem:[%s8183_s2 + $0x8] sm:$0xff]   ;;  %v2825_v40 = vrot.slane %v7174_v20, 1 }
 0x6fe   :  { %v2499_v5 = vadd.f32 %v2491_v52, %v2463_v9  ;;  %2793 = vrot.lane.b32.xlu0 %v7174_v20, %s5374_s16  ;;  %v2588_v8 = vpop.permute.xlu1 %2587  ;;  %v2599_v26 = vmul.f32 %v7053_v21, %v2586_v38  ;;  %8373 = vst [vmem:[#allocation21_spill] sm:$0xff] %v7335_v37  ;;  %v7342_v52 = vsel %vm78_vm0, %v2633_v24, 0.0 }
 0x6ff   :  { %v2500_v55 = vadd.f32 %v2492_v45, %v2464_v48  ;;  %2795 = vrot.lane.b32.xlu1 %v7179_v0, %s5374_s16  ;;  %v2600_v4 = vmul.f32 %v7053_v21, %v2588_v8  ;;  %v7227_v21 = vsel %vm79_vm1, %v2821_v19, 0.0  ;;  %v7349_v9 = vsel %vm78_vm0, %v2634_v31, 0.0  ;;  %v7357_v45 = vld [vmem:[%s8183_s2] sm:$0xff]   ;;  %v73_v19 = vld [vmem:[%s8178_s11 + $0x30] sm:$0xff]  ;;  %v8377_v31 = vld [vmem:[#allocation27_spill] sm:$0xff] }
 0x700   :  { %v2551_v51 = vadd.f32 %v2543_v27, %v2499_v5  ;;  %8374 = vst [vmem:[#allocation19_spill] sm:$0xff] %v7357_v45  ;;  %v2826_v48 = vrot.slane %v7179_v0, 1  ;;  %v7369_v39 = vsel %vm79_vm1, %v2825_v40, 0.0  ;;  %v7448_v1 = vrot.slane %v73_v19, %v8376_v53 }
 0x701   :  { %v2552_v43 = vadd.f32 %v2544_v25, %v2500_v55  ;;  %v8375_v55 = vld [vmem:[#allocation31_spill] sm:$0xff]  ;;  %v7452_v40 = vrot.slane %v73_v19, %v8377_v31 }
 0x702   :  { %v2571_v17 = vadd.f32 %v2563_v34, %v2551_v51  ;;  %2645 = vrot.lane.b32.xlu0 %v7205_v61, %s5373_s15  ;;  %v7377_v27 = vsel %vm79_vm1, %v2826_v48, 0.0 }
 0x703   :  { %v2572_v57 = vadd.f32 %v2564_v30, %v2552_v43  ;;  %2647 = vrot.lane.b32.xlu1 %v7212_v35, %s5373_s15 }
 0x704   :  { %v2607_v22 = vadd.f32 %v2599_v26, %v2571_v17 }
 0x705   :  { %v2608_v15 = vadd.f32 %v2600_v4, %v2572_v57 }
 0x706   :  { %v2619_v23 = vadd.f32 %v7063_v58, %v2607_v22  ;;  %2693 = vrot.lane.b32.xlu0 %v7205_v61, %s5374_s16 }
 0x707   :  { %v2620_v32 = vadd.f32 %v7063_v58, %v2608_v15  ;;  %2695 = vrot.lane.b32.xlu1 %v7212_v35, %s5374_s16  ;;  %v7240_v58 = vld [vmem:[%s8183_s2 + $0x38] sm:$0xff]  }
 0x708   :  { %4949 = vmatprep.subr.bf16.mxu1 %v7240_v58  ;;  %v7254_v54 = vmul.f32 %v8369_v2, %v2619_v23  ;;  %4987 = vmatprep.subr.bf16.mxu0 %v7240_v58  ;;  %v7444_v2 = vrot.slane %v73_v19, %v8323_v11 }
 0x709   :  { %4950 = vmatpush3.bf16.msra.mxu1 %v7240_v58  ;;  %v7258_v56 = vmul.f32 %v8370_v50, %v2620_v32  ;;  %v7441_v32 = vrot.slane %v73_v19, %v8301_v59 }
 0x70a   :  { %2837 = vrot.lane.b32.xlu0 %v7227_v21, %s5373_s15  ;;  %4951 = vmatprep.subr.bf16.mxu1 %v7251_v6  ;;  %v2635_v5 = vrot.slane %v7254_v54, 7  ;;  %v2827_v33 = vrot.slane %v7254_v54, 1  ;;  %v2677_v48 = vmul.f32 %v7444_v2, %v7205_v61 }
 0x70b   :  { %2839 = vrot.lane.b32.xlu1 %v7233_v16, %s5373_s15  ;;  %v2636_v18 = vrot.slane %v7258_v56, 7  ;;  %v2828_v34 = vrot.slane %v7258_v56, 1 }
 0x70c   :  { %v7385_v25 = vsel %vm78_vm0, %v2635_v5, 0.0  ;;  %v7407_v51 = vsel %vm79_vm1, %v2827_v33, 0.0  ;;  %v2678_v5 = vmul.f32 %v7444_v2, %v7212_v35 }
 0x70d   :  { %4952 = vmatpush3.bf16.msra.mxu1 %v7251_v6  ;;  %v7391_v38 = vsel %vm78_vm0, %v2636_v18, 0.0  ;;  %v7413_v8 = vsel %vm79_vm1, %v2828_v34, 0.0 }
 0x70e   :  { %2893 = vrot.lane.b32.xlu0 %v7227_v21, %s5374_s16  ;;  %4953 = vmatprep.subr.bf16.mxu1 %v7270_v41 }
 0x70f   :  { %2895 = vrot.lane.b32.xlu1 %v7233_v16, %s5374_s16 }
 0x711   :  { %4954 = vmatpush3.bf16.msra.mxu1 %v7270_v41 }
 0x712   :  { %2741 = vrot.lane.b32.xlu0 %v7254_v54, %s5373_s15  ;;  %4955 = vmatprep.subr.bf16.mxu1 %v7294_v49 }
 0x713   :  { %2743 = vrot.lane.b32.xlu1 %v7258_v56, %s5373_s15 }
 0x715   :  { %4956 = vmatpush3.bf16.msra.mxu1 %v7294_v49 }
 0x716   :  { %2797 = vrot.lane.b32.xlu0 %v7254_v54, %s5374_s16  ;;  %4957 = vmatprep.subr.bf16.mxu1 %v7317_v46 }
 0x717   :  { %2799 = vrot.lane.b32.xlu1 %v7258_v56, %s5374_s16 }
 0x719   :  { %4958 = vmatpush3.bf16.msra.mxu1 %v7317_v46 }
 0x71a   :  { %2649 = vrot.lane.b32.xlu0 %v7281_v3, %s5373_s15  ;;  %4959 = vmatprep.subr.bf16.mxu1 %v7330_v12 }
 0x71b   :  { %2651 = vrot.lane.b32.xlu1 %v7287_v14, %s5373_s15 }
 0x71d   :  { %4960 = vmatpush3.bf16.msra.mxu1 %v7330_v12 }
 0x71e   :  { %2697 = vrot.lane.b32.xlu0 %v7281_v3, %s5374_s16  ;;  %4961 = vmatprep.subr.bf16.mxu1 %v7335_v37 }
 0x71f   :  { %2699 = vrot.lane.b32.xlu1 %v7287_v14, %s5374_s16 }
 0x721   :  { %4962 = vmatpush3.bf16.msra.mxu1 %v7335_v37  ;;  %v7465_v37 = vrot.slane %v73_v19, %v8363_v60  ;;  %v74_v60 = vld [vmem:[%s8178_s11 + $0x38] sm:$0xff] }
 0x722   :  { %2841 = vrot.lane.b32.xlu0 %v7306_v36, %s5373_s15  ;;  %4963 = vmatprep.subr.bf16.mxu1 %v7357_v45 }
 0x723   :  { %2843 = vrot.lane.b32.xlu1 %v7312_v62, %s5373_s15 }
 0x725   :  { %4964 = vmatpush3.bf16.msra.mxu1 %v7357_v45 }
 0x726   :  { %2897 = vrot.lane.b32.xlu0 %v7306_v36, %s5374_s16  ;;  %5011 = vmatprep.subr.mxu1 %v8375_v55 }
 0x727   :  { %2899 = vrot.lane.b32.xlu1 %v7312_v62, %s5374_s16 }
 0x72a   :  { %2653 = vrot.lane.b32.xlu0 %v7342_v52, %s5373_s15 }
 0x72b   :  { %2655 = vrot.lane.b32.xlu1 %v7349_v9, %s5373_s15 }
 0x72e   :  { %2701 = vrot.lane.b32.xlu0 %v7342_v52, %s5374_s16 }
 0x72f   :  { %2703 = vrot.lane.b32.xlu1 %v7349_v9, %s5374_s16 }
 0x732   :  { %2845 = vrot.lane.b32.xlu0 %v7369_v39, %s5373_s15 }
 0x733   :  { %2847 = vrot.lane.b32.xlu1 %v7377_v27, %s5373_s15 }
 0x736   :  { %2657 = vrot.lane.b32.xlu0 %v7385_v25, %s5373_s15 }
 0x737   :  { %2659 = vrot.lane.b32.xlu1 %v7391_v38, %s5373_s15 }
 0x73a   :  { %2705 = vrot.lane.b32.xlu0 %v7385_v25, %s5374_s16 }
 0x73b   :  { %2707 = vrot.lane.b32.xlu1 %v7391_v38, %s5374_s16 }
 0x73e   :  { %2901 = vrot.lane.b32.xlu0 %v7369_v39, %s5374_s16 }
 0x73f   :  { %2903 = vrot.lane.b32.xlu1 %v7377_v27, %s5374_s16 }
 0x742   :  { %2849 = vrot.lane.b32.xlu0 %v7407_v51, %s5373_s15 }
 0x743   :  { %2851 = vrot.lane.b32.xlu1 %v7413_v8, %s5373_s15 }
 0x744   :  { %v2730_v10 = vpop.permute.xlu0 %2729 }
 0x745   :  { %v2732_v30 = vpop.permute.xlu1 %2731  ;;  %v2749_v31 = vmul.f32 %v7452_v40, %v2730_v10 }
 0x746   :  { %2905 = vrot.lane.b32.xlu0 %v7407_v51, %s5374_s16  ;;  %v2750_v12 = vmul.f32 %v7452_v40, %v2732_v30 }
 0x747   :  { %2907 = vrot.lane.b32.xlu1 %v7413_v8, %s5374_s16 }
 0x748   :  { %v2786_v43 = vpop.permute.xlu0 %2785 }
 0x749   :  { %v2788_v17 = vpop.permute.xlu1 %2787 }
 0x75c   :  { %v7421_v26 = vpop.permute.xlu0 %2733 }
 0x75d   :  { %v7423_v57 = vpop.permute.xlu1 %2735 }
 0x760   :  { %v7425_v47 = vpop.permute.xlu0 %2789 }
 0x761   :  { %v7427_v4 = vpop.permute.xlu1 %2791 }
 0x76c   :  { %v7429_v22 = vpop.permute.xlu0 %2737 }
 0x76d   :  { %v7431_v15 = vpop.permute.xlu1 %2739 }
 0x770   :  { %v7436_v23 = vpop.permute.xlu0 %2793 }
 0x771   :  { %v7438_v44 = vpop.permute.xlu1 %2795 }
 0x774   :  { %v2646_v50 = vpop.permute.xlu0 %2645 }
 0x775   :  { %v2665_v42 = vmul.f32 %v7441_v32, %v2646_v50  ;;  %v2648_v13 = vpop.permute.xlu1 %2647  ;;  %v8378_v50 = vld [vmem:[#allocation28_spill] sm:$0xff] }
 0x776   :  { %v2666_v24 = vmul.f32 %v7441_v32, %v2648_v13  ;;  %v7460_v45 = vrot.slane %v73_v19, %v8378_v50 }
 0x777   :  { %v2685_v55 = vadd.f32 %v2677_v48, %v2665_v42 }
 0x778   :  { %v2694_v18 = vpop.permute.xlu0 %2693  ;;  %v2686_v53 = vadd.f32 %v2678_v5, %v2666_v24  ;;  %v2769_v48 = vmul.f32 %v7460_v45, %v7076_v29  ;;  %v2770_v10 = vmul.f32 %v7460_v45, %v7079_v28  ;;  %v2806_v29 = vmul.f32 %v7465_v37, %v2788_v17 }
 0x779   :  { %v2713_v33 = vmul.f32 %v7448_v1, %v2694_v18  ;;  %v2696_v34 = vpop.permute.xlu1 %2695  ;;  %v8379_v18 = vld [vmem:[#allocation32_spill] sm:$0xff] }
 0x77a   :  { %v2714_v13 = vmul.f32 %v7448_v1, %v2696_v34  ;;  %v7471_v50 = vrot.slane %v73_v19, %v8379_v18 }
 0x77b   :  { %v2721_v61 = vadd.f32 %v2713_v33, %v2685_v55  ;;  %v8380_v55 = vld [vmem:[#allocation33_spill] sm:$0xff] }
 0x77c   :  { %v2722_v35 = vadd.f32 %v2714_v13, %v2686_v53  ;;  %v2838_v46 = vpop.permute.xlu0 %2837  ;;  %v7479_v30 = vrot.slane %v73_v19, %v8380_v55  ;;  %v2805_v53 = vmul.f32 %v7465_v37, %v2786_v43 }
 0x77d   :  { %v2757_v42 = vadd.f32 %v2749_v31, %v2721_v61  ;;  %v2840_v24 = vpop.permute.xlu1 %2839  ;;  %v7485_v61 = vrot.slane %v74_v60, %v8301_v59 }
 0x77e   :  { %v2758_v5 = vadd.f32 %v2750_v12, %v2722_v35  ;;  %v2857_v12 = vmul.f32 %v7471_v50, %v2838_v46  ;;  %v2858_v18 = vmul.f32 %v7471_v50, %v2840_v24  ;;  %v2877_v19 = vmul.f32 %v7479_v30, %v7227_v21 }
 0x77f   :  { %v2777_v31 = vadd.f32 %v2769_v48, %v2757_v42  ;;  %v2878_v43 = vmul.f32 %v7479_v30, %v7233_v16  ;;  %v7495_v46 = vrot.slane %v74_v60, %v8323_v11  ;;  %v5353_v60 = vld [vmem:[%s8176_s0] sm:$0xff] }
 0x780   :  { %v2778_v33 = vadd.f32 %v2770_v10, %v2758_v5  ;;  %v2894_v34 = vpop.permute.xlu0 %2893 }
 0x781   :  { %v2813_v13 = vadd.f32 %v2805_v53, %v2777_v31  ;;  %v2896_v28 = vpop.permute.xlu1 %2895  ;;  %v2913_v5 = vmul.f32 %v7485_v61, %v2894_v34 }
 0x782   :  { %v2814_v35 = vadd.f32 %v2806_v29, %v2778_v33  ;;  %v2914_v24 = vmul.f32 %v7485_v61, %v2896_v28  ;;  %v5354_v28 = vld [vmem:[%s8176_s0 + $0x8] sm:$0xff] }
 0x783   :  { %v2865_v55 = vadd.f32 %v2857_v12, %v2813_v13 }
 0x784   :  { %v2866_v17 = vadd.f32 %v2858_v18, %v2814_v35  ;;  %v7492_v42 = vpop.permute.xlu0 %2741 }
 0x785   :  { %v2885_v48 = vadd.f32 %v2877_v19, %v2865_v55  ;;  %v7498_v10 = vpop.permute.xlu1 %2743 }
 0x786   :  { %v2886_v53 = vadd.f32 %v2878_v43, %v2866_v17  ;;  %v2679_v17 = vmul.f32 %v7444_v2, %v7281_v3 }
 0x787   :  { %v2921_v31 = vadd.f32 %v2913_v5, %v2885_v48  ;;  %v2680_v48 = vmul.f32 %v7444_v2, %v7287_v14  ;;  %v2771_v14 = vmul.f32 %v7460_v45, %v7130_v7 }
 0x788   :  { %v2922_v21 = vadd.f32 %v2914_v24, %v2886_v53  ;;  %v7501_v29 = vpop.permute.xlu0 %2797 }
 0x789   :  { %v2933_v16 = vadd.f32 %v7495_v46, %v2921_v31  ;;  %v7504_v33 = vpop.permute.xlu1 %2799 }
 0x78a   :  { %v2934_v13 = vadd.f32 %v7495_v46, %v2922_v21 }
 0x78b   :  { %v7510_v34 = vadd.f32 %v5353_v60, %v2933_v16  ;;  %v2752_v60 = vmul.f32 %v7452_v40, %v7423_v57 }
 0x78c   :  { %v2650_v12 = vpop.permute.xlu0 %2649  ;;  %v7515_v35 = vadd.f32 %v5354_v28, %v2934_v13  ;;  %v2751_v13 = vmul.f32 %v7452_v40, %v7421_v26  ;;  %v2808_v26 = vmul.f32 %v7465_v37, %v7427_v4 }
 0x78d   :  { %v2667_v18 = vmul.f32 %v7441_v32, %v2650_v12  ;;  %v2652_v19 = vpop.permute.xlu1 %2651 }
 0x78e   :  { %v2668_v55 = vmul.f32 %v7441_v32, %v2652_v19  ;;  %v2949_v43 = vpack.c.bf16 %v7515_v35, %v7510_v34 }
 0x78f   :  { %v2687_v53 = vadd.f32 %v2679_v17, %v2667_v18  ;;  %v2807_v17 = vmul.f32 %v7465_v37, %v7425_v47  ;;  %v2880_v47 = vmul.f32 %v7479_v30, %v7312_v62  ;;  %v2682_v62 = vmul.f32 %v7444_v2, %v7349_v9  ;;  %v5355_v9 = vld [vmem:[%s8176_s0 + $0x10] sm:$0xff] }
 0x790   :  { %v2698_v5 = vpop.permute.xlu0 %2697  ;;  %4965 = vmatprep.mubr.bf16.mxu1 %v2949_v43  ;;  %v2688_v21 = vadd.f32 %v2680_v48, %v2668_v55  ;;  %v2772_v55 = vmul.f32 %v7460_v45, %v7135_v63 }
 0x791   :  { %v2715_v24 = vmul.f32 %v7448_v1, %v2698_v5  ;;  %v2700_v31 = vpop.permute.xlu1 %2699 }
 0x792   :  { %v2716_v16 = vmul.f32 %v7448_v1, %v2700_v31 }
 0x793   :  { %v2723_v12 = vadd.f32 %v2715_v24, %v2687_v53 }
 0x794   :  { %v2724_v3 = vadd.f32 %v2716_v16, %v2688_v21  ;;  %v2842_v28 = vpop.permute.xlu0 %2841  ;;  %v2879_v16 = vmul.f32 %v7479_v30, %v7306_v36  ;;  %v2681_v36 = vmul.f32 %v7444_v2, %v7342_v52 }
 0x795   :  { %v2759_v19 = vadd.f32 %v2751_v13, %v2723_v12  ;;  %v2844_v18 = vpop.permute.xlu1 %2843  ;;  %v2859_v24 = vmul.f32 %v7471_v50, %v2842_v28 }
 0x796   :  { %v2760_v43 = vadd.f32 %v2752_v60, %v2724_v3  ;;  %v2860_v7 = vmul.f32 %v7471_v50, %v2844_v18 }
 0x797   :  { %v2779_v48 = vadd.f32 %v2771_v14, %v2759_v19 }
 0x798   :  { %v2780_v5 = vadd.f32 %v2772_v55, %v2760_v43  ;;  %v2898_v57 = vpop.permute.xlu0 %2897 }
 0x799   :  { %v2815_v53 = vadd.f32 %v2807_v17, %v2779_v48  ;;  %v2900_v31 = vpop.permute.xlu1 %2899  ;;  %v2915_v4 = vmul.f32 %v7485_v61, %v2898_v57 }
 0x79a   :  { %v2816_v21 = vadd.f32 %v2808_v26, %v2780_v5  ;;  %v2916_v14 = vmul.f32 %v7485_v61, %v2900_v31 }
 0x79b   :  { %v2867_v63 = vadd.f32 %v2859_v24, %v2815_v53 }
 0x79c   :  { %v2868_v13 = vadd.f32 %v2860_v7, %v2816_v21  ;;  %v2654_v12 = vpop.permute.xlu0 %2653  ;;  %v2753_v21 = vmul.f32 %v7452_v40, %v7429_v22  ;;  %v2754_v7 = vmul.f32 %v7452_v40, %v7431_v15  ;;  %v2773_v22 = vmul.f32 %v7460_v45, %v7174_v20 }
 0x79d   :  { %v2887_v60 = vadd.f32 %v2879_v16, %v2867_v63  ;;  %v2669_v3 = vmul.f32 %v7441_v32, %v2654_v12  ;;  %v2656_v19 = vpop.permute.xlu1 %2655  ;;  %v5356_v63 = vld [vmem:[%s8176_s0 + $0x18] sm:$0xff] }
 0x79e   :  { %v2888_v28 = vadd.f32 %v2880_v47, %v2868_v13  ;;  %v2670_v18 = vmul.f32 %v7441_v32, %v2656_v19  ;;  %v2774_v19 = vmul.f32 %v7460_v45, %v7179_v0 }
 0x79f   :  { %v2923_v43 = vadd.f32 %v2915_v4, %v2887_v60  ;;  %v2689_v26 = vadd.f32 %v2681_v36, %v2669_v3 }
 0x7a0   :  { %v2924_v55 = vadd.f32 %v2916_v14, %v2888_v28  ;;  %v2702_v17 = vpop.permute.xlu0 %2701  ;;  %v2690_v24 = vadd.f32 %v2682_v62, %v2670_v18  ;;  %v2809_v28 = vmul.f32 %v7465_v37, %v7436_v23  ;;  %v2810_v18 = vmul.f32 %v7465_v37, %v7438_v44 }
 0x7a1   :  { %v2935_v48 = vadd.f32 %v7495_v46, %v2923_v43  ;;  %v2717_v5 = vmul.f32 %v7448_v1, %v2702_v17  ;;  %v2704_v57 = vpop.permute.xlu1 %2703  ;;  %v7585_v17 = vld [vmem:[%s8179_s3] sm:$0xff]  ;;  %v2683_v44 = vmul.f32 %v7444_v2, %v7385_v25  ;;  %v2755_v25 = vmul.f32 %v7452_v40, %v7492_v42 }
 0x7a2   :  { %v2936_v53 = vadd.f32 %v7495_v46, %v2924_v55  ;;  %v2718_v31 = vmul.f32 %v7448_v1, %v2704_v57 }
 0x7a3   :  { %v2725_v52 = vadd.f32 %v2717_v5, %v2689_v26  ;;  %v7564_v16 = vadd.f32 %v5355_v9, %v2935_v48  ;;  %v2684_v5 = vmul.f32 %v7444_v2, %v7391_v38  ;;  %v2881_v9 = vmul.f32 %v7479_v30, %v7369_v39 }
 0x7a4   :  { %v7569_v47 = vadd.f32 %v5356_v63, %v2936_v53  ;;  %v2726_v13 = vadd.f32 %v2718_v31, %v2690_v24  ;;  %v2846_v12 = vpop.permute.xlu0 %2845  ;;  %v2882_v38 = vmul.f32 %v7479_v30, %v7377_v27  ;;  %v2756_v2 = vmul.f32 %v7452_v40, %v7498_v10 }
 0x7a5   :  { %v2761_v60 = vadd.f32 %v2753_v21, %v2725_v52  ;;  %v2848_v4 = vpop.permute.xlu1 %2847  ;;  %v2861_v48 = vmul.f32 %v7471_v50, %v2846_v12  ;;  %v2775_v39 = vmul.f32 %v7460_v45, %v7254_v54  ;;  %v2776_v27 = vmul.f32 %v7460_v45, %v7258_v56 }
 0x7a6   :  { %v2950_v15 = vpack.c.bf16 %v7569_v47, %v7564_v16  ;;  %v2762_v3 = vadd.f32 %v2754_v7, %v2726_v13  ;;  %v2862_v26 = vmul.f32 %v7471_v50, %v2848_v4  ;;  %v2811_v40 = vmul.f32 %v7465_v37, %v7501_v29 }
 0x7a7   :  { %v2781_v14 = vadd.f32 %v2773_v22, %v2761_v60  ;;  %v2883_v29 = vmul.f32 %v7479_v30, %v7407_v51 }
 0x7a8   :  { %v2782_v43 = vadd.f32 %v2774_v19, %v2762_v3  ;;  %v2658_v36 = vpop.permute.xlu0 %2657  ;;  %4966 = vmatmul.mubr.bf16.vlgmr.msra.gmra.mxu1 %v2950_v15 }
 0x7a9   :  { %v2817_v55 = vadd.f32 %v2809_v28, %v2781_v14  ;;  %v2671_v20 = vmul.f32 %v7441_v32, %v2658_v36  ;;  %v2660_v62 = vpop.permute.xlu1 %2659  ;;  %5012 = vmatpush3.msra.mxu1 %v7585_v17  ;;  %v2812_v28 = vmul.f32 %v7465_v37, %v7504_v33  ;;  %v2884_v37 = vmul.f32 %v7479_v30, %v7413_v8 }
 0x7aa   :  { %v2818_v0 = vadd.f32 %v2810_v18, %v2782_v43  ;;  %v2672_v23 = vmul.f32 %v7441_v32, %v2660_v62 }
 0x7ab   :  { %v2869_v53 = vadd.f32 %v2861_v48, %v2817_v55  ;;  %v2691_v24 = vadd.f32 %v2683_v44, %v2671_v20  ;;  %v5358_v48 = vld [vmem:[%s8176_s0 + $0x20] sm:$0xff] }
 0x7ac   :  { %v2706_v57 = vpop.permute.xlu0 %2705  ;;  %v2870_v52 = vadd.f32 %v2862_v26, %v2818_v0  ;;  %v2692_v7 = vadd.f32 %v2684_v5, %v2672_v23  ;;  %v5359_v26 = vld [vmem:[%s8176_s0 + $0x28] sm:$0xff] }
 0x7ad   :  { %v2719_v31 = vmul.f32 %v7448_v1, %v2706_v57  ;;  %v2708_v21 = vpop.permute.xlu1 %2707  ;;  %v2889_v22 = vadd.f32 %v2881_v9, %v2869_v53 }
 0x7ae   :  { %v2720_v32 = vmul.f32 %v7448_v1, %v2708_v21  ;;  %v2890_v3 = vadd.f32 %v2882_v38, %v2870_v52 }
 0x7af   :  { %v2727_v63 = vadd.f32 %v2719_v31, %v2691_v24 }
 0x7b0   :  { %v2728_v13 = vadd.f32 %v2720_v32, %v2692_v7  ;;  %v2902_v12 = vpop.permute.xlu0 %2901  ;;  %v5360_v7 = vld [vmem:[%s8176_s0 + $0x30] sm:$0xff] }
 0x7b1   :  { %v2763_v60 = vadd.f32 %v2755_v25, %v2727_v63  ;;  %v2917_v4 = vmul.f32 %v7485_v61, %v2902_v12  ;;  %v2904_v1 = vpop.permute.xlu1 %2903 }
 0x7b2   :  { %v2764_v15 = vadd.f32 %v2756_v2, %v2728_v13  ;;  %v2918_v42 = vmul.f32 %v7485_v61, %v2904_v1  ;;  %v8382_v1 = vld [vmem:[#allocation42_spill] sm:$0xff] }
 0x7b3   :  { %v2925_v10 = vadd.f32 %v2917_v4, %v2889_v22  ;;  %v2783_v19 = vadd.f32 %v2775_v39, %v2763_v60  ;;  %v8381_v4 = vld [vmem:[#allocation37_spill] sm:$0xff] }
 0x7b4   :  { %v2926_v14 = vadd.f32 %v2918_v42, %v2890_v3  ;;  %v2850_v18 = vpop.permute.xlu0 %2849  ;;  %v2784_v43 = vadd.f32 %v2776_v27, %v2764_v15  ;;  %v8383_v42 = vld [vmem:[#allocation21_spill] sm:$0xff] }
 0x7b5   :  { %v2937_v54 = vadd.f32 %v7495_v46, %v2925_v10  ;;  %v2819_v36 = vadd.f32 %v2811_v40, %v2783_v19  ;;  %v2863_v55 = vmul.f32 %v7471_v50, %v2850_v18  ;;  %v2852_v20 = vpop.permute.xlu1 %2851  ;;  %v8384_v19 = vld [vmem:[#allocation19_spill] sm:$0xff] }
 0x7b6   :  { %v2938_v62 = vadd.f32 %v7495_v46, %v2926_v14  ;;  %v2820_v56 = vadd.f32 %v2812_v28, %v2784_v43  ;;  %v2864_v45 = vmul.f32 %v7471_v50, %v2852_v20 }
 0x7b7   :  { %v2871_v0 = vadd.f32 %v2863_v55, %v2819_v36  ;;  %v7626_v44 = vadd.f32 %v5358_v48, %v2937_v54 }
 0x7b8   :  { %v2872_v33 = vadd.f32 %v2864_v45, %v2820_v56  ;;  %v2906_v23 = vpop.permute.xlu0 %2905  ;;  %v7631_v50 = vadd.f32 %v5359_v26, %v2938_v62 }
 0x7b9   :  { %v2891_v5 = vadd.f32 %v2883_v29, %v2871_v0  ;;  %v2919_v51 = vmul.f32 %v7485_v61, %v2906_v23  ;;  %v2908_v57 = vpop.permute.xlu1 %2907 }
 0x7ba   :  { %v2892_v53 = vadd.f32 %v2884_v37, %v2872_v33  ;;  %v2920_v8 = vmul.f32 %v7485_v61, %v2908_v57  ;;  %v2951_v30 = vpack.c.bf16 %v7631_v50, %v7626_v44  ;;  %v5361_v61 = vld [vmem:[%s8176_s0 + $0x38] sm:$0xff] }
 0x7bb   :  { %v2927_v24 = vadd.f32 %v2919_v51, %v2891_v5 }
 0x7bc   :  { %v2928_v31 = vadd.f32 %v2920_v8, %v2892_v53  ;;  %4969 = vmatprep.mubr.bf16.mxu1 %v2951_v30 }
 0x7bd   :  { %v2939_v21 = vadd.f32 %v7495_v46, %v2927_v24  ;;  %v5182_v24 = vld [vmem:[%s8184_s8 + $0x74] ss:$8 sps:$4 sm:$0xff]  }
 0x7be   :  { %v2940_v52 = vadd.f32 %v7495_v46, %v2928_v31  ;;  %3577 = vmatprep.subr.bf16.mxu1 %v5182_v24 }
 0x7bf   :  { %v7642_v32 = vadd.f32 %v5360_v7, %v2939_v21 }
 0x7c0   :  { %v7647_v9 = vadd.f32 %v5361_v61, %v2940_v52  ;;  %v5180_v61 = vld [vmem:[%s8184_s8 + $0x70] ss:$8 sps:$4 sm:$0xff]  }
 0x7c2   :  { %v2952_v25 = vpack.c.bf16 %v7647_v9, %v7642_v32 }
 0x7c4   :  { %4970 = vmatmul.mubr.bf16.gmra.mxu1 %v2952_v25  ;;  %v5185_v25 = vld [vmem:[%s8184_s8 + $0x64] ss:$8 sps:$4 sm:$0xff]  }
 0x868   :  { %v4967_v63 = vpop.f32.mrf.mxu1 }
 0x869   :  { %v3068_v60 = vmul.f32 0.0625, %v4967_v63 }
 0x86a   :  { %v3035_v38 = vpop.f32.mrf.mxu1 }
 0x86b   :  { %v3066_v2 = vmul.f32 0.0625, %v3035_v38  ;;  %v5183_v38 = vld [vmem:[%s8184_s8 + $0x60] ss:$8 sps:$4 sm:$0xff]  }
 0x86c   :  { %v4968_v46 = vpop.f32.mrf.mxu1 }
 0x86d   :  { %4975 = vmatprep.mubr.msk.f32.mxu0 %vm911_vm2, %v3066_v2  ;;  %v3069_v22 = vmul.f32 0.0625, %v4968_v46 }
 0x86e   :  { %v3038_v13 = vpop.f32.mrf.mxu1 }
 0x86f   :  { %v3067_v12 = vmul.f32 0.0625, %v3038_v13 }
 0x871   :  { %4976 = vmatmul.mubr.msk.f32.vlgmr.msra.gmra.mxu0 %vm911_vm2, %v3067_v12 }
 0x872   :  { %4978 = vmatprep.mubr.msk.f32.mxu0 %vm911_vm2, %v3068_v60  ;;  %4988 = vmatpush3.bf16.msra.mxu0 %v7240_v58 }
 0x873   :  { %4989 = vmatprep.subr.bf16.mxu0 %v7251_v6 }
 0x875   :  { %4979 = vmatmul.mubr.msk.f32.gmra.mxu0 %vm911_vm2, %v3069_v22 }
 0x876   :  { %4990 = vmatpush3.bf16.msra.mxu0 %v7251_v6 }
 0x877   :  { %4991 = vmatprep.subr.bf16.mxu0 %v7270_v41 }
 0x87a   :  { %4992 = vmatpush3.bf16.msra.mxu0 %v7270_v41 }
 0x87b   :  { %4993 = vmatprep.subr.bf16.mxu0 %v7294_v49 }
 0x87e   :  { %4994 = vmatpush3.bf16.msra.mxu0 %v7294_v49 }
 0x87f   :  { %4995 = vmatprep.subr.bf16.mxu0 %v8381_v4 }
 0x882   :  { %4996 = vmatpush3.bf16.msra.mxu0 %v8381_v4 }
 0x883   :  { %4997 = vmatprep.subr.bf16.mxu0 %v8382_v1 }
 0x884   :  { %v4971_v39 = vpop.f32.mrf.mxu1 }
 0x885   :  { %v3072_v28 = vmul.f32 0.0625, %v4971_v39 }
 0x886   :  { %v3051_v15 = vpop.f32.mrf.mxu1  ;;  %4998 = vmatpush3.bf16.msra.mxu0 %v8382_v1 }
 0x887   :  { %v3070_v3 = vmul.f32 0.0625, %v3051_v15  ;;  %4999 = vmatprep.subr.bf16.mxu0 %v8383_v42 }
 0x888   :  { %v4972_v27 = vpop.f32.mrf.mxu1 }
 0x889   :  { %4981 = vmatprep.mubr.msk.f32.mxu0 %vm911_vm2, %v3070_v3  ;;  %v3073_v14 = vmul.f32 0.0625, %v4972_v27  ;;  %v8385_v27 = vmov 0  }
 0x88a   :  { %v3054_v40 = vpop.f32.mrf.mxu1  ;;  %5000 = vmatpush3.bf16.msra.mxu0 %v8383_v42 }
 0x88b   :  { %v3071_v10 = vmul.f32 0.0625, %v3054_v40  ;;  %5001 = vmatprep.subr.bf16.mxu0 %v8384_v19  ;;  %v5188_v40 = vld [vmem:[%s8184_s8 + $0x54] ss:$8 sps:$4 sm:$0xff]  }
 0x88d   :  { %4982 = vmatmul.mubr.msk.f32.gmra.mxu0 %vm911_vm2, %v3071_v10  ;;  %v5186_v10 = vld [vmem:[%s8184_s8 + $0x50] ss:$8 sps:$4 sm:$0xff]  }
 0x88e   :  { %4984 = vmatprep.mubr.msk.f32.mxu0 %vm911_vm2, %v3072_v28  ;;  %5002 = vmatpush3.bf16.msra.mxu0 %v8384_v19  ;;  %v5191_v28 = vld [vmem:[%s8184_s8 + $0x44] ss:$8 sps:$4 sm:$0xff]  }
 0x891   :  { %4985 = vmatmul.mubr.msk.f32.gmra.mxu0 %vm911_vm2, %v3073_v14  ;;  %v5189_v14 = vld [vmem:[%s8184_s8 + $0x40] ss:$8 sps:$4 sm:$0xff]  }
 0x931   :  { %v4977_v18 = vpop.f32.mrf.mxu0 }
 0x932   :  { %v7675_v43 = vsub.f32 %v7515_v35, %v4977_v18  ;;  %v5194_v18 = vld [vmem:[%s8184_s8 + $0x34] ss:$8 sps:$4 sm:$0xff]  }
 0x933   :  { %v3164_v54 = vpop.f32.mrf.mxu0 }
 0x934   :  { %v7678_v36 = vsub.f32 %v7510_v34, %v3164_v54  ;;  %v3212_v20 = vmul.f32 %v7675_v43, %v7675_v43  ;;  %v5192_v54 = vld [vmem:[%s8184_s8 + $0x30] ss:$8 sps:$4 sm:$0xff]  }
 0x935   :  { %v4980_v55 = vpop.f32.mrf.mxu0 }
 0x936   :  { %v3211_v62 = vmul.f32 %v7678_v36, %v7678_v36  ;;  %v7685_v56 = vsub.f32 %v7569_v47, %v4980_v55  ;;  %v5197_v55 = vld [vmem:[%s8184_s8 + $0x24] ss:$8 sps:$4 sm:$0xff]  }
 0x937   :  { %v3174_v45 = vpop.f32.mrf.mxu0 }
 0x938   :  { %v7688_v29 = vsub.f32 %v7564_v16, %v3174_v45  ;;  %v3219_v35 = vpack.c.bf16 %v3212_v20, %v3211_v62  ;;  %v3214_v0 = vmul.f32 %v7685_v56, %v7685_v56  ;;  %v5195_v20 = vld [vmem:[%s8184_s8 + $0x20] ss:$8 sps:$4 sm:$0xff]   ;;  %v5200_v62 = vld [vmem:[%s8184_s8 + $0x14] ss:$8 sps:$4 sm:$0xff]   ;;  %v5198_v45 = vld [vmem:[%s8184_s8 + $0x10] ss:$8 sps:$4 sm:$0xff]  }
 0x93a   :  { %v3213_v34 = vmul.f32 %v7688_v29, %v7688_v29  ;;  %5003 = vmatprep.mubr.bf16.mxu0 %v3219_v35  ;;  %v5203_v35 = vld [vmem:[%s8184_s8 + $0x4] ss:$8 sps:$4 sm:$0xff]  }
 0x93c   :  { %v3220_v37 = vpack.c.bf16 %v3214_v0, %v3213_v34  ;;  %v5201_v0 = vld [vmem:[%s8184_s8] ss:$8 sps:$4 sm:$0xff]  }
 0x93e   :  { %5004 = vmatmul.mubr.bf16.vlgmr.msra.gmra.mxu0 %v3220_v37 }
 0x94d   :  { %v4983_v33 = vpop.f32.mrf.mxu0 }
 0x94e   :  { %v7695_v23 = vsub.f32 %v7631_v50, %v4983_v33 }
 0x94f   :  { %v3184_v47 = vpop.f32.mrf.mxu0 }
 0x950   :  { %v7698_v48 = vsub.f32 %v7626_v44, %v3184_v47  ;;  %v3216_v26 = vmul.f32 %v7695_v23, %v7695_v23 }
 0x951   :  { %v4986_v16 = vpop.f32.mrf.mxu0 }
 0x952   :  { %v3215_v5 = vmul.f32 %v7698_v48, %v7698_v48  ;;  %v7705_v51 = vsub.f32 %v7647_v9, %v4986_v16 }
 0x953   :  { %v3194_v57 = vpop.f32.mrf.mxu0 }
 0x954   :  { %v7708_v53 = vsub.f32 %v7642_v32, %v3194_v57  ;;  %v3221_v50 = vpack.c.bf16 %v3216_v26, %v3215_v5  ;;  %v3218_v8 = vmul.f32 %v7705_v51, %v7705_v51 }
 0x956   :  { %v3217_v44 = vmul.f32 %v7708_v53, %v7708_v53  ;;  %5007 = vmatprep.mubr.bf16.mxu0 %v3221_v50  ;;  %v7775_v50 = vld [vmem:[%s8178_s11 + $0x40] sm:$0xff] }
 0x958   :  { %v3222_v30 = vpack.c.bf16 %v3218_v8, %v3217_v44  ;;  %v7779_v8 = vrot.slane %v7775_v50, %v8301_v59 }
 0x95a   :  { %5008 = vmatmul.mubr.bf16.gmra.mxu0 %v3222_v30 }
 0x9fe   :  { %v5005_v31 = vpop.f32.mrf.mxu0 }
 0x9ff   :  { %v3290_v63 = vmul.f32 0.0625, %v5005_v31 }
 0xa00   :  { %v3257_v21 = vpop.f32.mrf.mxu0 }
 0xa01   :  { %v3288_v52 = vmul.f32 0.0625, %v3257_v21 }
 0xa02   :  { %v5006_v7 = vpop.f32.mrf.mxu0 }
 0xa03   :  { %5013 = vmatprep.mubr.msk.f32.mxu1 %vm911_vm2, %v3288_v52  ;;  %v3291_v2 = vmul.f32 0.0625, %v5006_v7  ;;  %v7786_v52 = vrot.slane %v7775_v50, %v8323_v11 }
 0xa04   :  { %v3260_v32 = vpop.f32.mrf.mxu0 }
 0xa05   :  { %v3289_v9 = vmul.f32 0.0625, %v3260_v32 }
 0xa07   :  { %5014 = vmatmul.mubr.msk.f32.vlgmr.msra.gmra.mxu1 %vm911_vm2, %v3289_v9 }
 0xa08   :  { %5016 = vmatprep.mubr.msk.f32.mxu1 %vm911_vm2, %v3290_v63  ;;  %3578 = vmatpush1.bf16.msra.mxu1 %v5180_v61 }
 0xa09   :  { %3579 = vmatprep.subr.bf16.mxu1 %v5185_v25 }
 0xa0b   :  { %5017 = vmatmul.mubr.msk.f32.gmra.mxu1 %vm911_vm2, %v3291_v2 }
 0xa0c   :  { %3580 = vmatpush1.bf16.msra.mxu1 %v5183_v38 }
 0xa0d   :  { %3581 = vmatprep.subr.bf16.mxu1 %v5188_v40 }
 0xa10   :  { %3582 = vmatpush1.bf16.msra.mxu1 %v5186_v10 }
 0xa11   :  { %3583 = vmatprep.subr.bf16.mxu1 %v5191_v28 }
 0xa14   :  { %3584 = vmatpush1.bf16.msra.mxu1 %v5189_v14 }
 0xa15   :  { %3585 = vmatprep.subr.bf16.mxu1 %v5194_v18 }
 0xa18   :  { %3586 = vmatpush1.bf16.msra.mxu1 %v5192_v54 }
 0xa19   :  { %3587 = vmatprep.subr.bf16.mxu1 %v5197_v55 }
 0xa1a   :  { %v5009_v46 = vpop.f32.mrf.mxu0 }
 0xa1b   :  { %v3294_v15 = vmul.f32 0.0625, %v5009_v46 }
 0xa1c   :  { %v3273_v13 = vpop.f32.mrf.mxu0  ;;  %3588 = vmatpush1.bf16.msra.mxu1 %v5195_v20 }
 0xa1d   :  { %v3292_v12 = vmul.f32 0.0625, %v3273_v13  ;;  %3589 = vmatprep.subr.bf16.mxu1 %v5200_v62 }
 0xa1e   :  { %v5010_v60 = vpop.f32.mrf.mxu0 }
 0xa1f   :  { %5019 = vmatprep.mubr.msk.f32.mxu1 %vm911_vm2, %v3292_v12  ;;  %v3295_v3 = vmul.f32 0.0625, %v5010_v60 }
 0xa20   :  { %v3276_v22 = vpop.f32.mrf.mxu0  ;;  %3590 = vmatpush1.bf16.msra.mxu1 %v5198_v45  ;;  %v5206_v45 = vld [vmem:[%s8185_s10 + $0x70] sm:$0xff]  }
 0xa21   :  { %v3293_v39 = vmul.f32 0.0625, %v3276_v22  ;;  %3591 = vmatprep.subr.bf16.mxu1 %v5203_v35  ;;  %v5207_v35 = vld [vmem:[%s8185_s10 + $0x30] sm:$0xff]  }
 0xa23   :  { %5020 = vmatmul.mubr.msk.f32.gmra.mxu1 %vm911_vm2, %v3293_v39 }
 0xa24   :  { %5022 = vmatprep.mubr.msk.f32.mxu1 %vm911_vm2, %v3294_v15  ;;  %3592 = vmatpush1.bf16.msra.mxu1 %v5201_v0  ;;  %v5208_v0 = vld [vmem:[%s8185_s10 + $0x68] sm:$0xff]  }
 0xa25   :  { %5025 = vmatprep.subr.bf16.mxu1 %v7240_v58 }
 0xa27   :  { %5023 = vmatmul.mubr.msk.f32.gmra.mxu1 %vm911_vm2, %v3295_v3 }
 0xa28   :  { %3609 = vmatprep.mubr.bf16.mxu1 %v8385_v27 }
 0xac7   :  { %v5015_v34 = vpop.f32.mrf.mxu1 }
 0xac8   :  { %v3392_v37 = vadd.f32 1e-06, %v5015_v34  ;;  %v5209_v34 = vld [vmem:[%s8185_s10 + $0x28] sm:$0xff]  }
 0xac9   :  { %v3386_v33 = vpop.f32.mrf.mxu1 }
 0xaca   :  { %5288 = vrsqrt.f32 %v3392_v37  ;;  %v3387_v47 = vadd.f32 1e-06, %v3386_v33  ;;  %v5210_v37 = vld [vmem:[%s8185_s10 + $0x60] sm:$0xff]  }
 0xacb   :  { %v5018_v16 = vpop.f32.mrf.mxu1  ;;  %v5211_v33 = vld [vmem:[%s8185_s10 + $0x20] sm:$0xff]  }
 0xacc   :  { %5290 = vrsqrt.f32 %v3387_v47  ;;  %v3402_v26 = vadd.f32 1e-06, %v5018_v16  ;;  %v5212_v47 = vld [vmem:[%s8185_s10 + $0x58] sm:$0xff]  }
 0xacd   :  { %v3396_v5 = vpop.f32.mrf.mxu1  ;;  %v5213_v16 = vld [vmem:[%s8185_s10 + $0x18] sm:$0xff]  }
 0xace   :  { %5292 = vrsqrt.f32 %v3402_v26  ;;  %v3397_v57 = vadd.f32 1e-06, %v3396_v5  ;;  %v5214_v26 = vld [vmem:[%s8185_s10 + $0x50] sm:$0xff]  }
 0xacf   :  { %v5215_v5 = vld [vmem:[%s8185_s10 + $0x10] sm:$0xff]  }
 0xad0   :  { %5294 = vrsqrt.f32 %v3397_v57  ;;  %v5216_v57 = vld [vmem:[%s8185_s10 + $0x48] sm:$0xff]  }
 0xad7   :  { %v5289_v44 = vpop.eup %5288 }
 0xad8   :  { %v3434_v30 = vmul.f32 %v5289_v44, %v7675_v43  ;;  %v5218_v44 = vld [vmem:[%s8185_s10 + $0x40] sm:$0xff]  }
 0xad9   :  { %v5291_v24 = vpop.eup %5290 }
 0xada   :  { %v3433_v31 = vmul.f32 %v5291_v24, %v7678_v36  ;;  %v3446_v21 = vmul.f32 %v7779_v8, %v3434_v30  ;;  %v5219_v30 = vld [vmem:[%s8185_s10] sm:$0xff]  }
 0xadb   :  { %v5293_v7 = vpop.eup %5292  ;;  %v3485_v24 = vld [vmem:[%s8186_s9] sm:$0x3] }
 0xadc   :  { %v3445_v32 = vmul.f32 %v7779_v8, %v3433_v31  ;;  %v7793_v25 = vadd.f32 %v7786_v52, %v3446_v21  ;;  %v3436_v36 = vmul.f32 %v5293_v7, %v7685_v56  ;;  %v7910_v31 = vrot.slane %v3485_v24, %v8301_v59 }
 0xadd   :  { %v5295_v61 = vpop.eup %5294  ;;  %v7913_v21 = vrot.slane %v3485_v24, %v8323_v11 }
 0xade   :  { %v7790_v9 = vadd.f32 %v7786_v52, %v3445_v32  ;;  %v3435_v43 = vmul.f32 %v5295_v61, %v7688_v29  ;;  %v3448_v2 = vmul.f32 %v7779_v8, %v3436_v36 }
 0xae0   :  { %v3465_v63 = vpack.c.bf16 %v7793_v25, %v7790_v9  ;;  %v3447_v38 = vmul.f32 %v7779_v8, %v3435_v43  ;;  %v7808_v60 = vadd.f32 %v7786_v52, %v3448_v2 }
 0xae2   :  { %3610 = vmatmul.mubr.bf16.vlgmr.msra.gmra.mxu1 %v3465_v63  ;;  %v7804_v12 = vadd.f32 %v7786_v52, %v3447_v38 }
 0xae3   :  { %v5021_v46 = vpop.f32.mrf.mxu1  ;;  %3619 = vmatprep.mubr.bf16.mxu1 %v8385_v27  ;;  %5026 = vmatpush3.bf16.msra.mxu1 %v7240_v58 }
 0xae4   :  { %v3412_v13 = vadd.f32 1e-06, %v5021_v46  ;;  %5027 = vmatprep.subr.bf16.mxu1 %v7251_v6  ;;  %v3466_v58 = vpack.c.bf16 %v7808_v60, %v7804_v12 }
 0xae5   :  { %v3406_v56 = vpop.f32.mrf.mxu1 }
 0xae6   :  { %5296 = vrsqrt.f32 %v3412_v13  ;;  %v3407_v29 = vadd.f32 1e-06, %v3406_v56 }
 0xae7   :  { %v5024_v22 = vpop.f32.mrf.mxu1  ;;  %5028 = vmatpush3.bf16.msra.mxu1 %v7251_v6 }
 0xae8   :  { %5298 = vrsqrt.f32 %v3407_v29  ;;  %v3422_v39 = vadd.f32 1e-06, %v5024_v22  ;;  %5029 = vmatprep.subr.bf16.mxu1 %v7270_v41 }
 0xae9   :  { %v3416_v15 = vpop.f32.mrf.mxu1 }
 0xaea   :  { %5300 = vrsqrt.f32 %v3422_v39  ;;  %v3417_v3 = vadd.f32 1e-06, %v3416_v15  ;;  %3620 = vmatmul.mubr.bf16.gmra.mxu1 %v3466_v58 }
 0xaeb   :  { %3629 = vmatprep.mubr.bf16.mxu1 %v8385_v27  ;;  %5030 = vmatpush3.bf16.msra.mxu1 %v7270_v41 }
 0xaec   :  { %5302 = vrsqrt.f32 %v3417_v3  ;;  %5031 = vmatprep.subr.bf16.mxu1 %v7294_v49 }
 0xaef   :  { %5032 = vmatpush3.bf16.msra.mxu1 %v7294_v49 }
 0xaf0   :  { %5033 = vmatprep.subr.bf16.mxu1 %v8381_v4 }
 0xaf3   :  { %v5297_v6 = vpop.eup %5296  ;;  %5034 = vmatpush3.bf16.msra.mxu1 %v8381_v4 }
 0xaf4   :  { %v3438_v40 = vmul.f32 %v5297_v6, %v7695_v23  ;;  %5035 = vmatprep.subr.bf16.mxu1 %v8382_v1 }
 0xaf5   :  { %v5299_v10 = vpop.eup %5298 }
 0xaf6   :  { %v3437_v28 = vmul.f32 %v5299_v10, %v7698_v48  ;;  %v3450_v14 = vmul.f32 %v7779_v8, %v3438_v40 }
 0xaf7   :  { %v5301_v41 = vpop.eup %5300  ;;  %5036 = vmatpush3.bf16.msra.mxu1 %v8382_v1 }
 0xaf8   :  { %v3449_v18 = vmul.f32 %v7779_v8, %v3437_v28  ;;  %5037 = vmatprep.subr.bf16.mxu1 %v8383_v42  ;;  %v7831_v4 = vadd.f32 %v7786_v52, %v3450_v14  ;;  %v3440_v48 = vmul.f32 %v5301_v41, %v7705_v51 }
 0xaf9   :  { %v5303_v49 = vpop.eup %5302 }
 0xafa   :  { %v7828_v54 = vadd.f32 %v7786_v52, %v3449_v18  ;;  %v3439_v23 = vmul.f32 %v5303_v49, %v7708_v53  ;;  %v3452_v20 = vmul.f32 %v7779_v8, %v3440_v48 }
 0xafb   :  { %5038 = vmatpush3.bf16.msra.mxu1 %v8383_v42  ;;  %v7849_v42 = vld [vmem:[%s8183_s2 + $0x38] sm:$0xff]  }
 0xafc   :  { %v3467_v1 = vpack.c.bf16 %v7831_v4, %v7828_v54  ;;  %v3451_v55 = vmul.f32 %v7779_v8, %v3439_v23  ;;  %5039 = vmatprep.subr.bf16.mxu1 %v8384_v19  ;;  %v7853_v51 = vadd.f32 %v7786_v52, %v3452_v20  ;;  %v5217_v8 = vld [vmem:[%s8185_s10 + $0x8] sm:$0xff]  }
 0xafe   :  { %3630 = vmatmul.mubr.bf16.gmra.mxu1 %v3467_v1  ;;  %v7844_v53 = vadd.f32 %v7786_v52, %v3451_v55 }
 0xaff   :  { %3639 = vmatprep.mubr.bf16.mxu1 %v8385_v27  ;;  %5040 = vmatpush3.bf16.msra.mxu1 %v8384_v19  ;;  %v5204_v19 = vld [vmem:[%s8185_s10 + $0x78] sm:$0xff]  }
 0xb00   :  { %5063 = vmatprep.subr.bf16.mxu1 %v7849_v42  ;;  %v3468_v62 = vpack.c.bf16 %v7853_v51, %v7844_v53  ;;  %v5205_v27 = vld [vmem:[%s8185_s10 + $0x38] sm:$0xff]   ;;  %4767 = vmatprep.subr.bf16.mxu0 %v5204_v19 }
 0xb01   :  { %4768 = vmatpush3.bf16.msra.mxu0 %v5205_v27 }
 0xb02   :  { %4769 = vmatprep.subr.bf16.mxu0 %v5206_v45 }
 0xb05   :  { %4770 = vmatpush3.bf16.msra.mxu0 %v5207_v35 }
 0xb06   :  { %3640 = vmatmul.mubr.bf16.gmra.mxu1 %v3468_v62  ;;  %4771 = vmatprep.subr.bf16.mxu0 %v5208_v0 }
 0xb09   :  { %4772 = vmatpush3.bf16.msra.mxu0 %v5209_v34 }
 0xb0a   :  { %4773 = vmatprep.subr.bf16.mxu0 %v5210_v37 }
 0xb0d   :  { %4774 = vmatpush3.bf16.msra.mxu0 %v5211_v33 }
 0xb0e   :  { %4775 = vmatprep.subr.bf16.mxu0 %v5212_v47 }
 0xb11   :  { %4776 = vmatpush3.bf16.msra.mxu0 %v5213_v16 }
 0xb12   :  { %4777 = vmatprep.subr.bf16.mxu0 %v5214_v26 }
 0xb15   :  { %4778 = vmatpush3.bf16.msra.mxu0 %v5215_v5 }
 0xb16   :  { %4779 = vmatprep.subr.bf16.mxu0 %v5216_v57 }
 0xb19   :  { %4780 = vmatpush3.bf16.msra.mxu0 %v5217_v8 }
 0xb1a   :  { %4781 = vmatprep.subr.bf16.mxu0 %v5218_v44 }
 0xb1d   :  { %4782 = vmatpush3.bf16.msra.mxu0 %v5219_v30 }
 0xb1e   :  { %5049 = vmatprep.subr.mxu0 %v7585_v17 }
 0xba2   :  { %v3611_v52 = vpop.f32.mrf.mxu1 }
 0xba3   :  { %v7916_v7 = vadd.f32 %v3611_v52, %v7910_v31 }
 0xba4   :  { %v3613_v32 = vpop.f32.mrf.mxu1 }
 0xba5   :  { %v3666_v61 = vmul.f32 0.044715, %v7916_v7  ;;  %v7920_v43 = vadd.f32 %v3613_v32, %v7913_v21 }
 0xba6   :  { %v3615_v36 = vpop.f32.mrf.mxu1 }
 0xba7   :  { %v3682_v63 = vmul.f32 %v3666_v61, %v7916_v7  ;;  %v3667_v38 = vmul.f32 0.044715, %v7920_v43  ;;  %v7925_v59 = vadd.f32 %v3615_v36, %v7910_v31 }
 0xba8   :  { %v3617_v11 = vpop.f32.mrf.mxu1 }
 0xba9   :  { %v3698_v2 = vmul.f32 %v3682_v63, %v7916_v7  ;;  %v3683_v46 = vmul.f32 %v3667_v38, %v7920_v43  ;;  %v3668_v13 = vmul.f32 0.044715, %v7925_v59  ;;  %v7931_v56 = vadd.f32 %v3617_v11, %v7913_v21 }
 0xbaa   :  { %v3621_v29 = vpop.f32.mrf.mxu1 }
 0xbab   :  { %v3714_v22 = vadd.f32 %v3698_v2, %v7916_v7  ;;  %v3699_v39 = vmul.f32 %v3683_v46, %v7920_v43  ;;  %v3684_v58 = vmul.f32 %v3668_v13, %v7925_v59  ;;  %v7937_v15 = vadd.f32 %v3621_v29, %v7910_v31 }
 0xbac   :  { %v3669_v3 = vmul.f32 0.044715, %v7931_v56  ;;  %v3623_v6 = vpop.f32.mrf.mxu1  ;;  %v3650_v29 = vmul.f32 0.5, %v7916_v7 }
 0xbad   :  { %v3730_v40 = vmul.f32 0.7978846, %v3714_v22  ;;  %v3700_v10 = vmul.f32 %v3684_v58, %v7925_v59  ;;  %v3670_v28 = vmul.f32 0.044715, %v7937_v15  ;;  %v7943_v14 = vadd.f32 %v3623_v6, %v7913_v21 }
 0xbae   :  { %v3685_v41 = vmul.f32 %v3669_v3, %v7931_v56  ;;  %v3625_v18 = vpop.f32.mrf.mxu1  ;;  %v3715_v49 = vadd.f32 %v3699_v39, %v7920_v43 }
 0xbaf   :  { %v3716_v23 = vadd.f32 %v3700_v10, %v7925_v59  ;;  %v3686_v48 = vmul.f32 %v3670_v28, %v7937_v15  ;;  %v3671_v1 = vmul.f32 0.044715, %v7943_v14  ;;  %5304 = vtanh.f32 %v3730_v40 }
 0xbb0   :  { %v3701_v55 = vmul.f32 %v3685_v41, %v7931_v56  ;;  %v3626_v20 = vadd.f32 %v3625_v18, %v7910_v31  ;;  %v3627_v62 = vpop.f32.mrf.mxu1  ;;  %v3731_v19 = vmul.f32 0.7978846, %v3715_v49  ;;  %v3652_v40 = vmul.f32 0.5, %v7925_v59 }
 0xbb1   :  { %v3732_v27 = vmul.f32 0.7978846, %v3716_v23  ;;  %v3702_v45 = vmul.f32 %v3686_v48, %v7937_v15  ;;  %v3687_v35 = vmul.f32 %v3671_v1, %v7943_v14  ;;  %v7955_v0 = vadd.f32 %v3627_v62, %v7913_v21 }
 0xbb2   :  { %v3672_v34 = vmul.f32 0.044715, %v3626_v20  ;;  %v3717_v37 = vadd.f32 %v3701_v55, %v7931_v56  ;;  %5306 = vtanh.f32 %v3731_v19  ;;  %v3651_v28 = vmul.f32 0.5, %v7920_v43 }
 0xbb3   :  { %5308 = vtanh.f32 %v3732_v27  ;;  %v3703_v33 = vmul.f32 %v3687_v35, %v7943_v14  ;;  %v3673_v47 = vmul.f32 0.044715, %v7955_v0  ;;  %v3718_v5 = vadd.f32 %v3702_v45, %v7937_v15 }
 0xbb4   :  { %v3688_v16 = vmul.f32 %v3672_v34, %v3626_v20  ;;  %v3733_v26 = vmul.f32 0.7978846, %v3717_v37  ;;  %v3653_v41 = vmul.f32 0.5, %v7931_v56  ;;  %v3654_v1 = vmul.f32 0.5, %v7937_v15 }
 0xbb5   :  { %v3689_v57 = vmul.f32 %v3673_v47, %v7955_v0  ;;  %v3719_v8 = vadd.f32 %v3703_v33, %v7943_v14  ;;  %v3734_v30 = vmul.f32 0.7978846, %v3718_v5  ;;  %v3655_v59 = vmul.f32 0.5, %v7943_v14 }
 0xbb6   :  { %v3704_v44 = vmul.f32 %v3688_v16, %v3626_v20  ;;  %5310 = vtanh.f32 %v3733_v26  ;;  %v3656_v27 = vmul.f32 0.5, %v3626_v20 }
 0xbb7   :  { %v3705_v24 = vmul.f32 %v3689_v57, %v7955_v0  ;;  %v3735_v52 = vmul.f32 0.7978846, %v3719_v8  ;;  %5312 = vtanh.f32 %v3734_v30 }
 0xbb8   :  { %v3720_v32 = vadd.f32 %v3704_v44, %v3626_v20 }
 0xbb9   :  { %v3721_v61 = vadd.f32 %v3705_v24, %v7955_v0  ;;  %5314 = vtanh.f32 %v3735_v52  ;;  %v3657_v24 = vmul.f32 0.5, %v7955_v0 }
 0xbba   :  { %v3736_v36 = vmul.f32 0.7978846, %v3720_v32 }
 0xbbb   :  { %v3737_v63 = vmul.f32 0.7978846, %v3721_v61 }
 0xbbc   :  { %5316 = vtanh.f32 %v3736_v36  ;;  %v5305_v38 = vpop.eup %5304 }
 0xbbd   :  { %5318 = vtanh.f32 %v3737_v63  ;;  %v3762_v3 = vadd.f32 1.0, %v5305_v38 }
 0xbbe   :  { %v3631_v11 = vpop.f32.mrf.mxu1 }
 0xbbf   :  { %v5307_v2 = vpop.eup %5306  ;;  %v7966_v46 = vadd.f32 %v3631_v11, %v7910_v31  ;;  %v3778_v34 = vmul.f32 %v3762_v3, %v3650_v29 }
 0xbc0   :  { %v5309_v13 = vpop.eup %5308  ;;  %v3633_v22 = vpop.f32.mrf.mxu1  ;;  %v3763_v18 = vadd.f32 1.0, %v5307_v2 }
 0xbc1   :  { %v3674_v39 = vmul.f32 0.044715, %v7966_v46  ;;  %v7971_v58 = vadd.f32 %v3633_v22, %v7913_v21  ;;  %v3764_v6 = vadd.f32 1.0, %v5309_v13 }
 0xbc2   :  { %v3635_v10 = vpop.f32.mrf.mxu1  ;;  %v3779_v15 = vmul.f32 %v3763_v18, %v3651_v28 }
 0xbc3   :  { %v5311_v49 = vpop.eup %5310  ;;  %v3690_v23 = vmul.f32 %v3674_v39, %v7966_v46  ;;  %v3675_v7 = vmul.f32 0.044715, %v7971_v58  ;;  %v7979_v48 = vadd.f32 %v3635_v10, %v7910_v31  ;;  %v3780_v19 = vmul.f32 %v3764_v6, %v3652_v40 }
 0xbc4   :  { %v3637_v55 = vpop.f32.mrf.mxu1  ;;  %v3765_v62 = vadd.f32 1.0, %v5311_v49  ;;  %v5313_v43 = vpop.eup %5312 }
 0xbc5   :  { %v3691_v56 = vmul.f32 %v3675_v7, %v7971_v58  ;;  %v3676_v45 = vmul.f32 0.044715, %v7979_v48  ;;  %v7986_v35 = vadd.f32 %v3637_v55, %v7913_v21  ;;  %v3706_v33 = vmul.f32 %v3690_v23, %v7966_v46 }
 0xbc6   :  { %v5315_v37 = vpop.eup %5314  ;;  %v3641_v47 = vpop.f32.mrf.mxu1  ;;  %v3781_v16 = vmul.f32 %v3765_v62, %v3653_v41  ;;  %v3766_v26 = vadd.f32 1.0, %v5313_v43  ;;  %v3794_v30 = vpack.c.bf16 %v3780_v19, %v3778_v34 }
 0xbc7   :  { %v3707_v5 = vmul.f32 %v3691_v56, %v7971_v58  ;;  %v3692_v14 = vmul.f32 %v3676_v45, %v7979_v48  ;;  %v3677_v20 = vmul.f32 0.044715, %v7986_v35  ;;  %v7993_v57 = vadd.f32 %v3641_v47, %v7910_v31 }
 0xbc8   :  { %v3643_v8 = vpop.f32.mrf.mxu1  ;;  %v3795_v44 = vpack.c.bf16 %v3781_v16, %v3779_v15  ;;  %v3767_v52 = vadd.f32 1.0, %v5315_v37  ;;  %v3782_v29 = vmul.f32 %v3766_v26, %v3654_v1  ;;  %v3722_v0 = vadd.f32 %v3706_v33, %v7966_v46 }
 0xbc9   :  { %v5317_v32 = vpop.eup %5316  ;;  %v3708_v61 = vmul.f32 %v3692_v14, %v7979_v48  ;;  %v3693_v36 = vmul.f32 %v3677_v20, %v7986_v35  ;;  %v3678_v63 = vmul.f32 0.044715, %v7993_v57  ;;  %v8000_v38 = vadd.f32 %v3643_v8, %v7913_v21 }
 0xbca   :  { %v5319_v11 = vpop.eup %5318  ;;  %3966 = vmatprep.mubr.bf16.mxu0 %v3795_v44  ;;  %v3645_v2 = vpop.f32.mrf.mxu1  ;;  %v3768_v13 = vadd.f32 1.0, %v5317_v32  ;;  %v3723_v22 = vadd.f32 %v3707_v5, %v7971_v58  ;;  %v3783_v41 = vmul.f32 %v3767_v52, %v3655_v59  ;;  %v3738_v45 = vmul.f32 0.7978846, %v3722_v0 }
 0xbcb   :  { %v3709_v39 = vmul.f32 %v3693_v36, %v7986_v35  ;;  %v3694_v3 = vmul.f32 %v3678_v63, %v7993_v57  ;;  %v3679_v6 = vmul.f32 0.044715, %v8000_v38  ;;  %v8008_v40 = vadd.f32 %v3645_v2, %v7910_v31  ;;  %3967 = vmatmul.mubr.bf16.vlgmr.msra.gmra.mxu0 %v3794_v30 }
 0xbcc   :  { %v3647_v10 = vpop.f32.mrf.mxu1  ;;  %v3769_v28 = vadd.f32 1.0, %v5319_v11  ;;  %v3739_v18 = vmul.f32 0.7978846, %v3723_v22  ;;  %v3724_v49 = vadd.f32 %v3708_v61, %v7979_v48  ;;  %5050 = vmatpush3.msra.mxu0 %v7585_v17  ;;  %v3784_v55 = vmul.f32 %v3768_v13, %v3656_v27 }
 0xbcd   :  { %v3695_v23 = vmul.f32 %v3679_v6, %v8000_v38  ;;  %v3680_v7 = vmul.f32 0.044715, %v8008_v40  ;;  %v3648_v1 = vadd.f32 %v3647_v10, %v7913_v21  ;;  %5087 = vmatprep.subr.mxu0 %v7585_v17  ;;  %v3710_v31 = vmul.f32 %v3694_v3, %v7993_v57 }
 0xbce   :  { %v3785_v62 = vmul.f32 %v3769_v28, %v3657_v24  ;;  %v3725_v19 = vadd.f32 %v3709_v39, %v7986_v35  ;;  %5320 = vtanh.f32 %v3739_v18  ;;  %v3740_v33 = vmul.f32 0.7978846, %v3724_v49 }
 0xbcf   :  { %v3711_v59 = vmul.f32 %v3695_v23, %v8000_v38  ;;  %v3696_v43 = vmul.f32 %v3680_v7, %v8008_v40  ;;  %v3681_v56 = vmul.f32 0.044715, %v3648_v1  ;;  %v3796_v47 = vpack.c.bf16 %v3784_v55, %v3782_v29 }
 0xbd0   :  { %v3797_v34 = vpack.c.bf16 %v3785_v62, %v3783_v41  ;;  %v3741_v37 = vmul.f32 0.7978846, %v3725_v19  ;;  %5322 = vtanh.f32 %v3738_v45  ;;  %v3726_v16 = vadd.f32 %v3710_v31, %v7993_v57 }
 0xbd1   :  { %v3712_v21 = vmul.f32 %v3696_v43, %v8008_v40  ;;  %v3697_v27 = vmul.f32 %v3681_v56, %v3648_v1  ;;  %v3727_v17 = vadd.f32 %v3711_v59, %v8000_v38  ;;  %v3659_v63 = vmul.f32 0.5, %v7971_v58 }
 0xbd2   :  { %3974 = vmatprep.mubr.bf16.mxu0 %v3797_v34  ;;  %5324 = vtanh.f32 %v3741_v37  ;;  %v3742_v20 = vmul.f32 0.7978846, %v3726_v16  ;;  %v3661_v11 = vmul.f32 0.5, %v7986_v35  ;;  %v3658_v13 = vmul.f32 0.5, %v7966_v46 }
 0xbd3   :  { %v3713_v15 = vmul.f32 %v3697_v27, %v3648_v1  ;;  %3975 = vmatmul.mubr.bf16.gmra.mxu0 %v3796_v47  ;;  %5326 = vtanh.f32 %v3740_v33  ;;  %v3728_v26 = vadd.f32 %v3712_v21, %v8008_v40  ;;  %v3743_v5 = vmul.f32 0.7978846, %v3727_v17 }
 0xbd4   :  { %v3660_v29 = vmul.f32 0.5, %v7979_v48  ;;  %v3663_v58 = vmul.f32 0.5, %v8000_v38  ;;  %v3665_v46 = vmul.f32 0.5, %v3648_v1  ;;  %v3664_v48 = vmul.f32 0.5, %v8008_v40  ;;  %v8386_v38 = vld [vmem:[#allocation28_spill] sm:$0xff] }
 0xbd5   :  { %v3729_v14 = vadd.f32 %v3713_v15, %v3648_v1  ;;  %v3744_v8 = vmul.f32 0.7978846, %v3728_v26  ;;  %5328 = vtanh.f32 %v3743_v5  ;;  %v3662_v59 = vmul.f32 0.5, %v7993_v57 }
 0xbd6   :  { %5330 = vtanh.f32 %v3742_v20  ;;  %v3837_v21 = vrot.slane %v7775_v50, %v8386_v38 }
 0xbd7   :  { %v3745_v44 = vmul.f32 0.7978846, %v3729_v14  ;;  %5332 = vtanh.f32 %v3744_v8 }
 0xbd9   :  { %5334 = vtanh.f32 %v3745_v44 }
 0xbdb   :  { %v5321_v30 = vpop.eup %5320 }
 0xbdc   :  { %v3771_v52 = vadd.f32 1.0, %v5321_v30 }
 0xbdd   :  { %v5323_v24 = vpop.eup %5322 }
 0xbde   :  { %v3770_v61 = vadd.f32 1.0, %v5323_v24  ;;  %v3787_v0 = vmul.f32 %v3771_v52, %v3659_v63 }
 0xbdf   :  { %v5325_v32 = vpop.eup %5324 }
 0xbe0   :  { %v5327_v36 = vpop.eup %5326  ;;  %v3773_v2 = vadd.f32 1.0, %v5325_v32  ;;  %v3786_v6 = vmul.f32 %v3770_v61, %v3658_v13 }
 0xbe1   :  { %v3772_v22 = vadd.f32 1.0, %v5327_v36 }
 0xbe2   :  { %v3789_v39 = vmul.f32 %v3773_v2, %v3661_v11  ;;  %v5329_v3 = vpop.eup %5328 }
 0xbe3   :  { %v3788_v10 = vmul.f32 %v3772_v22, %v3660_v29  ;;  %v5331_v28 = vpop.eup %5330  ;;  %v3775_v23 = vadd.f32 1.0, %v5329_v3 }
 0xbe4   :  { %v3799_v41 = vpack.c.bf16 %v3789_v39, %v3787_v0  ;;  %v5333_v18 = vpop.eup %5332  ;;  %v3774_v31 = vadd.f32 1.0, %v5331_v28  ;;  %v5366_v0 = vld [vmem:[%s8183_s2 + $0x18] sm:$0xff]  }
 0xbe5   :  { %v3798_v49 = vpack.c.bf16 %v3788_v10, %v3786_v6  ;;  %v3776_v35 = vadd.f32 1.0, %v5333_v18  ;;  %v3791_v62 = vmul.f32 %v3775_v23, %v3663_v58  ;;  %v5367_v18 = vld [vmem:[%s8183_s2 + $0x10] sm:$0xff]  }
 0xbe6   :  { %v5335_v7 = vpop.eup %5334  ;;  %3982 = vmatprep.mubr.bf16.mxu0 %v3799_v41  ;;  %v3790_v45 = vmul.f32 %v3774_v31, %v3662_v59 }
 0xbe7   :  { %3983 = vmatmul.mubr.bf16.gmra.mxu0 %v3798_v49  ;;  %v3777_v55 = vadd.f32 1.0, %v5335_v7  ;;  %v3792_v43 = vmul.f32 %v3776_v35, %v3664_v48  ;;  %v5370_v48 = vld [vmem:[%s8179_s3] sm:$0xff] }
 0xbe9   :  { %v3793_v19 = vmul.f32 %v3777_v55, %v3665_v46  ;;  %v3800_v34 = vpack.c.bf16 %v3792_v43, %v3790_v45  ;;  %v5369_v55 = vld [vmem:[%s8183_s2] sm:$0xff]  }
 0xbeb   :  { %v3801_v56 = vpack.c.bf16 %v3793_v19, %v3791_v62 }
 0xbed   :  { %3990 = vmatprep.mubr.bf16.mxu0 %v3801_v56 }
 0xbef   :  { %3991 = vmatmul.mubr.bf16.gmra.mxu0 %v3800_v34 }
 0xc8b   :  { %v4783_v37 = vpop.f32.mrf.mxu0 }
 0xc8d   :  { %v4784_v33 = vpop.f32.mrf.mxu0 }
 0xc8e   :  { %v4785_v1 = vadd.f32 %v4784_v33, %v4783_v37 }
 0xc8f   :  { %v4786_v27 = vpop.f32.mrf.mxu0 }
 0xc90   :  { %v3969_v40 = vadd.f32 %v4785_v1, %v3837_v21 }
 0xc91   :  { %v4787_v47 = vpop.f32.mrf.mxu0 }
 0xc92   :  { %v4788_v17 = vadd.f32 %v4787_v47, %v4786_v27  ;;  %v8034_v57 = vadd.f32 %v3969_v40, %v7790_v9 }
 0xc93   :  { %v4789_v15 = vpop.f32.mrf.mxu0 }
 0xc94   :  { %v3972_v16 = vadd.f32 %v4788_v17, %v3837_v21 }
 0xc95   :  { %v4790_v26 = vpop.f32.mrf.mxu0 }
 0xc96   :  { %v8037_v5 = vadd.f32 %v3972_v16, %v7793_v25  ;;  %v4791_v14 = vadd.f32 %v4790_v26, %v4789_v15  ;;  %v5363_v25 = vld [vmem:[%s8183_s2 + $0x30] sm:$0xff]  }
 0xc97   :  { %v4792_v20 = vpop.f32.mrf.mxu0 }
 0xc98   :  { %v4007_v8 = vpack.c.bf16 %v8037_v5, %v8034_v57  ;;  %v3977_v44 = vadd.f32 %v4791_v14, %v3837_v21 }
 0xc99   :  { %v4793_v50 = vpop.f32.mrf.mxu0 }
 0xc9a   :  { %v4794_v30 = vadd.f32 %v4793_v50, %v4792_v20  ;;  %5041 = vmatprep.mubr.bf16.mxu1 %v4007_v8  ;;  %v8042_v52 = vadd.f32 %v3977_v44, %v7804_v12  ;;  %v5364_v12 = vld [vmem:[%s8183_s2 + $0x28] sm:$0xff]  }
 0xc9c   :  { %v3980_v24 = vadd.f32 %v4794_v30, %v3837_v21 }
 0xc9e   :  { %v8045_v32 = vadd.f32 %v3980_v24, %v7808_v60 }
 0xca0   :  { %v4008_v9 = vpack.c.bf16 %v8045_v32, %v8042_v52 }
 0xca2   :  { %5042 = vmatmul.mubr.bf16.vlgmr.msra.gmra.mxu1 %v4008_v9 }
 0xca3   :  { %5064 = vmatpush3.bf16.msra.mxu1 %v7849_v42  ;;  %v5365_v42 = vld [vmem:[%s8183_s2 + $0x20] sm:$0xff]  }
 0xca4   :  { %5065 = vmatprep.subr.bf16.mxu1 %v5363_v25 }
 0xca7   :  { %v4795_v61 = vpop.f32.mrf.mxu0  ;;  %5066 = vmatpush3.bf16.msra.mxu1 %v5363_v25 }
 0xca8   :  { %5067 = vmatprep.subr.bf16.mxu1 %v5364_v12 }
 0xca9   :  { %v4796_v60 = vpop.f32.mrf.mxu0 }
 0xcaa   :  { %v4797_v36 = vadd.f32 %v4796_v60, %v4795_v61 }
 0xcab   :  { %v4798_v63 = vpop.f32.mrf.mxu0  ;;  %5068 = vmatpush3.bf16.msra.mxu1 %v5364_v12 }
 0xcac   :  { %5069 = vmatprep.subr.bf16.mxu1 %v5365_v42  ;;  %v3985_v2 = vadd.f32 %v4797_v36, %v3837_v21 }
 0xcad   :  { %v4799_v11 = vpop.f32.mrf.mxu0 }
 0xcae   :  { %v4800_v13 = vadd.f32 %v4799_v11, %v4798_v63  ;;  %v8063_v3 = vadd.f32 %v3985_v2, %v7828_v54 }
 0xcaf   :  { %v4801_v29 = vpop.f32.mrf.mxu0  ;;  %5070 = vmatpush3.bf16.msra.mxu1 %v5365_v42 }
 0xcb0   :  { %v3988_v22 = vadd.f32 %v4800_v13, %v3837_v21  ;;  %5071 = vmatprep.subr.bf16.mxu1 %v5366_v0 }
 0xcb1   :  { %v4802_v39 = vpop.f32.mrf.mxu0 }
 0xcb2   :  { %v8066_v6 = vadd.f32 %v3988_v22, %v7831_v4  ;;  %v4803_v10 = vadd.f32 %v4802_v39, %v4801_v29  ;;  %v5368_v4 = vld [vmem:[%s8183_s2 + $0x8] sm:$0xff]  }
 0xcb3   :  { %v4804_v28 = vpop.f32.mrf.mxu0  ;;  %5072 = vmatpush3.bf16.msra.mxu1 %v5366_v0 }
 0xcb4   :  { %v4009_v41 = vpack.c.bf16 %v8066_v6, %v8063_v3  ;;  %5073 = vmatprep.subr.bf16.mxu1 %v5367_v18  ;;  %v3993_v23 = vadd.f32 %v4803_v10, %v3837_v21 }
 0xcb5   :  { %v4805_v49 = vpop.f32.mrf.mxu0 }
 0xcb6   :  { %v4806_v7 = vadd.f32 %v4805_v49, %v4804_v28  ;;  %5045 = vmatprep.mubr.bf16.mxu1 %v4009_v41  ;;  %v4005_v58 = vadd.f32 %v3993_v23, %v7844_v53 }
 0xcb7   :  { %5074 = vmatpush3.bf16.msra.mxu1 %v5367_v18 }
 0xcb8   :  { %v3996_v54 = vadd.f32 %v4806_v7, %v3837_v21  ;;  %5075 = vmatprep.subr.bf16.mxu1 %v5368_v4 }
 0xcba   :  { %v4006_v35 = vadd.f32 %v3996_v54, %v7853_v51 }
 0xcbb   :  { %5076 = vmatpush3.bf16.msra.mxu1 %v5368_v4 }
 0xcbc   :  { %v4010_v46 = vpack.c.bf16 %v4006_v35, %v4005_v58  ;;  %5077 = vmatprep.subr.bf16.mxu1 %v5369_v55 }
 0xcbe   :  { %5046 = vmatmul.mubr.bf16.gmra.mxu1 %v4010_v46 }
 0xcbf   :  { %5078 = vmatpush3.bf16.msra.mxu1 %v5369_v55 }
 0xcc0   :  { %5101 = vmatprep.subr.mxu1 %v5370_v48 }
 0xd62   :  { %v5043_v31 = vpop.f32.mrf.mxu1 }
 0xd63   :  { %v4078_v43 = vmul.f32 0.0625, %v5043_v31 }
 0xd64   :  { %v4045_v62 = vpop.f32.mrf.mxu1 }
 0xd65   :  { %v4076_v19 = vmul.f32 0.0625, %v4045_v62 }
 0xd66   :  { %v5044_v53 = vpop.f32.mrf.mxu1 }
 0xd67   :  { %5051 = vmatprep.mubr.msk.f32.mxu0 %vm911_vm2, %v4076_v19  ;;  %v4079_v56 = vmul.f32 0.0625, %v5044_v53 }
 0xd68   :  { %v4048_v51 = vpop.f32.mrf.mxu1 }
 0xd69   :  { %v4077_v59 = vmul.f32 0.0625, %v4048_v51  ;;  %v5371_v51 = vld [vmem:[%s8178_s11 + $0x40] sm:$0xff] }
 0xd6b   :  { %5052 = vmatmul.mubr.msk.f32.vlgmr.msra.gmra.mxu0 %vm911_vm2, %v4077_v59  ;;  %v8387_v59 = vld [vmem:[#allocation26_spill] sm:$0xff] }
 0xd6c   :  { %5054 = vmatprep.mubr.msk.f32.mxu0 %vm911_vm2, %v4078_v43  ;;  %5088 = vmatpush3.msra.mxu0 %v5370_v48  ;;  %v4454_v43 = vrot.slane %v5371_v51, %v8387_v59 }
 0xd6f   :  { %5055 = vmatmul.mubr.msk.f32.gmra.mxu0 %vm911_vm2, %v4079_v56 }
 0xd7e   :  { %v5047_v45 = vpop.f32.mrf.mxu1 }
 0xd7f   :  { %v4082_v1 = vmul.f32 0.0625, %v5047_v45 }
 0xd80   :  { %v4061_v34 = vpop.f32.mrf.mxu1 }
 0xd81   :  { %v4080_v37 = vmul.f32 0.0625, %v4061_v34  ;;  %v8388_v34 = vld [vmem:[#allocation27_spill] sm:$0xff] }
 0xd82   :  { %v5048_v33 = vpop.f32.mrf.mxu1 }
 0xd83   :  { %5057 = vmatprep.mubr.msk.f32.mxu0 %vm911_vm2, %v4080_v37  ;;  %v4083_v27 = vmul.f32 0.0625, %v5048_v33  ;;  %v4466_v37 = vrot.slane %v5371_v51, %v8388_v34 }
 0xd84   :  { %v4064_v38 = vpop.f32.mrf.mxu1 }
 0xd85   :  { %v4081_v21 = vmul.f32 0.0625, %v4064_v38 }
 0xd87   :  { %5058 = vmatmul.mubr.msk.f32.gmra.mxu0 %vm911_vm2, %v4081_v21 }
 0xd88   :  { %5060 = vmatprep.mubr.msk.f32.mxu0 %vm911_vm2, %v4082_v1 }
 0xd8b   :  { %5061 = vmatmul.mubr.msk.f32.gmra.mxu0 %vm911_vm2, %v4083_v27 }
 0xe2b   :  { %v5053_v47 = vpop.f32.mrf.mxu0 }
 0xe2c   :  { %v8093_v40 = vsub.f32 %v8037_v5, %v5053_v47 }
 0xe2d   :  { %v4174_v17 = vpop.f32.mrf.mxu0 }
 0xe2e   :  { %v8096_v15 = vsub.f32 %v8034_v57, %v4174_v17  ;;  %v4222_v26 = vmul.f32 %v8093_v40, %v8093_v40 }
 0xe2f   :  { %v5056_v16 = vpop.f32.mrf.mxu0 }
 0xe30   :  { %v4221_v14 = vmul.f32 %v8096_v15, %v8096_v15  ;;  %v8103_v20 = vsub.f32 %v8045_v32, %v5056_v16 }
 0xe31   :  { %v4184_v8 = vpop.f32.mrf.mxu0 }
 0xe32   :  { %v8106_v50 = vsub.f32 %v8042_v52, %v4184_v8  ;;  %v4229_v5 = vpack.c.bf16 %v4222_v26, %v4221_v14  ;;  %v4224_v44 = vmul.f32 %v8103_v20, %v8103_v20 }
 0xe34   :  { %v4223_v57 = vmul.f32 %v8106_v50, %v8106_v50  ;;  %5079 = vmatprep.mubr.bf16.mxu1 %v4229_v5 }
 0xe36   :  { %v4230_v30 = vpack.c.bf16 %v4224_v44, %v4223_v57 }
 0xe38   :  { %5080 = vmatmul.mubr.bf16.vlgmr.msra.gmra.mxu1 %v4230_v30 }
 0xe39   :  { %5102 = vmatpush3.msra.mxu1 %v5370_v48 }
 0xe47   :  { %v5059_v24 = vpop.f32.mrf.mxu0 }
 0xe48   :  { %v8113_v9 = vsub.f32 %v8066_v6, %v5059_v24 }
 0xe49   :  { %v4194_v32 = vpop.f32.mrf.mxu0 }
 0xe4a   :  { %v8116_v25 = vsub.f32 %v8063_v3, %v4194_v32  ;;  %v4226_v61 = vmul.f32 %v8113_v9, %v8113_v9 }
 0xe4b   :  { %v5062_v52 = vpop.f32.mrf.mxu0 }
 0xe4c   :  { %v4225_v12 = vmul.f32 %v8116_v25, %v8116_v25  ;;  %v8122_v60 = vsub.f32 %v4006_v35, %v5062_v52 }
 0xe4d   :  { %v4204_v36 = vpop.f32.mrf.mxu0 }
 0xe4e   :  { %v8124_v63 = vsub.f32 %v4005_v58, %v4204_v36  ;;  %v4231_v42 = vpack.c.bf16 %v4226_v61, %v4225_v12  ;;  %v4228_v11 = vmul.f32 %v8122_v60, %v8122_v60 }
 0xe50   :  { %v4227_v2 = vmul.f32 %v8124_v63, %v8124_v63  ;;  %5083 = vmatprep.mubr.bf16.mxu1 %v4231_v42 }
 0xe52   :  { %v4232_v13 = vpack.c.bf16 %v4228_v11, %v4227_v2 }
 0xe54   :  { %5084 = vmatmul.mubr.bf16.gmra.mxu1 %v4232_v13 }
 0xef8   :  { %v5081_v29 = vpop.f32.mrf.mxu1 }
 0xef9   :  { %v4300_v10 = vmul.f32 0.0625, %v5081_v29 }
 0xefa   :  { %v4267_v22 = vpop.f32.mrf.mxu1 }
 0xefb   :  { %v4298_v0 = vmul.f32 0.0625, %v4267_v22 }
 0xefc   :  { %v5082_v39 = vpop.f32.mrf.mxu1 }
 0xefd   :  { %5089 = vmatprep.mubr.msk.f32.mxu0 %vm911_vm2, %v4298_v0  ;;  %v4301_v28 = vmul.f32 0.0625, %v5082_v39 }
 0xefe   :  { %v4270_v3 = vpop.f32.mrf.mxu1 }
 0xeff   :  { %v4299_v6 = vmul.f32 0.0625, %v4270_v3 }
 0xf01   :  { %5090 = vmatmul.mubr.msk.f32.vlgmr.msra.gmra.mxu0 %vm911_vm2, %v4299_v6 }
 0xf02   :  { %5092 = vmatprep.mubr.msk.f32.mxu0 %vm911_vm2, %v4300_v10 }
 0xf05   :  { %5093 = vmatmul.mubr.msk.f32.gmra.mxu0 %vm911_vm2, %v4301_v28 }
 0xf14   :  { %v5085_v41 = vpop.f32.mrf.mxu1 }
 0xf15   :  { %v4304_v18 = vmul.f32 0.0625, %v5085_v41 }
 0xf16   :  { %v4283_v49 = vpop.f32.mrf.mxu1 }
 0xf17   :  { %v4302_v23 = vmul.f32 0.0625, %v4283_v49  ;;  %5098 = vmatprep.mubr.msk.f32.mxu1 %vm911_vm2, %v4304_v18 }
 0xf18   :  { %v5086_v7 = vpop.f32.mrf.mxu1 }
 0xf19   :  { %v4305_v54 = vmul.f32 0.0625, %v5086_v7  ;;  %5095 = vmatprep.mubr.msk.f32.mxu0 %vm911_vm2, %v4302_v23 }
 0xf1a   :  { %v4286_v4 = vpop.f32.mrf.mxu1 }
 0xf1b   :  { %v4303_v58 = vmul.f32 0.0625, %v4286_v4  ;;  %5099 = vmatmul.mubr.msk.f32.vlgmr.msra.gmra.mxu1 %vm911_vm2, %v4305_v54 }
 0xf1d   :  { %5096 = vmatmul.mubr.msk.f32.gmra.mxu0 %vm911_vm2, %v4303_v58 }
 0xfc1   :  { %v5091_v35 = vpop.f32.mrf.mxu0 }
 0xfc2   :  { %v4402_v46 = vadd.f32 1e-06, %v5091_v35 }
 0xfc3   :  { %v4396_v55 = vpop.f32.mrf.mxu0 }
 0xfc4   :  { %5336 = vrsqrt.f32 %v4402_v46  ;;  %v4397_v48 = vadd.f32 1e-06, %v4396_v55 }
 0xfc5   :  { %v5094_v31 = vpop.f32.mrf.mxu0 }
 0xfc6   :  { %5338 = vrsqrt.f32 %v4397_v48  ;;  %v4412_v62 = vadd.f32 1e-06, %v5094_v31 }
 0xfc7   :  { %v4406_v19 = vpop.f32.mrf.mxu0 }
 0xfc8   :  { %5340 = vrsqrt.f32 %v4412_v62  ;;  %v4407_v53 = vadd.f32 1e-06, %v4406_v19 }
 0xfca   :  { %5342 = vrsqrt.f32 %v4407_v53 }
 0xfd1   :  { %v5337_v56 = vpop.eup %5336 }
 0xfd2   :  { %v4444_v45 = vmul.f32 %v5337_v56, %v8093_v40 }
 0xfd3   :  { %v5339_v33 = vpop.eup %5338 }
 0xfd4   :  { %v4456_v38 = vmul.f32 %v4454_v43, %v4444_v45  ;;  %v4443_v21 = vmul.f32 %v5339_v33, %v8096_v15 }
 0xfd5   :  { %v5341_v1 = vpop.eup %5340 }
 0xfd6   :  { %v4468_v27 = vadd.f32 %v4466_v37, %v4456_v38  ;;  %v4455_v47 = vmul.f32 %v4454_v43, %v4443_v21  ;;  %v4446_v17 = vmul.f32 %v5341_v1, %v8103_v20 }
 0xfd7   :  { %v5343_v16 = vpop.eup %5342 }
 0xfd8   :  { %4476 = vst [vmem:[%s8187_s12 + $0x8] sm:$0xff] %v4468_v27  ;;  %v4467_v26 = vadd.f32 %v4466_v37, %v4455_v47  ;;  %v4458_v14 = vmul.f32 %v4454_v43, %v4446_v17  ;;  %v4445_v40 = vmul.f32 %v5343_v16, %v8106_v50 }
 0xfda   :  { %4475 = vst [vmem:[%s8187_s12] sm:$0xff] %v4467_v26  ;;  %v4470_v8 = vadd.f32 %v4466_v37, %v4458_v14  ;;  %v4457_v15 = vmul.f32 %v4454_v43, %v4445_v40 }
 0xfdb   :  { %v5100_v5 = vpop.f32.mrf.mxu1 }
 0xfdc   :  { %4478 = vst [vmem:[%s8187_s12 + $0x18] sm:$0xff] %v4470_v8  ;;  %v4469_v20 = vadd.f32 %v4466_v37, %v4457_v15  ;;  %v4432_v44 = vadd.f32 1e-06, %v5100_v5 }
 0xfdd   :  { %v5097_v57 = vpop.f32.mrf.mxu0  ;;  %v4426_v30 = vpop.f32.mrf.mxu1 }
 0xfde   :  { %4477 = vst [vmem:[%s8187_s12 + $0x10] sm:$0xff] %v4469_v20  ;;  %5344 = vrsqrt.f32 %v4432_v44  ;;  %v4422_v50 = vadd.f32 1e-06, %v5097_v57  ;;  %v4427_v24 = vadd.f32 1e-06, %v4426_v30 }
 0xfdf   :  { %v4416_v32 = vpop.f32.mrf.mxu0 }
 0xfe0   :  { %5346 = vrsqrt.f32 %v4422_v50  ;;  %v4417_v52 = vadd.f32 1e-06, %v4416_v32 }
 0xfe1   :  { %5348 = vrsqrt.f32 %v4427_v24 }
 0xfe2   :  { %5350 = vrsqrt.f32 %v4417_v52 }
 0xfeb   :  { %v5345_v61 = vpop.eup %5344 }
 0xfec   :  { %v4450_v12 = vmul.f32 %v5345_v61, %v8122_v60 }
 0xfed   :  { %v5347_v36 = vpop.eup %5346 }
 0xfee   :  { %v5349_v42 = vpop.eup %5348  ;;  %v4462_v11 = vmul.f32 %v4454_v43, %v4450_v12  ;;  %v4448_v2 = vmul.f32 %v5347_v36, %v8113_v9 }
 0xfef   :  { %v5351_v13 = vpop.eup %5350  ;;  %v4449_v29 = vmul.f32 %v5349_v42, %v8124_v63 }
 0xff0   :  { %v4474_v22 = vadd.f32 %v4466_v37, %v4462_v11  ;;  %v4460_v0 = vmul.f32 %v4454_v43, %v4448_v2  ;;  %v4447_v39 = vmul.f32 %v5351_v13, %v8116_v25 }
 0xff1   :  { %v4461_v3 = vmul.f32 %v4454_v43, %v4449_v29 }
 0xff2   :  { %4482 = vst [vmem:[%s8187_s12 + $0x38] sm:$0xff] %v4474_v22  ;;  %v4472_v6 = vadd.f32 %v4466_v37, %v4460_v0  ;;  %v4459_v10 = vmul.f32 %v4454_v43, %v4447_v39 }
 0xff3   :  { %v4473_v60 = vadd.f32 %v4466_v37, %v4461_v3 }
 0xff4   :  { %4480 = vst [vmem:[%s8187_s12 + $0x28] sm:$0xff] %v4472_v6  ;;  %v4471_v9 = vadd.f32 %v4466_v37, %v4459_v10 }
 0xff5   :  { %4481 = vst [vmem:[%s8187_s12 + $0x30] sm:$0xff] %v4473_v60 }
 0xff6   :  { %4479 = vst [vmem:[%s8187_s12 + $0x20] sm:$0xff] %v4471_v9 }

</bundles_post_ra>
